<compile_context>
chip_gen: v7x
topology: tpu7x:2x2x1
jax: 0.10.0
libtpu: 0.0.40
codegen_flags: <defaults>
</compile_context>

<pallas_src>
import math
import functools

import jax
import jax.numpy as jnp
from jax.experimental import pallas as pl
from jax.experimental.pallas import tpu as pltpu


def _layernorm(x, g, b, eps=1e-5):
    mu = jnp.mean(x, axis=-1, keepdims=True)
    var = jnp.mean((x - mu) ** 2, axis=-1, keepdims=True)
    return (x - mu) * jax.lax.rsqrt(var + eps) * g + b


# ----------------------------------------------------------------------------
# Fused kernel: embedding gather + PE + 2x encoder layer + fc_out
# ----------------------------------------------------------------------------
def fused_forward_kernel(tok_ref, emb_ref, pe_ref,
                         wq_ref, bq_ref, wk_ref, bk_ref, wv_ref, bv_ref,
                         wo_ref, bo_ref,
                         w1_ref, b1_ref, w2_ref, b2_ref,
                         g1_ref, be1_ref, g2_ref, be2_ref,
                         fcw_ref, fcb_ref,
                         o_ref, *, batch, seq_len, num_heads, num_layers):
    B, S, H, L = batch, seq_len, num_heads, num_layers
    BS = B * S
    V, E = emb_ref.shape
    dh = E // H

    # ---- embedding lookup as exact one-hot matmul (MXU gather) + pos enc ----
    ids = tok_ref[...]                                              # (BS, 1) i32
    iota = jax.lax.broadcasted_iota(jnp.int32, (BS, V), 1)
    onehot = (iota == ids).astype(jnp.float32)                      # (BS, V)
    emb = jnp.dot(onehot, emb_ref[...],
                  preferred_element_type=jnp.float32)               # (BS, E)
    x = (emb.reshape(B, S, E) + pe_ref[0:S, :]).reshape(BS, E)      # f32

    for l in range(L):                                              # static, L=2
        xb = x.astype(jnp.bfloat16)                                 # (BS, E)

        # --- multi-head self-attention, no in-kernel head transposes ---
        attn = jnp.zeros((BS, E), jnp.float32)
        for h in range(H):                                          # static, H=4
            q = (jnp.dot(xb, wq_ref[l, h], preferred_element_type=jnp.float32)
                 + bq_ref[l, h]).astype(jnp.bfloat16).reshape(B, S, dh)
            k = (jnp.dot(xb, wk_ref[l, h], preferred_element_type=jnp.float32)
                 + bk_ref[l, h]).astype(jnp.bfloat16).reshape(B, S, dh)
            v = (jnp.dot(xb, wv_ref[l, h], preferred_element_type=jnp.float32)
                 + bv_ref[l, h]).astype(jnp.bfloat16).reshape(B, S, dh)

            # scale already folded into the Q weights/bias on the host
            s = jnp.einsum('bqd,bkd->bqk', q, k,
                           preferred_element_type=jnp.float32)      # (B, S, S)
            s = s - jnp.max(s, axis=-1, keepdims=True)
            p = jnp.exp(s)
            p = p * pl.reciprocal(jnp.sum(p, axis=-1, keepdims=True), approx=True)
            ctx = jnp.einsum('bqk,bkd->bqd', p.astype(jnp.bfloat16), v,
                             preferred_element_type=jnp.float32)    # (B, S, dh)

            # head-merge folded into per-head output projection
            attn = attn + jnp.dot(ctx.reshape(BS, dh).astype(jnp.bfloat16),
                                  wo_ref[l, h],
                                  preferred_element_type=jnp.float32)
        attn = attn + bo_ref[l]

        # residual + LayerNorm 1 (dropout == identity in eval mode)
        x1 = _layernorm(x + attn, g1_ref[l], be1_ref[l])

        # --- feed-forward (ReLU, PyTorch default) ---
        h1 = jnp.dot(x1.astype(jnp.bfloat16), w1_ref[l],
                     preferred_element_type=jnp.float32) + b1_ref[l]
        h1 = jnp.maximum(h1, 0.0)
        h2 = jnp.dot(h1.astype(jnp.bfloat16), w2_ref[l],
                     preferred_element_type=jnp.float32) + b2_ref[l]

        # residual + LayerNorm 2
        x = _layernorm(x1 + h2, g2_ref[l], be2_ref[l])

    # --- final vocab projection, stored directly as (B, S, V) ---
    logits = jnp.dot(x.astype(jnp.bfloat16), fcw_ref[...],
                     preferred_element_type=jnp.float32) + fcb_ref[...]   # (BS, V)
    o_ref[...] = logits.reshape(B, S, V).astype(o_ref.dtype)


def fused_forward(tokens, w, pos_table, *, num_heads, num_layers,
                  batch, seq_len, vocab_size):
    B, S, V = batch, seq_len, vocab_size
    E = w["emb"].shape[1]
    F = w["w1"].shape[-1]
    H, L = num_heads, num_layers
    BS = B * S

    tok = tokens.reshape(BS, 1).astype(jnp.int32)
    args = (tok, w["emb"], pos_table,
            w["wq"], w["bq"], w["wk"], w["bk"], w["wv"], w["bv"],
            w["wo"], w["bo"],
            w["w1"], w["b1"], w["w2"], w["b2"],
            w["g1"], w["be1"], w["g2"], w["be2"],
            w["fc_w"], w["fc_b"])

    # advisory cost estimate for the XLA scheduler around the custom call
    dh = E // H
    flops = 2 * BS * V * E                                  # one-hot gather
    flops += L * (2 * BS * E * (3 * E)                      # q/k/v projections
                  + 2 * B * H * S * S * dh * 2              # scores + ctx
                  + 2 * BS * E * E                          # out projection
                  + 2 * BS * E * F * 2)                     # FFN
    flops += 2 * BS * E * V                                 # fc_out
    transcendentals = L * B * H * S * S                     # softmax exp
    bytes_accessed = (sum(int(a.size) * a.dtype.itemsize for a in args)
                      + BS * V * 4)

    kernel = functools.partial(fused_forward_kernel, batch=B, seq_len=S,
                               num_heads=H, num_layers=L)
    return pl.pallas_call(
        kernel,
        out_shape=jax.ShapeDtypeStruct((B, S, V), jnp.float32),
        # no grid: single fused invocation, whole arrays resident in VMEM
        # (single-buffered by construction; no per-step pipeline overhead).
        compiler_params=pltpu.CompilerParams(vmem_limit_bytes=32 * 1024 * 1024),
        cost_estimate=pl.CostEstimate(flops=int(flops),
                                      transcendentals=int(transcendentals),
                                      bytes_accessed=int(bytes_accessed)),
    )(*args)


# ----------------------------------------------------------------------------
# Deterministic synthetic weights (PyTorch layout) + host-side preparation
# (transpose / per-head split / scale folding / bf16 cast -- done once)
# ----------------------------------------------------------------------------
def sinusoidal_positional_encoding(max_seq_len, embed_dim):
    position = jnp.arange(max_seq_len, dtype=jnp.float32)[:, None]
    div_term = jnp.exp(jnp.arange(0, embed_dim, 2, dtype=jnp.float32)
                       * (-math.log(10000.0) / embed_dim))
    pe = jnp.zeros((max_seq_len, embed_dim), jnp.float32)
    pe = pe.at[:, 0::2].set(jnp.sin(position * div_term))
    pe = pe.at[:, 1::2].set(jnp.cos(position * div_term))
    return pe                                                # (max_seq_len, E)


def init_params(key, vocab_size, embed_dim, num_layers, dim_feedforward):
    E, F = embed_dim, dim_feedforward
    keys = iter(jax.random.split(key, 64))

    def rnd(shape, scale=0.02):
        return (scale * jax.random.normal(next(keys), shape)).astype(jnp.float32)

    params = {
        "embedding": rnd((vocab_size, E), scale=1.0),
        "layers": [],
        "fc_w": rnd((vocab_size, E)),          # PyTorch layout (out, in)
        "fc_b": rnd((1, vocab_size)),
    }
    for _ in range(num_layers):
        params["layers"].append({
            "wqkv": rnd((3 * E, E)), "bqkv": rnd((1, 3 * E)),
            "wo":   rnd((E, E)),     "bo":   rnd((1, E)),
            "w1":   rnd((F, E)),     "b1":   rnd((1, F)),
            "w2":   rnd((E, F)),     "b2":   rnd((1, E)),
            "g1":   jnp.ones((1, E), jnp.float32),
            "be1":  jnp.zeros((1, E), jnp.float32),
            "g2":   jnp.ones((1, E), jnp.float32),
            "be2":  jnp.zeros((1, E), jnp.float32),
        })
    return params


def prepare_weights(params, num_heads):
    layers = params["layers"]
    E = params["embedding"].shape[1]
    H = num_heads
    dh = E // H
    q_scale = 1.0 / math.sqrt(dh)
    bf16 = jnp.bfloat16

    def split_heads_in(w_t, b):            # w_t: (E_in, E_out), b: (1, E_out)
        wh = w_t.reshape(E, H, dh).transpose(1, 0, 2)        # (H, E, dh)
        bh = b.reshape(1, H, dh).transpose(1, 0, 2)          # (H, 1, dh)
        return wh, bh

    wq, bq, wk, bk, wv, bv, wo, bo = [], [], [], [], [], [], [], []
    w1, b1, w2, b2 = [], [], [], []
    g1, be1, g2, be2 = [], [], [], []
    for lp in layers:
        wqkv_t = lp["wqkv"].T                                # (E_in, 3E_out)
        bqkv = lp["bqkv"]                                    # (1, 3E)
        # fold 1/sqrt(dh) into the Q projection (weights AND bias)
        wq_h, bq_h = split_heads_in(wqkv_t[:, 0:E] * q_scale,
                                    bqkv[:, 0:E] * q_scale)
        wk_h, bk_h = split_heads_in(wqkv_t[:, E:2 * E], bqkv[:, E:2 * E])
        wv_h, bv_h = split_heads_in(wqkv_t[:, 2 * E:3 * E], bqkv[:, 2 * E:3 * E])
        wq.append(wq_h); bq.append(bq_h)
        wk.append(wk_h); bk.append(bk_h)
        wv.append(wv_h); bv.append(bv_h)
        wo.append(lp["wo"].T.reshape(H, dh, E))              # (H, dh, E)
        bo.append(lp["bo"])
        w1.append(lp["w1"].T); b1.append(lp["b1"])
        w2.append(lp["w2"].T); b2.append(lp["b2"])
        g1.append(lp["g1"]); be1.append(lp["be1"])
        g2.append(lp["g2"]); be2.append(lp["be2"])

    st = lambda xs, dt=jnp.float32: jnp.stack(xs).astype(dt)
    return {
        "emb": params["embedding"].astype(jnp.float32),      # f32: exact gather
        "wq": st(wq, bf16), "bq": st(bq),
        "wk": st(wk, bf16), "bk": st(bk),
        "wv": st(wv, bf16), "bv": st(bv),
        "wo": st(wo, bf16), "bo": st(bo),
        "w1": st(w1, bf16), "b1": st(b1),
        "w2": st(w2, bf16), "b2": st(b2),
        "g1": st(g1), "be1": st(be1), "g2": st(g2), "be2": st(be2),
        "fc_w": params["fc_w"].T.astype(bf16),               # (E, V)
        "fc_b": params["fc_b"].astype(jnp.float32),          # (1, V)
    }


if __name__ == "__main__":
    VOCAB = 50
    EMBED_DIM = 32
    NUM_HEADS = 4
    NUM_LAYERS = 2
    DIM_FF = 64
    MAX_SEQ_LEN = 64
    BATCH = 2
    SEQ = 8

    key = jax.random.PRNGKey(0)
    k_params, k_tokens = jax.random.split(key)

    params = init_params(k_params, VOCAB, EMBED_DIM, NUM_LAYERS, DIM_FF)
    prepared = prepare_weights(params, NUM_HEADS)
    pos_table = sinusoidal_positional_encoding(MAX_SEQ_LEN, EMBED_DIM)
    tokens = jax.random.randint(k_tokens, (BATCH, SEQ), 0, VOCAB, dtype=jnp.int32)

    out = fused_forward(tokens, prepared, pos_table,
                        num_heads=NUM_HEADS, num_layers=NUM_LAYERS,
                        batch=BATCH, seq_len=SEQ, vocab_size=VOCAB)
    out = jax.block_until_ready(out)

    assert out.shape == (BATCH, SEQ, VOCAB), out.shape
    assert bool(jnp.all(jnp.isfinite(out)))
    print("KERNEL_OK")
</pallas_src>

<mosaic_0001>
module attributes {stable_mosaic.version = 11 : i64} {
  func.func @fused_forward_kernel(%arg0: memref<16x1xi32, #tpu.memory_space<vmem>>, %arg1: memref<50x32xf32, #tpu.memory_space<vmem>>, %arg2: memref<64x32xf32, #tpu.memory_space<vmem>>, %arg3: memref<2x4x32x8xbf16, #tpu.memory_space<vmem>>, %arg4: memref<2x4x1x8xf32, #tpu.memory_space<vmem>>, %arg5: memref<2x4x32x8xbf16, #tpu.memory_space<vmem>>, %arg6: memref<2x4x1x8xf32, #tpu.memory_space<vmem>>, %arg7: memref<2x4x32x8xbf16, #tpu.memory_space<vmem>>, %arg8: memref<2x4x1x8xf32, #tpu.memory_space<vmem>>, %arg9: memref<2x4x8x32xbf16, #tpu.memory_space<vmem>>, %arg10: memref<2x1x32xf32, #tpu.memory_space<vmem>>, %arg11: memref<2x32x64xbf16, #tpu.memory_space<vmem>>, %arg12: memref<2x1x64xf32, #tpu.memory_space<vmem>>, %arg13: memref<2x64x32xbf16, #tpu.memory_space<vmem>>, %arg14: memref<2x1x32xf32, #tpu.memory_space<vmem>>, %arg15: memref<2x1x32xf32, #tpu.memory_space<vmem>>, %arg16: memref<2x1x32xf32, #tpu.memory_space<vmem>>, %arg17: memref<2x1x32xf32, #tpu.memory_space<vmem>>, %arg18: memref<2x1x32xf32, #tpu.memory_space<vmem>>, %arg19: memref<32x50xbf16, #tpu.memory_space<vmem>>, %arg20: memref<1x50xf32, #tpu.memory_space<vmem>>, %arg21: memref<2x8x50xf32, #tpu.memory_space<vmem>>) attributes {dimension_semantics = [], scalar_prefetch = 0 : i64, scratch_operands = 0 : i64, tpu.core_type = #tpu.core_type<tc>} {
    %c0 = arith.constant 0 : index
    %c0_0 = arith.constant 0 : index
    %0 = vector.load %arg0[%c0, %c0_0] : memref<16x1xi32, #tpu.memory_space<vmem>>, vector<16x1xi32>
    %1 = tpu.iota {dimensions = array<i32: 1>} : vector<16x50xi32>
    %2 = vector.broadcast %0 : vector<16x1xi32> to vector<16x50xi32>
    %3 = arith.cmpi eq, %1, %2 : vector<16x50xi32>
    %4 = arith.extui %3 : vector<16x50xi1> to vector<16x50xi32>
    %5 = arith.sitofp %4 : vector<16x50xi32> to vector<16x50xf32>
    %c0_1 = arith.constant 0 : index
    %c0_2 = arith.constant 0 : index
    %6 = vector.load %arg1[%c0_1, %c0_2] : memref<50x32xf32, #tpu.memory_space<vmem>>, vector<50x32xf32>
    %cst = arith.constant dense<0.000000e+00> : vector<16x32xf32>
    %7 = tpu.matmul %5, %6, %cst {dimension_numbers = #tpu.dot_dimension_numbers<[1], [0], [0], [1], [0, 0, 1, 1], [], []>} : vector<16x50xf32>, vector<50x32xf32>, vector<16x32xf32> -> vector<16x32xf32>
    %8 = vector.shape_cast %7 : vector<16x32xf32> to vector<2x8x32xf32>
    %c0_3 = arith.constant 0 : index
    %c0_4 = arith.constant 0 : index
    %9 = vector.load %arg2[%c0_3, %c0_4] : memref<64x32xf32, #tpu.memory_space<vmem>>, vector<8x32xf32>
    %10 = vector.shape_cast %9 : vector<8x32xf32> to vector<1x8x32xf32>
    %11 = vector.broadcast %10 : vector<1x8x32xf32> to vector<2x8x32xf32>
    %12 = arith.addf %8, %11 : vector<2x8x32xf32>
    %13 = vector.shape_cast %12 : vector<2x8x32xf32> to vector<16x32xf32>
    %14 = arith.truncf %13 : vector<16x32xf32> to vector<16x32xbf16>
    %cst_5 = arith.constant 0.000000e+00 : f32
    %15 = vector.broadcast %cst_5 : f32 to vector<16x32xf32>
    %c0_6 = arith.constant 0 : index
    %c0_7 = arith.constant 0 : index
    %c0_8 = arith.constant 0 : index
    %c0_9 = arith.constant 0 : index
    %16 = vector.load %arg3[%c0_6, %c0_7, %c0_8, %c0_9] : memref<2x4x32x8xbf16, #tpu.memory_space<vmem>>, vector<1x1x32x8xbf16>
    %17 = vector.shape_cast %16 : vector<1x1x32x8xbf16> to vector<32x8xbf16>
    %cst_10 = arith.constant dense<0.000000e+00> : vector<16x8xf32>
    %18 = tpu.matmul %14, %17, %cst_10 {dimension_numbers = #tpu.dot_dimension_numbers<[1], [0], [0], [1], [0, 0, 1, 1], [], []>} : vector<16x32xbf16>, vector<32x8xbf16>, vector<16x8xf32> -> vector<16x8xf32>
    %c0_11 = arith.constant 0 : index
    %c0_12 = arith.constant 0 : index
    %c0_13 = arith.constant 0 : index
    %c0_14 = arith.constant 0 : index
    %19 = vector.load %arg4[%c0_11, %c0_12, %c0_13, %c0_14] : memref<2x4x1x8xf32, #tpu.memory_space<vmem>>, vector<1x1x1x8xf32>
    %20 = vector.shape_cast %19 : vector<1x1x1x8xf32> to vector<1x8xf32>
    %21 = vector.broadcast %20 : vector<1x8xf32> to vector<16x8xf32>
    %22 = arith.addf %18, %21 : vector<16x8xf32>
    %23 = arith.truncf %22 : vector<16x8xf32> to vector<16x8xbf16>
    %24 = vector.shape_cast %23 : vector<16x8xbf16> to vector<2x8x8xbf16>
    %c0_15 = arith.constant 0 : index
    %c0_16 = arith.constant 0 : index
    %c0_17 = arith.constant 0 : index
    %c0_18 = arith.constant 0 : index
    %25 = vector.load %arg5[%c0_15, %c0_16, %c0_17, %c0_18] : memref<2x4x32x8xbf16, #tpu.memory_space<vmem>>, vector<1x1x32x8xbf16>
    %26 = vector.shape_cast %25 : vector<1x1x32x8xbf16> to vector<32x8xbf16>
    %cst_19 = arith.constant dense<0.000000e+00> : vector<16x8xf32>
    %27 = tpu.matmul %14, %26, %cst_19 {dimension_numbers = #tpu.dot_dimension_numbers<[1], [0], [0], [1], [0, 0, 1, 1], [], []>} : vector<16x32xbf16>, vector<32x8xbf16>, vector<16x8xf32> -> vector<16x8xf32>
    %c0_20 = arith.constant 0 : index
    %c0_21 = arith.constant 0 : index
    %c0_22 = arith.constant 0 : index
    %c0_23 = arith.constant 0 : index
    %28 = vector.load %arg6[%c0_20, %c0_21, %c0_22, %c0_23] : memref<2x4x1x8xf32, #tpu.memory_space<vmem>>, vector<1x1x1x8xf32>
    %29 = vector.shape_cast %28 : vector<1x1x1x8xf32> to vector<1x8xf32>
    %30 = vector.broadcast %29 : vector<1x8xf32> to vector<16x8xf32>
    %31 = arith.addf %27, %30 : vector<16x8xf32>
    %32 = arith.truncf %31 : vector<16x8xf32> to vector<16x8xbf16>
    %33 = vector.shape_cast %32 : vector<16x8xbf16> to vector<2x8x8xbf16>
    %c0_24 = arith.constant 0 : index
    %c0_25 = arith.constant 0 : index
    %c0_26 = arith.constant 0 : index
    %c0_27 = arith.constant 0 : index
    %34 = vector.load %arg7[%c0_24, %c0_25, %c0_26, %c0_27] : memref<2x4x32x8xbf16, #tpu.memory_space<vmem>>, vector<1x1x32x8xbf16>
    %35 = vector.shape_cast %34 : vector<1x1x32x8xbf16> to vector<32x8xbf16>
    %cst_28 = arith.constant dense<0.000000e+00> : vector<16x8xf32>
    %36 = tpu.matmul %14, %35, %cst_28 {dimension_numbers = #tpu.dot_dimension_numbers<[1], [0], [0], [1], [0, 0, 1, 1], [], []>} : vector<16x32xbf16>, vector<32x8xbf16>, vector<16x8xf32> -> vector<16x8xf32>
    %c0_29 = arith.constant 0 : index
    %c0_30 = arith.constant 0 : index
    %c0_31 = arith.constant 0 : index
    %c0_32 = arith.constant 0 : index
    %37 = vector.load %arg8[%c0_29, %c0_30, %c0_31, %c0_32] : memref<2x4x1x8xf32, #tpu.memory_space<vmem>>, vector<1x1x1x8xf32>
    %38 = vector.shape_cast %37 : vector<1x1x1x8xf32> to vector<1x8xf32>
    %39 = vector.broadcast %38 : vector<1x8xf32> to vector<16x8xf32>
    %40 = arith.addf %36, %39 : vector<16x8xf32>
    %41 = arith.truncf %40 : vector<16x8xf32> to vector<16x8xbf16>
    %42 = vector.shape_cast %41 : vector<16x8xbf16> to vector<2x8x8xbf16>
    "tpu.trace_start"() <{level = 10 : i32, message = "bqd,bkd->bqk"}> : () -> ()
    %cst_33 = arith.constant dense<0.000000e+00> : vector<2x8x8xf32>
    %43 = tpu.matmul %24, %33, %cst_33 {dimension_numbers = #tpu.dot_dimension_numbers<[2], [2], [1], [1], [0, 0, 0, 1, 1, 1], [0], [0]>} : vector<2x8x8xbf16>, vector<2x8x8xbf16>, vector<2x8x8xf32> -> vector<2x8x8xf32>
    "tpu.trace_stop"() : () -> ()
    %cst_34 = arith.constant dense<0xFF800000> : vector<2x8xf32>
    %44 = vector.multi_reduction <maximumf>, %43, %cst_34 [2] : vector<2x8x8xf32> to vector<2x8xf32>
    %45 = vector.shape_cast %44 : vector<2x8xf32> to vector<2x8x1xf32>
    %46 = vector.broadcast %45 : vector<2x8x1xf32> to vector<2x8x8xf32>
    %47 = arith.subf %43, %46 : vector<2x8x8xf32>
    %48 = math.exp %47 : vector<2x8x8xf32>
    %cst_35 = arith.constant dense<0.000000e+00> : vector<2x8xf32>
    %49 = vector.multi_reduction <add>, %48, %cst_35 [2] : vector<2x8x8xf32> to vector<2x8xf32>
    %50 = vector.shape_cast %49 : vector<2x8xf32> to vector<2x8x1xf32>
    %51 = tpu.reciprocal %50 {approx = true} : vector<2x8x1xf32> -> vector<2x8x1xf32>
    %52 = vector.broadcast %51 : vector<2x8x1xf32> to vector<2x8x8xf32>
    %53 = arith.mulf %48, %52 : vector<2x8x8xf32>
    %54 = arith.truncf %53 : vector<2x8x8xf32> to vector<2x8x8xbf16>
    "tpu.trace_start"() <{level = 10 : i32, message = "bqk,bkd->bqd"}> : () -> ()
    %cst_36 = arith.constant dense<0.000000e+00> : vector<2x8x8xf32>
    %55 = tpu.matmul %54, %42, %cst_36 {dimension_numbers = #tpu.dot_dimension_numbers<[2], [1], [1], [2], [0, 0, 0, 1, 1, 2], [0], [0]>} : vector<2x8x8xbf16>, vector<2x8x8xbf16>, vector<2x8x8xf32> -> vector<2x8x8xf32>
    "tpu.trace_stop"() : () -> ()
    %56 = vector.shape_cast %55 : vector<2x8x8xf32> to vector<16x8xf32>
    %57 = arith.truncf %56 : vector<16x8xf32> to vector<16x8xbf16>
    %c0_37 = arith.constant 0 : index
    %c0_38 = arith.constant 0 : index
    %c0_39 = arith.constant 0 : index
    %c0_40 = arith.constant 0 : index
    %58 = vector.load %arg9[%c0_37, %c0_38, %c0_39, %c0_40] : memref<2x4x8x32xbf16, #tpu.memory_space<vmem>>, vector<1x1x8x32xbf16>
    %59 = vector.shape_cast %58 : vector<1x1x8x32xbf16> to vector<8x32xbf16>
    %cst_41 = arith.constant dense<0.000000e+00> : vector<16x32xf32>
    %60 = tpu.matmul %57, %59, %cst_41 {dimension_numbers = #tpu.dot_dimension_numbers<[1], [0], [0], [1], [0, 0, 1, 1], [], []>} : vector<16x8xbf16>, vector<8x32xbf16>, vector<16x32xf32> -> vector<16x32xf32>
    %61 = arith.addf %15, %60 : vector<16x32xf32>
    %c0_42 = arith.constant 0 : index
    %c1 = arith.constant 1 : index
    %c0_43 = arith.constant 0 : index
    %c0_44 = arith.constant 0 : index
    %62 = vector.load %arg3[%c0_42, %c1, %c0_43, %c0_44] : memref<2x4x32x8xbf16, #tpu.memory_space<vmem>>, vector<1x1x32x8xbf16>
    %63 = vector.shape_cast %62 : vector<1x1x32x8xbf16> to vector<32x8xbf16>
    %cst_45 = arith.constant dense<0.000000e+00> : vector<16x8xf32>
    %64 = tpu.matmul %14, %63, %cst_45 {dimension_numbers = #tpu.dot_dimension_numbers<[1], [0], [0], [1], [0, 0, 1, 1], [], []>} : vector<16x32xbf16>, vector<32x8xbf16>, vector<16x8xf32> -> vector<16x8xf32>
    %c0_46 = arith.constant 0 : index
    %c1_47 = arith.constant 1 : index
    %c0_48 = arith.constant 0 : index
    %c0_49 = arith.constant 0 : index
    %65 = vector.load %arg4[%c0_46, %c1_47, %c0_48, %c0_49] : memref<2x4x1x8xf32, #tpu.memory_space<vmem>>, vector<1x1x1x8xf32>
    %66 = vector.shape_cast %65 : vector<1x1x1x8xf32> to vector<1x8xf32>
    %67 = vector.broadcast %66 : vector<1x8xf32> to vector<16x8xf32>
    %68 = arith.addf %64, %67 : vector<16x8xf32>
    %69 = arith.truncf %68 : vector<16x8xf32> to vector<16x8xbf16>
    %70 = vector.shape_cast %69 : vector<16x8xbf16> to vector<2x8x8xbf16>
    %c0_50 = arith.constant 0 : index
    %c1_51 = arith.constant 1 : index
    %c0_52 = arith.constant 0 : index
    %c0_53 = arith.constant 0 : index
    %71 = vector.load %arg5[%c0_50, %c1_51, %c0_52, %c0_53] : memref<2x4x32x8xbf16, #tpu.memory_space<vmem>>, vector<1x1x32x8xbf16>
    %72 = vector.shape_cast %71 : vector<1x1x32x8xbf16> to vector<32x8xbf16>
    %cst_54 = arith.constant dense<0.000000e+00> : vector<16x8xf32>
    %73 = tpu.matmul %14, %72, %cst_54 {dimension_numbers = #tpu.dot_dimension_numbers<[1], [0], [0], [1], [0, 0, 1, 1], [], []>} : vector<16x32xbf16>, vector<32x8xbf16>, vector<16x8xf32> -> vector<16x8xf32>
    %c0_55 = arith.constant 0 : index
    %c1_56 = arith.constant 1 : index
    %c0_57 = arith.constant 0 : index
    %c0_58 = arith.constant 0 : index
    %74 = vector.load %arg6[%c0_55, %c1_56, %c0_57, %c0_58] : memref<2x4x1x8xf32, #tpu.memory_space<vmem>>, vector<1x1x1x8xf32>
    %75 = vector.shape_cast %74 : vector<1x1x1x8xf32> to vector<1x8xf32>
    %76 = vector.broadcast %75 : vector<1x8xf32> to vector<16x8xf32>
    %77 = arith.addf %73, %76 : vector<16x8xf32>
    %78 = arith.truncf %77 : vector<16x8xf32> to vector<16x8xbf16>
    %79 = vector.shape_cast %78 : vector<16x8xbf16> to vector<2x8x8xbf16>
    %c0_59 = arith.constant 0 : index
    %c1_60 = arith.constant 1 : index
    %c0_61 = arith.constant 0 : index
    %c0_62 = arith.constant 0 : index
    %80 = vector.load %arg7[%c0_59, %c1_60, %c0_61, %c0_62] : memref<2x4x32x8xbf16, #tpu.memory_space<vmem>>, vector<1x1x32x8xbf16>
    %81 = vector.shape_cast %80 : vector<1x1x32x8xbf16> to vector<32x8xbf16>
    %cst_63 = arith.constant dense<0.000000e+00> : vector<16x8xf32>
    %82 = tpu.matmul %14, %81, %cst_63 {dimension_numbers = #tpu.dot_dimension_numbers<[1], [0], [0], [1], [0, 0, 1, 1], [], []>} : vector<16x32xbf16>, vector<32x8xbf16>, vector<16x8xf32> -> vector<16x8xf32>
    %c0_64 = arith.constant 0 : index
    %c1_65 = arith.constant 1 : index
    %c0_66 = arith.constant 0 : index
    %c0_67 = arith.constant 0 : index
    %83 = vector.load %arg8[%c0_64, %c1_65, %c0_66, %c0_67] : memref<2x4x1x8xf32, #tpu.memory_space<vmem>>, vector<1x1x1x8xf32>
    %84 = vector.shape_cast %83 : vector<1x1x1x8xf32> to vector<1x8xf32>
    %85 = vector.broadcast %84 : vector<1x8xf32> to vector<16x8xf32>
    %86 = arith.addf %82, %85 : vector<16x8xf32>
    %87 = arith.truncf %86 : vector<16x8xf32> to vector<16x8xbf16>
    %88 = vector.shape_cast %87 : vector<16x8xbf16> to vector<2x8x8xbf16>
    "tpu.trace_start"() <{level = 10 : i32, message = "bqd,bkd->bqk"}> : () -> ()
    %cst_68 = arith.constant dense<0.000000e+00> : vector<2x8x8xf32>
    %89 = tpu.matmul %70, %79, %cst_68 {dimension_numbers = #tpu.dot_dimension_numbers<[2], [2], [1], [1], [0, 0, 0, 1, 1, 1], [0], [0]>} : vector<2x8x8xbf16>, vector<2x8x8xbf16>, vector<2x8x8xf32> -> vector<2x8x8xf32>
    "tpu.trace_stop"() : () -> ()
    %cst_69 = arith.constant dense<0xFF800000> : vector<2x8xf32>
    %90 = vector.multi_reduction <maximumf>, %89, %cst_69 [2] : vector<2x8x8xf32> to vector<2x8xf32>
    %91 = vector.shape_cast %90 : vector<2x8xf32> to vector<2x8x1xf32>
    %92 = vector.broadcast %91 : vector<2x8x1xf32> to vector<2x8x8xf32>
    %93 = arith.subf %89, %92 : vector<2x8x8xf32>
    %94 = math.exp %93 : vector<2x8x8xf32>
    %cst_70 = arith.constant dense<0.000000e+00> : vector<2x8xf32>
    %95 = vector.multi_reduction <add>, %94, %cst_70 [2] : vector<2x8x8xf32> to vector<2x8xf32>
    %96 = vector.shape_cast %95 : vector<2x8xf32> to vector<2x8x1xf32>
    %97 = tpu.reciprocal %96 {approx = true} : vector<2x8x1xf32> -> vector<2x8x1xf32>
    %98 = vector.broadcast %97 : vector<2x8x1xf32> to vector<2x8x8xf32>
    %99 = arith.mulf %94, %98 : vector<2x8x8xf32>
    %100 = arith.truncf %99 : vector<2x8x8xf32> to vector<2x8x8xbf16>
    "tpu.trace_start"() <{level = 10 : i32, message = "bqk,bkd->bqd"}> : () -> ()
    %cst_71 = arith.constant dense<0.000000e+00> : vector<2x8x8xf32>
    %101 = tpu.matmul %100, %88, %cst_71 {dimension_numbers = #tpu.dot_dimension_numbers<[2], [1], [1], [2], [0, 0, 0, 1, 1, 2], [0], [0]>} : vector<2x8x8xbf16>, vector<2x8x8xbf16>, vector<2x8x8xf32> -> vector<2x8x8xf32>
    "tpu.trace_stop"() : () -> ()
    %102 = vector.shape_cast %101 : vector<2x8x8xf32> to vector<16x8xf32>
    %103 = arith.truncf %102 : vector<16x8xf32> to vector<16x8xbf16>
    %c0_72 = arith.constant 0 : index
    %c1_73 = arith.constant 1 : index
    %c0_74 = arith.constant 0 : index
    %c0_75 = arith.constant 0 : index
    %104 = vector.load %arg9[%c0_72, %c1_73, %c0_74, %c0_75] : memref<2x4x8x32xbf16, #tpu.memory_space<vmem>>, vector<1x1x8x32xbf16>
    %105 = vector.shape_cast %104 : vector<1x1x8x32xbf16> to vector<8x32xbf16>
    %cst_76 = arith.constant dense<0.000000e+00> : vector<16x32xf32>
    %106 = tpu.matmul %103, %105, %cst_76 {dimension_numbers = #tpu.dot_dimension_numbers<[1], [0], [0], [1], [0, 0, 1, 1], [], []>} : vector<16x8xbf16>, vector<8x32xbf16>, vector<16x32xf32> -> vector<16x32xf32>
    %107 = arith.addf %61, %106 : vector<16x32xf32>
    %c0_77 = arith.constant 0 : index
    %c2 = arith.constant 2 : index
    %c0_78 = arith.constant 0 : index
    %c0_79 = arith.constant 0 : index
    %108 = vector.load %arg3[%c0_77, %c2, %c0_78, %c0_79] : memref<2x4x32x8xbf16, #tpu.memory_space<vmem>>, vector<1x1x32x8xbf16>
    %109 = vector.shape_cast %108 : vector<1x1x32x8xbf16> to vector<32x8xbf16>
    %cst_80 = arith.constant dense<0.000000e+00> : vector<16x8xf32>
    %110 = tpu.matmul %14, %109, %cst_80 {dimension_numbers = #tpu.dot_dimension_numbers<[1], [0], [0], [1], [0, 0, 1, 1], [], []>} : vector<16x32xbf16>, vector<32x8xbf16>, vector<16x8xf32> -> vector<16x8xf32>
    %c0_81 = arith.constant 0 : index
    %c2_82 = arith.constant 2 : index
    %c0_83 = arith.constant 0 : index
    %c0_84 = arith.constant 0 : index
    %111 = vector.load %arg4[%c0_81, %c2_82, %c0_83, %c0_84] : memref<2x4x1x8xf32, #tpu.memory_space<vmem>>, vector<1x1x1x8xf32>
    %112 = vector.shape_cast %111 : vector<1x1x1x8xf32> to vector<1x8xf32>
    %113 = vector.broadcast %112 : vector<1x8xf32> to vector<16x8xf32>
    %114 = arith.addf %110, %113 : vector<16x8xf32>
    %115 = arith.truncf %114 : vector<16x8xf32> to vector<16x8xbf16>
    %116 = vector.shape_cast %115 : vector<16x8xbf16> to vector<2x8x8xbf16>
    %c0_85 = arith.constant 0 : index
    %c2_86 = arith.constant 2 : index
    %c0_87 = arith.constant 0 : index
    %c0_88 = arith.constant 0 : index
    %117 = vector.load %arg5[%c0_85, %c2_86, %c0_87, %c0_88] : memref<2x4x32x8xbf16, #tpu.memory_space<vmem>>, vector<1x1x32x8xbf16>
    %118 = vector.shape_cast %117 : vector<1x1x32x8xbf16> to vector<32x8xbf16>
    %cst_89 = arith.constant dense<0.000000e+00> : vector<16x8xf32>
    %119 = tpu.matmul %14, %118, %cst_89 {dimension_numbers = #tpu.dot_dimension_numbers<[1], [0], [0], [1], [0, 0, 1, 1], [], []>} : vector<16x32xbf16>, vector<32x8xbf16>, vector<16x8xf32> -> vector<16x8xf32>
    %c0_90 = arith.constant 0 : index
    %c2_91 = arith.constant 2 : index
    %c0_92 = arith.constant 0 : index
    %c0_93 = arith.constant 0 : index
    %120 = vector.load %arg6[%c0_90, %c2_91, %c0_92, %c0_93] : memref<2x4x1x8xf32, #tpu.memory_space<vmem>>, vector<1x1x1x8xf32>
    %121 = vector.shape_cast %120 : vector<1x1x1x8xf32> to vector<1x8xf32>
    %122 = vector.broadcast %121 : vector<1x8xf32> to vector<16x8xf32>
    %123 = arith.addf %119, %122 : vector<16x8xf32>
    %124 = arith.truncf %123 : vector<16x8xf32> to vector<16x8xbf16>
    %125 = vector.shape_cast %124 : vector<16x8xbf16> to vector<2x8x8xbf16>
    %c0_94 = arith.constant 0 : index
    %c2_95 = arith.constant 2 : index
    %c0_96 = arith.constant 0 : index
    %c0_97 = arith.constant 0 : index
    %126 = vector.load %arg7[%c0_94, %c2_95, %c0_96, %c0_97] : memref<2x4x32x8xbf16, #tpu.memory_space<vmem>>, vector<1x1x32x8xbf16>
    %127 = vector.shape_cast %126 : vector<1x1x32x8xbf16> to vector<32x8xbf16>
    %cst_98 = arith.constant dense<0.000000e+00> : vector<16x8xf32>
    %128 = tpu.matmul %14, %127, %cst_98 {dimension_numbers = #tpu.dot_dimension_numbers<[1], [0], [0], [1], [0, 0, 1, 1], [], []>} : vector<16x32xbf16>, vector<32x8xbf16>, vector<16x8xf32> -> vector<16x8xf32>
    %c0_99 = arith.constant 0 : index
    %c2_100 = arith.constant 2 : index
    %c0_101 = arith.constant 0 : index
    %c0_102 = arith.constant 0 : index
    %129 = vector.load %arg8[%c0_99, %c2_100, %c0_101, %c0_102] : memref<2x4x1x8xf32, #tpu.memory_space<vmem>>, vector<1x1x1x8xf32>
    %130 = vector.shape_cast %129 : vector<1x1x1x8xf32> to vector<1x8xf32>
    %131 = vector.broadcast %130 : vector<1x8xf32> to vector<16x8xf32>
    %132 = arith.addf %128, %131 : vector<16x8xf32>
    %133 = arith.truncf %132 : vector<16x8xf32> to vector<16x8xbf16>
    %134 = vector.shape_cast %133 : vector<16x8xbf16> to vector<2x8x8xbf16>
    "tpu.trace_start"() <{level = 10 : i32, message = "bqd,bkd->bqk"}> : () -> ()
    %cst_103 = arith.constant dense<0.000000e+00> : vector<2x8x8xf32>
    %135 = tpu.matmul %116, %125, %cst_103 {dimension_numbers = #tpu.dot_dimension_numbers<[2], [2], [1], [1], [0, 0, 0, 1, 1, 1], [0], [0]>} : vector<2x8x8xbf16>, vector<2x8x8xbf16>, vector<2x8x8xf32> -> vector<2x8x8xf32>
    "tpu.trace_stop"() : () -> ()
    %cst_104 = arith.constant dense<0xFF800000> : vector<2x8xf32>
    %136 = vector.multi_reduction <maximumf>, %135, %cst_104 [2] : vector<2x8x8xf32> to vector<2x8xf32>
    %137 = vector.shape_cast %136 : vector<2x8xf32> to vector<2x8x1xf32>
    %138 = vector.broadcast %137 : vector<2x8x1xf32> to vector<2x8x8xf32>
    %139 = arith.subf %135, %138 : vector<2x8x8xf32>
    %140 = math.exp %139 : vector<2x8x8xf32>
    %cst_105 = arith.constant dense<0.000000e+00> : vector<2x8xf32>
    %141 = vector.multi_reduction <add>, %140, %cst_105 [2] : vector<2x8x8xf32> to vector<2x8xf32>
    %142 = vector.shape_cast %141 : vector<2x8xf32> to vector<2x8x1xf32>
    %143 = tpu.reciprocal %142 {approx = true} : vector<2x8x1xf32> -> vector<2x8x1xf32>
    %144 = vector.broadcast %143 : vector<2x8x1xf32> to vector<2x8x8xf32>
    %145 = arith.mulf %140, %144 : vector<2x8x8xf32>
    %146 = arith.truncf %145 : vector<2x8x8xf32> to vector<2x8x8xbf16>
    "tpu.trace_start"() <{level = 10 : i32, message = "bqk,bkd->bqd"}> : () -> ()
    %cst_106 = arith.constant dense<0.000000e+00> : vector<2x8x8xf32>
    %147 = tpu.matmul %146, %134, %cst_106 {dimension_numbers = #tpu.dot_dimension_numbers<[2], [1], [1], [2], [0, 0, 0, 1, 1, 2], [0], [0]>} : vector<2x8x8xbf16>, vector<2x8x8xbf16>, vector<2x8x8xf32> -> vector<2x8x8xf32>
    "tpu.trace_stop"() : () -> ()
    %148 = vector.shape_cast %147 : vector<2x8x8xf32> to vector<16x8xf32>
    %149 = arith.truncf %148 : vector<16x8xf32> to vector<16x8xbf16>
    %c0_107 = arith.constant 0 : index
    %c2_108 = arith.constant 2 : index
    %c0_109 = arith.constant 0 : index
    %c0_110 = arith.constant 0 : index
    %150 = vector.load %arg9[%c0_107, %c2_108, %c0_109, %c0_110] : memref<2x4x8x32xbf16, #tpu.memory_space<vmem>>, vector<1x1x8x32xbf16>
    %151 = vector.shape_cast %150 : vector<1x1x8x32xbf16> to vector<8x32xbf16>
    %cst_111 = arith.constant dense<0.000000e+00> : vector<16x32xf32>
    %152 = tpu.matmul %149, %151, %cst_111 {dimension_numbers = #tpu.dot_dimension_numbers<[1], [0], [0], [1], [0, 0, 1, 1], [], []>} : vector<16x8xbf16>, vector<8x32xbf16>, vector<16x32xf32> -> vector<16x32xf32>
    %153 = arith.addf %107, %152 : vector<16x32xf32>
    %c0_112 = arith.constant 0 : index
    %c3 = arith.constant 3 : index
    %c0_113 = arith.constant 0 : index
    %c0_114 = arith.constant 0 : index
    %154 = vector.load %arg3[%c0_112, %c3, %c0_113, %c0_114] : memref<2x4x32x8xbf16, #tpu.memory_space<vmem>>, vector<1x1x32x8xbf16>
    %155 = vector.shape_cast %154 : vector<1x1x32x8xbf16> to vector<32x8xbf16>
    %cst_115 = arith.constant dense<0.000000e+00> : vector<16x8xf32>
    %156 = tpu.matmul %14, %155, %cst_115 {dimension_numbers = #tpu.dot_dimension_numbers<[1], [0], [0], [1], [0, 0, 1, 1], [], []>} : vector<16x32xbf16>, vector<32x8xbf16>, vector<16x8xf32> -> vector<16x8xf32>
    %c0_116 = arith.constant 0 : index
    %c3_117 = arith.constant 3 : index
    %c0_118 = arith.constant 0 : index
    %c0_119 = arith.constant 0 : index
    %157 = vector.load %arg4[%c0_116, %c3_117, %c0_118, %c0_119] : memref<2x4x1x8xf32, #tpu.memory_space<vmem>>, vector<1x1x1x8xf32>
    %158 = vector.shape_cast %157 : vector<1x1x1x8xf32> to vector<1x8xf32>
    %159 = vector.broadcast %158 : vector<1x8xf32> to vector<16x8xf32>
    %160 = arith.addf %156, %159 : vector<16x8xf32>
    %161 = arith.truncf %160 : vector<16x8xf32> to vector<16x8xbf16>
    %162 = vector.shape_cast %161 : vector<16x8xbf16> to vector<2x8x8xbf16>
    %c0_120 = arith.constant 0 : index
    %c3_121 = arith.constant 3 : index
    %c0_122 = arith.constant 0 : index
    %c0_123 = arith.constant 0 : index
    %163 = vector.load %arg5[%c0_120, %c3_121, %c0_122, %c0_123] : memref<2x4x32x8xbf16, #tpu.memory_space<vmem>>, vector<1x1x32x8xbf16>
    %164 = vector.shape_cast %163 : vector<1x1x32x8xbf16> to vector<32x8xbf16>
    %cst_124 = arith.constant dense<0.000000e+00> : vector<16x8xf32>
    %165 = tpu.matmul %14, %164, %cst_124 {dimension_numbers = #tpu.dot_dimension_numbers<[1], [0], [0], [1], [0, 0, 1, 1], [], []>} : vector<16x32xbf16>, vector<32x8xbf16>, vector<16x8xf32> -> vector<16x8xf32>
    %c0_125 = arith.constant 0 : index
    %c3_126 = arith.constant 3 : index
    %c0_127 = arith.constant 0 : index
    %c0_128 = arith.constant 0 : index
    %166 = vector.load %arg6[%c0_125, %c3_126, %c0_127, %c0_128] : memref<2x4x1x8xf32, #tpu.memory_space<vmem>>, vector<1x1x1x8xf32>
    %167 = vector.shape_cast %166 : vector<1x1x1x8xf32> to vector<1x8xf32>
    %168 = vector.broadcast %167 : vector<1x8xf32> to vector<16x8xf32>
    %169 = arith.addf %165, %168 : vector<16x8xf32>
    %170 = arith.truncf %169 : vector<16x8xf32> to vector<16x8xbf16>
    %171 = vector.shape_cast %170 : vector<16x8xbf16> to vector<2x8x8xbf16>
    %c0_129 = arith.constant 0 : index
    %c3_130 = arith.constant 3 : index
    %c0_131 = arith.constant 0 : index
    %c0_132 = arith.constant 0 : index
    %172 = vector.load %arg7[%c0_129, %c3_130, %c0_131, %c0_132] : memref<2x4x32x8xbf16, #tpu.memory_space<vmem>>, vector<1x1x32x8xbf16>
    %173 = vector.shape_cast %172 : vector<1x1x32x8xbf16> to vector<32x8xbf16>
    %cst_133 = arith.constant dense<0.000000e+00> : vector<16x8xf32>
    %174 = tpu.matmul %14, %173, %cst_133 {dimension_numbers = #tpu.dot_dimension_numbers<[1], [0], [0], [1], [0, 0, 1, 1], [], []>} : vector<16x32xbf16>, vector<32x8xbf16>, vector<16x8xf32> -> vector<16x8xf32>
    %c0_134 = arith.constant 0 : index
    %c3_135 = arith.constant 3 : index
    %c0_136 = arith.constant 0 : index
    %c0_137 = arith.constant 0 : index
    %175 = vector.load %arg8[%c0_134, %c3_135, %c0_136, %c0_137] : memref<2x4x1x8xf32, #tpu.memory_space<vmem>>, vector<1x1x1x8xf32>
    %176 = vector.shape_cast %175 : vector<1x1x1x8xf32> to vector<1x8xf32>
    %177 = vector.broadcast %176 : vector<1x8xf32> to vector<16x8xf32>
    %178 = arith.addf %174, %177 : vector<16x8xf32>
    %179 = arith.truncf %178 : vector<16x8xf32> to vector<16x8xbf16>
    %180 = vector.shape_cast %179 : vector<16x8xbf16> to vector<2x8x8xbf16>
    "tpu.trace_start"() <{level = 10 : i32, message = "bqd,bkd->bqk"}> : () -> ()
    %cst_138 = arith.constant dense<0.000000e+00> : vector<2x8x8xf32>
    %181 = tpu.matmul %162, %171, %cst_138 {dimension_numbers = #tpu.dot_dimension_numbers<[2], [2], [1], [1], [0, 0, 0, 1, 1, 1], [0], [0]>} : vector<2x8x8xbf16>, vector<2x8x8xbf16>, vector<2x8x8xf32> -> vector<2x8x8xf32>
    "tpu.trace_stop"() : () -> ()
    %cst_139 = arith.constant dense<0xFF800000> : vector<2x8xf32>
    %182 = vector.multi_reduction <maximumf>, %181, %cst_139 [2] : vector<2x8x8xf32> to vector<2x8xf32>
    %183 = vector.shape_cast %182 : vector<2x8xf32> to vector<2x8x1xf32>
    %184 = vector.broadcast %183 : vector<2x8x1xf32> to vector<2x8x8xf32>
    %185 = arith.subf %181, %184 : vector<2x8x8xf32>
    %186 = math.exp %185 : vector<2x8x8xf32>
    %cst_140 = arith.constant dense<0.000000e+00> : vector<2x8xf32>
    %187 = vector.multi_reduction <add>, %186, %cst_140 [2] : vector<2x8x8xf32> to vector<2x8xf32>
    %188 = vector.shape_cast %187 : vector<2x8xf32> to vector<2x8x1xf32>
    %189 = tpu.reciprocal %188 {approx = true} : vector<2x8x1xf32> -> vector<2x8x1xf32>
    %190 = vector.broadcast %189 : vector<2x8x1xf32> to vector<2x8x8xf32>
    %191 = arith.mulf %186, %190 : vector<2x8x8xf32>
    %192 = arith.truncf %191 : vector<2x8x8xf32> to vector<2x8x8xbf16>
    "tpu.trace_start"() <{level = 10 : i32, message = "bqk,bkd->bqd"}> : () -> ()
    %cst_141 = arith.constant dense<0.000000e+00> : vector<2x8x8xf32>
    %193 = tpu.matmul %192, %180, %cst_141 {dimension_numbers = #tpu.dot_dimension_numbers<[2], [1], [1], [2], [0, 0, 0, 1, 1, 2], [0], [0]>} : vector<2x8x8xbf16>, vector<2x8x8xbf16>, vector<2x8x8xf32> -> vector<2x8x8xf32>
    "tpu.trace_stop"() : () -> ()
    %194 = vector.shape_cast %193 : vector<2x8x8xf32> to vector<16x8xf32>
    %195 = arith.truncf %194 : vector<16x8xf32> to vector<16x8xbf16>
    %c0_142 = arith.constant 0 : index
    %c3_143 = arith.constant 3 : index
    %c0_144 = arith.constant 0 : index
    %c0_145 = arith.constant 0 : index
    %196 = vector.load %arg9[%c0_142, %c3_143, %c0_144, %c0_145] : memref<2x4x8x32xbf16, #tpu.memory_space<vmem>>, vector<1x1x8x32xbf16>
    %197 = vector.shape_cast %196 : vector<1x1x8x32xbf16> to vector<8x32xbf16>
    %cst_146 = arith.constant dense<0.000000e+00> : vector<16x32xf32>
    %198 = tpu.matmul %195, %197, %cst_146 {dimension_numbers = #tpu.dot_dimension_numbers<[1], [0], [0], [1], [0, 0, 1, 1], [], []>} : vector<16x8xbf16>, vector<8x32xbf16>, vector<16x32xf32> -> vector<16x32xf32>
    %199 = arith.addf %153, %198 : vector<16x32xf32>
    %c0_147 = arith.constant 0 : index
    %c0_148 = arith.constant 0 : index
    %c0_149 = arith.constant 0 : index
    %200 = vector.load %arg10[%c0_147, %c0_148, %c0_149] : memref<2x1x32xf32, #tpu.memory_space<vmem>>, vector<1x1x32xf32>
    %201 = vector.shape_cast %200 : vector<1x1x32xf32> to vector<1x32xf32>
    %202 = vector.broadcast %201 : vector<1x32xf32> to vector<16x32xf32>
    %203 = arith.addf %199, %202 : vector<16x32xf32>
    %204 = arith.addf %13, %203 : vector<16x32xf32>
    %c0_150 = arith.constant 0 : index
    %c0_151 = arith.constant 0 : index
    %c0_152 = arith.constant 0 : index
    %205 = vector.load %arg15[%c0_150, %c0_151, %c0_152] : memref<2x1x32xf32, #tpu.memory_space<vmem>>, vector<1x1x32xf32>
    %206 = vector.shape_cast %205 : vector<1x1x32xf32> to vector<1x32xf32>
    %c0_153 = arith.constant 0 : index
    %c0_154 = arith.constant 0 : index
    %c0_155 = arith.constant 0 : index
    %207 = vector.load %arg16[%c0_153, %c0_154, %c0_155] : memref<2x1x32xf32, #tpu.memory_space<vmem>>, vector<1x1x32xf32>
    %208 = vector.shape_cast %207 : vector<1x1x32xf32> to vector<1x32xf32>
    %cst_156 = arith.constant dense<0.000000e+00> : vector<16xf32>
    %209 = vector.multi_reduction <add>, %204, %cst_156 [1] : vector<16x32xf32> to vector<16xf32>
    %210 = vector.shape_cast %209 : vector<16xf32> to vector<16x1xf32>
    %cst_157 = arith.constant 3.200000e+01 : f32
    %211 = vector.broadcast %cst_157 : f32 to vector<16x1xf32>
    %212 = arith.divf %210, %211 : vector<16x1xf32>
    %213 = vector.broadcast %212 : vector<16x1xf32> to vector<16x32xf32>
    %214 = arith.subf %204, %213 : vector<16x32xf32>
    %215 = arith.mulf %214, %214 : vector<16x32xf32>
    %cst_158 = arith.constant dense<0.000000e+00> : vector<16xf32>
    %216 = vector.multi_reduction <add>, %215, %cst_158 [1] : vector<16x32xf32> to vector<16xf32>
    %217 = vector.shape_cast %216 : vector<16xf32> to vector<16x1xf32>
    %cst_159 = arith.constant 3.200000e+01 : f32
    %218 = vector.broadcast %cst_159 : f32 to vector<16x1xf32>
    %219 = arith.divf %217, %218 : vector<16x1xf32>
    %220 = vector.broadcast %212 : vector<16x1xf32> to vector<16x32xf32>
    %221 = arith.subf %204, %220 : vector<16x32xf32>
    %cst_160 = arith.constant 9.99999974E-6 : f32
    %222 = vector.broadcast %cst_160 : f32 to vector<16x1xf32>
    %223 = arith.addf %219, %222 : vector<16x1xf32>
    %224 = math.rsqrt %223 : vector<16x1xf32>
    %225 = vector.broadcast %224 : vector<16x1xf32> to vector<16x32xf32>
    %226 = arith.mulf %221, %225 : vector<16x32xf32>
    %227 = vector.broadcast %206 : vector<1x32xf32> to vector<16x32xf32>
    %228 = arith.mulf %226, %227 : vector<16x32xf32>
    %229 = vector.broadcast %208 : vector<1x32xf32> to vector<16x32xf32>
    %230 = arith.addf %228, %229 : vector<16x32xf32>
    %231 = arith.truncf %230 : vector<16x32xf32> to vector<16x32xbf16>
    %c0_161 = arith.constant 0 : index
    %c0_162 = arith.constant 0 : index
    %c0_163 = arith.constant 0 : index
    %232 = vector.load %arg11[%c0_161, %c0_162, %c0_163] : memref<2x32x64xbf16, #tpu.memory_space<vmem>>, vector<1x32x64xbf16>
    %233 = vector.shape_cast %232 : vector<1x32x64xbf16> to vector<32x64xbf16>
    %cst_164 = arith.constant dense<0.000000e+00> : vector<16x64xf32>
    %234 = tpu.matmul %231, %233, %cst_164 {dimension_numbers = #tpu.dot_dimension_numbers<[1], [0], [0], [1], [0, 0, 1, 1], [], []>} : vector<16x32xbf16>, vector<32x64xbf16>, vector<16x64xf32> -> vector<16x64xf32>
    %c0_165 = arith.constant 0 : index
    %c0_166 = arith.constant 0 : index
    %c0_167 = arith.constant 0 : index
    %235 = vector.load %arg12[%c0_165, %c0_166, %c0_167] : memref<2x1x64xf32, #tpu.memory_space<vmem>>, vector<1x1x64xf32>
    %236 = vector.shape_cast %235 : vector<1x1x64xf32> to vector<1x64xf32>
    %237 = vector.broadcast %236 : vector<1x64xf32> to vector<16x64xf32>
    %238 = arith.addf %234, %237 : vector<16x64xf32>
    %cst_168 = arith.constant 0.000000e+00 : f32
    %239 = vector.broadcast %cst_168 : f32 to vector<16x64xf32>
    %240 = arith.maximumf %238, %239 : vector<16x64xf32>
    %241 = arith.truncf %240 : vector<16x64xf32> to vector<16x64xbf16>
    %c0_169 = arith.constant 0 : index
    %c0_170 = arith.constant 0 : index
    %c0_171 = arith.constant 0 : index
    %242 = vector.load %arg13[%c0_169, %c0_170, %c0_171] : memref<2x64x32xbf16, #tpu.memory_space<vmem>>, vector<1x64x32xbf16>
    %243 = vector.shape_cast %242 : vector<1x64x32xbf16> to vector<64x32xbf16>
    %cst_172 = arith.constant dense<0.000000e+00> : vector<16x32xf32>
    %244 = tpu.matmul %241, %243, %cst_172 {dimension_numbers = #tpu.dot_dimension_numbers<[1], [0], [0], [1], [0, 0, 1, 1], [], []>} : vector<16x64xbf16>, vector<64x32xbf16>, vector<16x32xf32> -> vector<16x32xf32>
    %c0_173 = arith.constant 0 : index
    %c0_174 = arith.constant 0 : index
    %c0_175 = arith.constant 0 : index
    %245 = vector.load %arg14[%c0_173, %c0_174, %c0_175] : memref<2x1x32xf32, #tpu.memory_space<vmem>>, vector<1x1x32xf32>
    %246 = vector.shape_cast %245 : vector<1x1x32xf32> to vector<1x32xf32>
    %247 = vector.broadcast %246 : vector<1x32xf32> to vector<16x32xf32>
    %248 = arith.addf %244, %247 : vector<16x32xf32>
    %249 = arith.addf %230, %248 : vector<16x32xf32>
    %c0_176 = arith.constant 0 : index
    %c0_177 = arith.constant 0 : index
    %c0_178 = arith.constant 0 : index
    %250 = vector.load %arg17[%c0_176, %c0_177, %c0_178] : memref<2x1x32xf32, #tpu.memory_space<vmem>>, vector<1x1x32xf32>
    %251 = vector.shape_cast %250 : vector<1x1x32xf32> to vector<1x32xf32>
    %c0_179 = arith.constant 0 : index
    %c0_180 = arith.constant 0 : index
    %c0_181 = arith.constant 0 : index
    %252 = vector.load %arg18[%c0_179, %c0_180, %c0_181] : memref<2x1x32xf32, #tpu.memory_space<vmem>>, vector<1x1x32xf32>
    %253 = vector.shape_cast %252 : vector<1x1x32xf32> to vector<1x32xf32>
    %cst_182 = arith.constant dense<0.000000e+00> : vector<16xf32>
    %254 = vector.multi_reduction <add>, %249, %cst_182 [1] : vector<16x32xf32> to vector<16xf32>
    %255 = vector.shape_cast %254 : vector<16xf32> to vector<16x1xf32>
    %cst_183 = arith.constant 3.200000e+01 : f32
    %256 = vector.broadcast %cst_183 : f32 to vector<16x1xf32>
    %257 = arith.divf %255, %256 : vector<16x1xf32>
    %258 = vector.broadcast %257 : vector<16x1xf32> to vector<16x32xf32>
    %259 = arith.subf %249, %258 : vector<16x32xf32>
    %260 = arith.mulf %259, %259 : vector<16x32xf32>
    %cst_184 = arith.constant dense<0.000000e+00> : vector<16xf32>
    %261 = vector.multi_reduction <add>, %260, %cst_184 [1] : vector<16x32xf32> to vector<16xf32>
    %262 = vector.shape_cast %261 : vector<16xf32> to vector<16x1xf32>
    %cst_185 = arith.constant 3.200000e+01 : f32
    %263 = vector.broadcast %cst_185 : f32 to vector<16x1xf32>
    %264 = arith.divf %262, %263 : vector<16x1xf32>
    %265 = vector.broadcast %257 : vector<16x1xf32> to vector<16x32xf32>
    %266 = arith.subf %249, %265 : vector<16x32xf32>
    %cst_186 = arith.constant 9.99999974E-6 : f32
    %267 = vector.broadcast %cst_186 : f32 to vector<16x1xf32>
    %268 = arith.addf %264, %267 : vector<16x1xf32>
    %269 = math.rsqrt %268 : vector<16x1xf32>
    %270 = vector.broadcast %269 : vector<16x1xf32> to vector<16x32xf32>
    %271 = arith.mulf %266, %270 : vector<16x32xf32>
    %272 = vector.broadcast %251 : vector<1x32xf32> to vector<16x32xf32>
    %273 = arith.mulf %271, %272 : vector<16x32xf32>
    %274 = vector.broadcast %253 : vector<1x32xf32> to vector<16x32xf32>
    %275 = arith.addf %273, %274 : vector<16x32xf32>
    %276 = arith.truncf %275 : vector<16x32xf32> to vector<16x32xbf16>
    %cst_187 = arith.constant 0.000000e+00 : f32
    %277 = vector.broadcast %cst_187 : f32 to vector<16x32xf32>
    %c1_188 = arith.constant 1 : index
    %c0_189 = arith.constant 0 : index
    %c0_190 = arith.constant 0 : index
    %c0_191 = arith.constant 0 : index
    %278 = vector.load %arg3[%c1_188, %c0_189, %c0_190, %c0_191] : memref<2x4x32x8xbf16, #tpu.memory_space<vmem>>, vector<1x1x32x8xbf16>
    %279 = vector.shape_cast %278 : vector<1x1x32x8xbf16> to vector<32x8xbf16>
    %cst_192 = arith.constant dense<0.000000e+00> : vector<16x8xf32>
    %280 = tpu.matmul %276, %279, %cst_192 {dimension_numbers = #tpu.dot_dimension_numbers<[1], [0], [0], [1], [0, 0, 1, 1], [], []>} : vector<16x32xbf16>, vector<32x8xbf16>, vector<16x8xf32> -> vector<16x8xf32>
    %c1_193 = arith.constant 1 : index
    %c0_194 = arith.constant 0 : index
    %c0_195 = arith.constant 0 : index
    %c0_196 = arith.constant 0 : index
    %281 = vector.load %arg4[%c1_193, %c0_194, %c0_195, %c0_196] : memref<2x4x1x8xf32, #tpu.memory_space<vmem>>, vector<1x1x1x8xf32>
    %282 = vector.shape_cast %281 : vector<1x1x1x8xf32> to vector<1x8xf32>
    %283 = vector.broadcast %282 : vector<1x8xf32> to vector<16x8xf32>
    %284 = arith.addf %280, %283 : vector<16x8xf32>
    %285 = arith.truncf %284 : vector<16x8xf32> to vector<16x8xbf16>
    %286 = vector.shape_cast %285 : vector<16x8xbf16> to vector<2x8x8xbf16>
    %c1_197 = arith.constant 1 : index
    %c0_198 = arith.constant 0 : index
    %c0_199 = arith.constant 0 : index
    %c0_200 = arith.constant 0 : index
    %287 = vector.load %arg5[%c1_197, %c0_198, %c0_199, %c0_200] : memref<2x4x32x8xbf16, #tpu.memory_space<vmem>>, vector<1x1x32x8xbf16>
    %288 = vector.shape_cast %287 : vector<1x1x32x8xbf16> to vector<32x8xbf16>
    %cst_201 = arith.constant dense<0.000000e+00> : vector<16x8xf32>
    %289 = tpu.matmul %276, %288, %cst_201 {dimension_numbers = #tpu.dot_dimension_numbers<[1], [0], [0], [1], [0, 0, 1, 1], [], []>} : vector<16x32xbf16>, vector<32x8xbf16>, vector<16x8xf32> -> vector<16x8xf32>
    %c1_202 = arith.constant 1 : index
    %c0_203 = arith.constant 0 : index
    %c0_204 = arith.constant 0 : index
    %c0_205 = arith.constant 0 : index
    %290 = vector.load %arg6[%c1_202, %c0_203, %c0_204, %c0_205] : memref<2x4x1x8xf32, #tpu.memory_space<vmem>>, vector<1x1x1x8xf32>
    %291 = vector.shape_cast %290 : vector<1x1x1x8xf32> to vector<1x8xf32>
    %292 = vector.broadcast %291 : vector<1x8xf32> to vector<16x8xf32>
    %293 = arith.addf %289, %292 : vector<16x8xf32>
    %294 = arith.truncf %293 : vector<16x8xf32> to vector<16x8xbf16>
    %295 = vector.shape_cast %294 : vector<16x8xbf16> to vector<2x8x8xbf16>
    %c1_206 = arith.constant 1 : index
    %c0_207 = arith.constant 0 : index
    %c0_208 = arith.constant 0 : index
    %c0_209 = arith.constant 0 : index
    %296 = vector.load %arg7[%c1_206, %c0_207, %c0_208, %c0_209] : memref<2x4x32x8xbf16, #tpu.memory_space<vmem>>, vector<1x1x32x8xbf16>
    %297 = vector.shape_cast %296 : vector<1x1x32x8xbf16> to vector<32x8xbf16>
    %cst_210 = arith.constant dense<0.000000e+00> : vector<16x8xf32>
    %298 = tpu.matmul %276, %297, %cst_210 {dimension_numbers = #tpu.dot_dimension_numbers<[1], [0], [0], [1], [0, 0, 1, 1], [], []>} : vector<16x32xbf16>, vector<32x8xbf16>, vector<16x8xf32> -> vector<16x8xf32>
    %c1_211 = arith.constant 1 : index
    %c0_212 = arith.constant 0 : index
    %c0_213 = arith.constant 0 : index
    %c0_214 = arith.constant 0 : index
    %299 = vector.load %arg8[%c1_211, %c0_212, %c0_213, %c0_214] : memref<2x4x1x8xf32, #tpu.memory_space<vmem>>, vector<1x1x1x8xf32>
    %300 = vector.shape_cast %299 : vector<1x1x1x8xf32> to vector<1x8xf32>
    %301 = vector.broadcast %300 : vector<1x8xf32> to vector<16x8xf32>
    %302 = arith.addf %298, %301 : vector<16x8xf32>
    %303 = arith.truncf %302 : vector<16x8xf32> to vector<16x8xbf16>
    %304 = vector.shape_cast %303 : vector<16x8xbf16> to vector<2x8x8xbf16>
    "tpu.trace_start"() <{level = 10 : i32, message = "bqd,bkd->bqk"}> : () -> ()
    %cst_215 = arith.constant dense<0.000000e+00> : vector<2x8x8xf32>
    %305 = tpu.matmul %286, %295, %cst_215 {dimension_numbers = #tpu.dot_dimension_numbers<[2], [2], [1], [1], [0, 0, 0, 1, 1, 1], [0], [0]>} : vector<2x8x8xbf16>, vector<2x8x8xbf16>, vector<2x8x8xf32> -> vector<2x8x8xf32>
    "tpu.trace_stop"() : () -> ()
    %cst_216 = arith.constant dense<0xFF800000> : vector<2x8xf32>
    %306 = vector.multi_reduction <maximumf>, %305, %cst_216 [2] : vector<2x8x8xf32> to vector<2x8xf32>
    %307 = vector.shape_cast %306 : vector<2x8xf32> to vector<2x8x1xf32>
    %308 = vector.broadcast %307 : vector<2x8x1xf32> to vector<2x8x8xf32>
    %309 = arith.subf %305, %308 : vector<2x8x8xf32>
    %310 = math.exp %309 : vector<2x8x8xf32>
    %cst_217 = arith.constant dense<0.000000e+00> : vector<2x8xf32>
    %311 = vector.multi_reduction <add>, %310, %cst_217 [2] : vector<2x8x8xf32> to vector<2x8xf32>
    %312 = vector.shape_cast %311 : vector<2x8xf32> to vector<2x8x1xf32>
    %313 = tpu.reciprocal %312 {approx = true} : vector<2x8x1xf32> -> vector<2x8x1xf32>
    %314 = vector.broadcast %313 : vector<2x8x1xf32> to vector<2x8x8xf32>
    %315 = arith.mulf %310, %314 : vector<2x8x8xf32>
    %316 = arith.truncf %315 : vector<2x8x8xf32> to vector<2x8x8xbf16>
    "tpu.trace_start"() <{level = 10 : i32, message = "bqk,bkd->bqd"}> : () -> ()
    %cst_218 = arith.constant dense<0.000000e+00> : vector<2x8x8xf32>
    %317 = tpu.matmul %316, %304, %cst_218 {dimension_numbers = #tpu.dot_dimension_numbers<[2], [1], [1], [2], [0, 0, 0, 1, 1, 2], [0], [0]>} : vector<2x8x8xbf16>, vector<2x8x8xbf16>, vector<2x8x8xf32> -> vector<2x8x8xf32>
    "tpu.trace_stop"() : () -> ()
    %318 = vector.shape_cast %317 : vector<2x8x8xf32> to vector<16x8xf32>
    %319 = arith.truncf %318 : vector<16x8xf32> to vector<16x8xbf16>
    %c1_219 = arith.constant 1 : index
    %c0_220 = arith.constant 0 : index
    %c0_221 = arith.constant 0 : index
    %c0_222 = arith.constant 0 : index
    %320 = vector.load %arg9[%c1_219, %c0_220, %c0_221, %c0_222] : memref<2x4x8x32xbf16, #tpu.memory_space<vmem>>, vector<1x1x8x32xbf16>
    %321 = vector.shape_cast %320 : vector<1x1x8x32xbf16> to vector<8x32xbf16>
    %cst_223 = arith.constant dense<0.000000e+00> : vector<16x32xf32>
    %322 = tpu.matmul %319, %321, %cst_223 {dimension_numbers = #tpu.dot_dimension_numbers<[1], [0], [0], [1], [0, 0, 1, 1], [], []>} : vector<16x8xbf16>, vector<8x32xbf16>, vector<16x32xf32> -> vector<16x32xf32>
    %323 = arith.addf %277, %322 : vector<16x32xf32>
    %c1_224 = arith.constant 1 : index
    %c1_225 = arith.constant 1 : index
    %c0_226 = arith.constant 0 : index
    %c0_227 = arith.constant 0 : index
    %324 = vector.load %arg3[%c1_224, %c1_225, %c0_226, %c0_227] : memref<2x4x32x8xbf16, #tpu.memory_space<vmem>>, vector<1x1x32x8xbf16>
    %325 = vector.shape_cast %324 : vector<1x1x32x8xbf16> to vector<32x8xbf16>
    %cst_228 = arith.constant dense<0.000000e+00> : vector<16x8xf32>
    %326 = tpu.matmul %276, %325, %cst_228 {dimension_numbers = #tpu.dot_dimension_numbers<[1], [0], [0], [1], [0, 0, 1, 1], [], []>} : vector<16x32xbf16>, vector<32x8xbf16>, vector<16x8xf32> -> vector<16x8xf32>
    %c1_229 = arith.constant 1 : index
    %c1_230 = arith.constant 1 : index
    %c0_231 = arith.constant 0 : index
    %c0_232 = arith.constant 0 : index
    %327 = vector.load %arg4[%c1_229, %c1_230, %c0_231, %c0_232] : memref<2x4x1x8xf32, #tpu.memory_space<vmem>>, vector<1x1x1x8xf32>
    %328 = vector.shape_cast %327 : vector<1x1x1x8xf32> to vector<1x8xf32>
    %329 = vector.broadcast %328 : vector<1x8xf32> to vector<16x8xf32>
    %330 = arith.addf %326, %329 : vector<16x8xf32>
    %331 = arith.truncf %330 : vector<16x8xf32> to vector<16x8xbf16>
    %332 = vector.shape_cast %331 : vector<16x8xbf16> to vector<2x8x8xbf16>
    %c1_233 = arith.constant 1 : index
    %c1_234 = arith.constant 1 : index
    %c0_235 = arith.constant 0 : index
    %c0_236 = arith.constant 0 : index
    %333 = vector.load %arg5[%c1_233, %c1_234, %c0_235, %c0_236] : memref<2x4x32x8xbf16, #tpu.memory_space<vmem>>, vector<1x1x32x8xbf16>
    %334 = vector.shape_cast %333 : vector<1x1x32x8xbf16> to vector<32x8xbf16>
    %cst_237 = arith.constant dense<0.000000e+00> : vector<16x8xf32>
    %335 = tpu.matmul %276, %334, %cst_237 {dimension_numbers = #tpu.dot_dimension_numbers<[1], [0], [0], [1], [0, 0, 1, 1], [], []>} : vector<16x32xbf16>, vector<32x8xbf16>, vector<16x8xf32> -> vector<16x8xf32>
    %c1_238 = arith.constant 1 : index
    %c1_239 = arith.constant 1 : index
    %c0_240 = arith.constant 0 : index
    %c0_241 = arith.constant 0 : index
    %336 = vector.load %arg6[%c1_238, %c1_239, %c0_240, %c0_241] : memref<2x4x1x8xf32, #tpu.memory_space<vmem>>, vector<1x1x1x8xf32>
    %337 = vector.shape_cast %336 : vector<1x1x1x8xf32> to vector<1x8xf32>
    %338 = vector.broadcast %337 : vector<1x8xf32> to vector<16x8xf32>
    %339 = arith.addf %335, %338 : vector<16x8xf32>
    %340 = arith.truncf %339 : vector<16x8xf32> to vector<16x8xbf16>
    %341 = vector.shape_cast %340 : vector<16x8xbf16> to vector<2x8x8xbf16>
    %c1_242 = arith.constant 1 : index
    %c1_243 = arith.constant 1 : index
    %c0_244 = arith.constant 0 : index
    %c0_245 = arith.constant 0 : index
    %342 = vector.load %arg7[%c1_242, %c1_243, %c0_244, %c0_245] : memref<2x4x32x8xbf16, #tpu.memory_space<vmem>>, vector<1x1x32x8xbf16>
    %343 = vector.shape_cast %342 : vector<1x1x32x8xbf16> to vector<32x8xbf16>
    %cst_246 = arith.constant dense<0.000000e+00> : vector<16x8xf32>
    %344 = tpu.matmul %276, %343, %cst_246 {dimension_numbers = #tpu.dot_dimension_numbers<[1], [0], [0], [1], [0, 0, 1, 1], [], []>} : vector<16x32xbf16>, vector<32x8xbf16>, vector<16x8xf32> -> vector<16x8xf32>
    %c1_247 = arith.constant 1 : index
    %c1_248 = arith.constant 1 : index
    %c0_249 = arith.constant 0 : index
    %c0_250 = arith.constant 0 : index
    %345 = vector.load %arg8[%c1_247, %c1_248, %c0_249, %c0_250] : memref<2x4x1x8xf32, #tpu.memory_space<vmem>>, vector<1x1x1x8xf32>
    %346 = vector.shape_cast %345 : vector<1x1x1x8xf32> to vector<1x8xf32>
    %347 = vector.broadcast %346 : vector<1x8xf32> to vector<16x8xf32>
    %348 = arith.addf %344, %347 : vector<16x8xf32>
    %349 = arith.truncf %348 : vector<16x8xf32> to vector<16x8xbf16>
    %350 = vector.shape_cast %349 : vector<16x8xbf16> to vector<2x8x8xbf16>
    "tpu.trace_start"() <{level = 10 : i32, message = "bqd,bkd->bqk"}> : () -> ()
    %cst_251 = arith.constant dense<0.000000e+00> : vector<2x8x8xf32>
    %351 = tpu.matmul %332, %341, %cst_251 {dimension_numbers = #tpu.dot_dimension_numbers<[2], [2], [1], [1], [0, 0, 0, 1, 1, 1], [0], [0]>} : vector<2x8x8xbf16>, vector<2x8x8xbf16>, vector<2x8x8xf32> -> vector<2x8x8xf32>
    "tpu.trace_stop"() : () -> ()
    %cst_252 = arith.constant dense<0xFF800000> : vector<2x8xf32>
    %352 = vector.multi_reduction <maximumf>, %351, %cst_252 [2] : vector<2x8x8xf32> to vector<2x8xf32>
    %353 = vector.shape_cast %352 : vector<2x8xf32> to vector<2x8x1xf32>
    %354 = vector.broadcast %353 : vector<2x8x1xf32> to vector<2x8x8xf32>
    %355 = arith.subf %351, %354 : vector<2x8x8xf32>
    %356 = math.exp %355 : vector<2x8x8xf32>
    %cst_253 = arith.constant dense<0.000000e+00> : vector<2x8xf32>
    %357 = vector.multi_reduction <add>, %356, %cst_253 [2] : vector<2x8x8xf32> to vector<2x8xf32>
    %358 = vector.shape_cast %357 : vector<2x8xf32> to vector<2x8x1xf32>
    %359 = tpu.reciprocal %358 {approx = true} : vector<2x8x1xf32> -> vector<2x8x1xf32>
    %360 = vector.broadcast %359 : vector<2x8x1xf32> to vector<2x8x8xf32>
    %361 = arith.mulf %356, %360 : vector<2x8x8xf32>
    %362 = arith.truncf %361 : vector<2x8x8xf32> to vector<2x8x8xbf16>
    "tpu.trace_start"() <{level = 10 : i32, message = "bqk,bkd->bqd"}> : () -> ()
    %cst_254 = arith.constant dense<0.000000e+00> : vector<2x8x8xf32>
    %363 = tpu.matmul %362, %350, %cst_254 {dimension_numbers = #tpu.dot_dimension_numbers<[2], [1], [1], [2], [0, 0, 0, 1, 1, 2], [0], [0]>} : vector<2x8x8xbf16>, vector<2x8x8xbf16>, vector<2x8x8xf32> -> vector<2x8x8xf32>
    "tpu.trace_stop"() : () -> ()
    %364 = vector.shape_cast %363 : vector<2x8x8xf32> to vector<16x8xf32>
    %365 = arith.truncf %364 : vector<16x8xf32> to vector<16x8xbf16>
    %c1_255 = arith.constant 1 : index
    %c1_256 = arith.constant 1 : index
    %c0_257 = arith.constant 0 : index
    %c0_258 = arith.constant 0 : index
    %366 = vector.load %arg9[%c1_255, %c1_256, %c0_257, %c0_258] : memref<2x4x8x32xbf16, #tpu.memory_space<vmem>>, vector<1x1x8x32xbf16>
    %367 = vector.shape_cast %366 : vector<1x1x8x32xbf16> to vector<8x32xbf16>
    %cst_259 = arith.constant dense<0.000000e+00> : vector<16x32xf32>
    %368 = tpu.matmul %365, %367, %cst_259 {dimension_numbers = #tpu.dot_dimension_numbers<[1], [0], [0], [1], [0, 0, 1, 1], [], []>} : vector<16x8xbf16>, vector<8x32xbf16>, vector<16x32xf32> -> vector<16x32xf32>
    %369 = arith.addf %323, %368 : vector<16x32xf32>
    %c1_260 = arith.constant 1 : index
    %c2_261 = arith.constant 2 : index
    %c0_262 = arith.constant 0 : index
    %c0_263 = arith.constant 0 : index
    %370 = vector.load %arg3[%c1_260, %c2_261, %c0_262, %c0_263] : memref<2x4x32x8xbf16, #tpu.memory_space<vmem>>, vector<1x1x32x8xbf16>
    %371 = vector.shape_cast %370 : vector<1x1x32x8xbf16> to vector<32x8xbf16>
    %cst_264 = arith.constant dense<0.000000e+00> : vector<16x8xf32>
    %372 = tpu.matmul %276, %371, %cst_264 {dimension_numbers = #tpu.dot_dimension_numbers<[1], [0], [0], [1], [0, 0, 1, 1], [], []>} : vector<16x32xbf16>, vector<32x8xbf16>, vector<16x8xf32> -> vector<16x8xf32>
    %c1_265 = arith.constant 1 : index
    %c2_266 = arith.constant 2 : index
    %c0_267 = arith.constant 0 : index
    %c0_268 = arith.constant 0 : index
    %373 = vector.load %arg4[%c1_265, %c2_266, %c0_267, %c0_268] : memref<2x4x1x8xf32, #tpu.memory_space<vmem>>, vector<1x1x1x8xf32>
    %374 = vector.shape_cast %373 : vector<1x1x1x8xf32> to vector<1x8xf32>
    %375 = vector.broadcast %374 : vector<1x8xf32> to vector<16x8xf32>
    %376 = arith.addf %372, %375 : vector<16x8xf32>
    %377 = arith.truncf %376 : vector<16x8xf32> to vector<16x8xbf16>
    %378 = vector.shape_cast %377 : vector<16x8xbf16> to vector<2x8x8xbf16>
    %c1_269 = arith.constant 1 : index
    %c2_270 = arith.constant 2 : index
    %c0_271 = arith.constant 0 : index
    %c0_272 = arith.constant 0 : index
    %379 = vector.load %arg5[%c1_269, %c2_270, %c0_271, %c0_272] : memref<2x4x32x8xbf16, #tpu.memory_space<vmem>>, vector<1x1x32x8xbf16>
    %380 = vector.shape_cast %379 : vector<1x1x32x8xbf16> to vector<32x8xbf16>
    %cst_273 = arith.constant dense<0.000000e+00> : vector<16x8xf32>
    %381 = tpu.matmul %276, %380, %cst_273 {dimension_numbers = #tpu.dot_dimension_numbers<[1], [0], [0], [1], [0, 0, 1, 1], [], []>} : vector<16x32xbf16>, vector<32x8xbf16>, vector<16x8xf32> -> vector<16x8xf32>
    %c1_274 = arith.constant 1 : index
    %c2_275 = arith.constant 2 : index
    %c0_276 = arith.constant 0 : index
    %c0_277 = arith.constant 0 : index
    %382 = vector.load %arg6[%c1_274, %c2_275, %c0_276, %c0_277] : memref<2x4x1x8xf32, #tpu.memory_space<vmem>>, vector<1x1x1x8xf32>
    %383 = vector.shape_cast %382 : vector<1x1x1x8xf32> to vector<1x8xf32>
    %384 = vector.broadcast %383 : vector<1x8xf32> to vector<16x8xf32>
    %385 = arith.addf %381, %384 : vector<16x8xf32>
    %386 = arith.truncf %385 : vector<16x8xf32> to vector<16x8xbf16>
    %387 = vector.shape_cast %386 : vector<16x8xbf16> to vector<2x8x8xbf16>
    %c1_278 = arith.constant 1 : index
    %c2_279 = arith.constant 2 : index
    %c0_280 = arith.constant 0 : index
    %c0_281 = arith.constant 0 : index
    %388 = vector.load %arg7[%c1_278, %c2_279, %c0_280, %c0_281] : memref<2x4x32x8xbf16, #tpu.memory_space<vmem>>, vector<1x1x32x8xbf16>
    %389 = vector.shape_cast %388 : vector<1x1x32x8xbf16> to vector<32x8xbf16>
    %cst_282 = arith.constant dense<0.000000e+00> : vector<16x8xf32>
    %390 = tpu.matmul %276, %389, %cst_282 {dimension_numbers = #tpu.dot_dimension_numbers<[1], [0], [0], [1], [0, 0, 1, 1], [], []>} : vector<16x32xbf16>, vector<32x8xbf16>, vector<16x8xf32> -> vector<16x8xf32>
    %c1_283 = arith.constant 1 : index
    %c2_284 = arith.constant 2 : index
    %c0_285 = arith.constant 0 : index
    %c0_286 = arith.constant 0 : index
    %391 = vector.load %arg8[%c1_283, %c2_284, %c0_285, %c0_286] : memref<2x4x1x8xf32, #tpu.memory_space<vmem>>, vector<1x1x1x8xf32>
    %392 = vector.shape_cast %391 : vector<1x1x1x8xf32> to vector<1x8xf32>
    %393 = vector.broadcast %392 : vector<1x8xf32> to vector<16x8xf32>
    %394 = arith.addf %390, %393 : vector<16x8xf32>
    %395 = arith.truncf %394 : vector<16x8xf32> to vector<16x8xbf16>
    %396 = vector.shape_cast %395 : vector<16x8xbf16> to vector<2x8x8xbf16>
    "tpu.trace_start"() <{level = 10 : i32, message = "bqd,bkd->bqk"}> : () -> ()
    %cst_287 = arith.constant dense<0.000000e+00> : vector<2x8x8xf32>
    %397 = tpu.matmul %378, %387, %cst_287 {dimension_numbers = #tpu.dot_dimension_numbers<[2], [2], [1], [1], [0, 0, 0, 1, 1, 1], [0], [0]>} : vector<2x8x8xbf16>, vector<2x8x8xbf16>, vector<2x8x8xf32> -> vector<2x8x8xf32>
    "tpu.trace_stop"() : () -> ()
    %cst_288 = arith.constant dense<0xFF800000> : vector<2x8xf32>
    %398 = vector.multi_reduction <maximumf>, %397, %cst_288 [2] : vector<2x8x8xf32> to vector<2x8xf32>
    %399 = vector.shape_cast %398 : vector<2x8xf32> to vector<2x8x1xf32>
    %400 = vector.broadcast %399 : vector<2x8x1xf32> to vector<2x8x8xf32>
    %401 = arith.subf %397, %400 : vector<2x8x8xf32>
    %402 = math.exp %401 : vector<2x8x8xf32>
    %cst_289 = arith.constant dense<0.000000e+00> : vector<2x8xf32>
    %403 = vector.multi_reduction <add>, %402, %cst_289 [2] : vector<2x8x8xf32> to vector<2x8xf32>
    %404 = vector.shape_cast %403 : vector<2x8xf32> to vector<2x8x1xf32>
    %405 = tpu.reciprocal %404 {approx = true} : vector<2x8x1xf32> -> vector<2x8x1xf32>
    %406 = vector.broadcast %405 : vector<2x8x1xf32> to vector<2x8x8xf32>
    %407 = arith.mulf %402, %406 : vector<2x8x8xf32>
    %408 = arith.truncf %407 : vector<2x8x8xf32> to vector<2x8x8xbf16>
    "tpu.trace_start"() <{level = 10 : i32, message = "bqk,bkd->bqd"}> : () -> ()
    %cst_290 = arith.constant dense<0.000000e+00> : vector<2x8x8xf32>
    %409 = tpu.matmul %408, %396, %cst_290 {dimension_numbers = #tpu.dot_dimension_numbers<[2], [1], [1], [2], [0, 0, 0, 1, 1, 2], [0], [0]>} : vector<2x8x8xbf16>, vector<2x8x8xbf16>, vector<2x8x8xf32> -> vector<2x8x8xf32>
    "tpu.trace_stop"() : () -> ()
    %410 = vector.shape_cast %409 : vector<2x8x8xf32> to vector<16x8xf32>
    %411 = arith.truncf %410 : vector<16x8xf32> to vector<16x8xbf16>
    %c1_291 = arith.constant 1 : index
    %c2_292 = arith.constant 2 : index
    %c0_293 = arith.constant 0 : index
    %c0_294 = arith.constant 0 : index
    %412 = vector.load %arg9[%c1_291, %c2_292, %c0_293, %c0_294] : memref<2x4x8x32xbf16, #tpu.memory_space<vmem>>, vector<1x1x8x32xbf16>
    %413 = vector.shape_cast %412 : vector<1x1x8x32xbf16> to vector<8x32xbf16>
    %cst_295 = arith.constant dense<0.000000e+00> : vector<16x32xf32>
    %414 = tpu.matmul %411, %413, %cst_295 {dimension_numbers = #tpu.dot_dimension_numbers<[1], [0], [0], [1], [0, 0, 1, 1], [], []>} : vector<16x8xbf16>, vector<8x32xbf16>, vector<16x32xf32> -> vector<16x32xf32>
    %415 = arith.addf %369, %414 : vector<16x32xf32>
    %c1_296 = arith.constant 1 : index
    %c3_297 = arith.constant 3 : index
    %c0_298 = arith.constant 0 : index
    %c0_299 = arith.constant 0 : index
    %416 = vector.load %arg3[%c1_296, %c3_297, %c0_298, %c0_299] : memref<2x4x32x8xbf16, #tpu.memory_space<vmem>>, vector<1x1x32x8xbf16>
    %417 = vector.shape_cast %416 : vector<1x1x32x8xbf16> to vector<32x8xbf16>
    %cst_300 = arith.constant dense<0.000000e+00> : vector<16x8xf32>
    %418 = tpu.matmul %276, %417, %cst_300 {dimension_numbers = #tpu.dot_dimension_numbers<[1], [0], [0], [1], [0, 0, 1, 1], [], []>} : vector<16x32xbf16>, vector<32x8xbf16>, vector<16x8xf32> -> vector<16x8xf32>
    %c1_301 = arith.constant 1 : index
    %c3_302 = arith.constant 3 : index
    %c0_303 = arith.constant 0 : index
    %c0_304 = arith.constant 0 : index
    %419 = vector.load %arg4[%c1_301, %c3_302, %c0_303, %c0_304] : memref<2x4x1x8xf32, #tpu.memory_space<vmem>>, vector<1x1x1x8xf32>
    %420 = vector.shape_cast %419 : vector<1x1x1x8xf32> to vector<1x8xf32>
    %421 = vector.broadcast %420 : vector<1x8xf32> to vector<16x8xf32>
    %422 = arith.addf %418, %421 : vector<16x8xf32>
    %423 = arith.truncf %422 : vector<16x8xf32> to vector<16x8xbf16>
    %424 = vector.shape_cast %423 : vector<16x8xbf16> to vector<2x8x8xbf16>
    %c1_305 = arith.constant 1 : index
    %c3_306 = arith.constant 3 : index
    %c0_307 = arith.constant 0 : index
    %c0_308 = arith.constant 0 : index
    %425 = vector.load %arg5[%c1_305, %c3_306, %c0_307, %c0_308] : memref<2x4x32x8xbf16, #tpu.memory_space<vmem>>, vector<1x1x32x8xbf16>
    %426 = vector.shape_cast %425 : vector<1x1x32x8xbf16> to vector<32x8xbf16>
    %cst_309 = arith.constant dense<0.000000e+00> : vector<16x8xf32>
    %427 = tpu.matmul %276, %426, %cst_309 {dimension_numbers = #tpu.dot_dimension_numbers<[1], [0], [0], [1], [0, 0, 1, 1], [], []>} : vector<16x32xbf16>, vector<32x8xbf16>, vector<16x8xf32> -> vector<16x8xf32>
    %c1_310 = arith.constant 1 : index
    %c3_311 = arith.constant 3 : index
    %c0_312 = arith.constant 0 : index
    %c0_313 = arith.constant 0 : index
    %428 = vector.load %arg6[%c1_310, %c3_311, %c0_312, %c0_313] : memref<2x4x1x8xf32, #tpu.memory_space<vmem>>, vector<1x1x1x8xf32>
    %429 = vector.shape_cast %428 : vector<1x1x1x8xf32> to vector<1x8xf32>
    %430 = vector.broadcast %429 : vector<1x8xf32> to vector<16x8xf32>
    %431 = arith.addf %427, %430 : vector<16x8xf32>
    %432 = arith.truncf %431 : vector<16x8xf32> to vector<16x8xbf16>
    %433 = vector.shape_cast %432 : vector<16x8xbf16> to vector<2x8x8xbf16>
    %c1_314 = arith.constant 1 : index
    %c3_315 = arith.constant 3 : index
    %c0_316 = arith.constant 0 : index
    %c0_317 = arith.constant 0 : index
    %434 = vector.load %arg7[%c1_314, %c3_315, %c0_316, %c0_317] : memref<2x4x32x8xbf16, #tpu.memory_space<vmem>>, vector<1x1x32x8xbf16>
    %435 = vector.shape_cast %434 : vector<1x1x32x8xbf16> to vector<32x8xbf16>
    %cst_318 = arith.constant dense<0.000000e+00> : vector<16x8xf32>
    %436 = tpu.matmul %276, %435, %cst_318 {dimension_numbers = #tpu.dot_dimension_numbers<[1], [0], [0], [1], [0, 0, 1, 1], [], []>} : vector<16x32xbf16>, vector<32x8xbf16>, vector<16x8xf32> -> vector<16x8xf32>
    %c1_319 = arith.constant 1 : index
    %c3_320 = arith.constant 3 : index
    %c0_321 = arith.constant 0 : index
    %c0_322 = arith.constant 0 : index
    %437 = vector.load %arg8[%c1_319, %c3_320, %c0_321, %c0_322] : memref<2x4x1x8xf32, #tpu.memory_space<vmem>>, vector<1x1x1x8xf32>
    %438 = vector.shape_cast %437 : vector<1x1x1x8xf32> to vector<1x8xf32>
    %439 = vector.broadcast %438 : vector<1x8xf32> to vector<16x8xf32>
    %440 = arith.addf %436, %439 : vector<16x8xf32>
    %441 = arith.truncf %440 : vector<16x8xf32> to vector<16x8xbf16>
    %442 = vector.shape_cast %441 : vector<16x8xbf16> to vector<2x8x8xbf16>
    "tpu.trace_start"() <{level = 10 : i32, message = "bqd,bkd->bqk"}> : () -> ()
    %cst_323 = arith.constant dense<0.000000e+00> : vector<2x8x8xf32>
    %443 = tpu.matmul %424, %433, %cst_323 {dimension_numbers = #tpu.dot_dimension_numbers<[2], [2], [1], [1], [0, 0, 0, 1, 1, 1], [0], [0]>} : vector<2x8x8xbf16>, vector<2x8x8xbf16>, vector<2x8x8xf32> -> vector<2x8x8xf32>
    "tpu.trace_stop"() : () -> ()
    %cst_324 = arith.constant dense<0xFF800000> : vector<2x8xf32>
    %444 = vector.multi_reduction <maximumf>, %443, %cst_324 [2] : vector<2x8x8xf32> to vector<2x8xf32>
    %445 = vector.shape_cast %444 : vector<2x8xf32> to vector<2x8x1xf32>
    %446 = vector.broadcast %445 : vector<2x8x1xf32> to vector<2x8x8xf32>
    %447 = arith.subf %443, %446 : vector<2x8x8xf32>
    %448 = math.exp %447 : vector<2x8x8xf32>
    %cst_325 = arith.constant dense<0.000000e+00> : vector<2x8xf32>
    %449 = vector.multi_reduction <add>, %448, %cst_325 [2] : vector<2x8x8xf32> to vector<2x8xf32>
    %450 = vector.shape_cast %449 : vector<2x8xf32> to vector<2x8x1xf32>
    %451 = tpu.reciprocal %450 {approx = true} : vector<2x8x1xf32> -> vector<2x8x1xf32>
    %452 = vector.broadcast %451 : vector<2x8x1xf32> to vector<2x8x8xf32>
    %453 = arith.mulf %448, %452 : vector<2x8x8xf32>
    %454 = arith.truncf %453 : vector<2x8x8xf32> to vector<2x8x8xbf16>
    "tpu.trace_start"() <{level = 10 : i32, message = "bqk,bkd->bqd"}> : () -> ()
    %cst_326 = arith.constant dense<0.000000e+00> : vector<2x8x8xf32>
    %455 = tpu.matmul %454, %442, %cst_326 {dimension_numbers = #tpu.dot_dimension_numbers<[2], [1], [1], [2], [0, 0, 0, 1, 1, 2], [0], [0]>} : vector<2x8x8xbf16>, vector<2x8x8xbf16>, vector<2x8x8xf32> -> vector<2x8x8xf32>
    "tpu.trace_stop"() : () -> ()
    %456 = vector.shape_cast %455 : vector<2x8x8xf32> to vector<16x8xf32>
    %457 = arith.truncf %456 : vector<16x8xf32> to vector<16x8xbf16>
    %c1_327 = arith.constant 1 : index
    %c3_328 = arith.constant 3 : index
    %c0_329 = arith.constant 0 : index
    %c0_330 = arith.constant 0 : index
    %458 = vector.load %arg9[%c1_327, %c3_328, %c0_329, %c0_330] : memref<2x4x8x32xbf16, #tpu.memory_space<vmem>>, vector<1x1x8x32xbf16>
    %459 = vector.shape_cast %458 : vector<1x1x8x32xbf16> to vector<8x32xbf16>
    %cst_331 = arith.constant dense<0.000000e+00> : vector<16x32xf32>
    %460 = tpu.matmul %457, %459, %cst_331 {dimension_numbers = #tpu.dot_dimension_numbers<[1], [0], [0], [1], [0, 0, 1, 1], [], []>} : vector<16x8xbf16>, vector<8x32xbf16>, vector<16x32xf32> -> vector<16x32xf32>
    %461 = arith.addf %415, %460 : vector<16x32xf32>
    %c1_332 = arith.constant 1 : index
    %c0_333 = arith.constant 0 : index
    %c0_334 = arith.constant 0 : index
    %462 = vector.load %arg10[%c1_332, %c0_333, %c0_334] : memref<2x1x32xf32, #tpu.memory_space<vmem>>, vector<1x1x32xf32>
    %463 = vector.shape_cast %462 : vector<1x1x32xf32> to vector<1x32xf32>
    %464 = vector.broadcast %463 : vector<1x32xf32> to vector<16x32xf32>
    %465 = arith.addf %461, %464 : vector<16x32xf32>
    %466 = arith.addf %275, %465 : vector<16x32xf32>
    %c1_335 = arith.constant 1 : index
    %c0_336 = arith.constant 0 : index
    %c0_337 = arith.constant 0 : index
    %467 = vector.load %arg15[%c1_335, %c0_336, %c0_337] : memref<2x1x32xf32, #tpu.memory_space<vmem>>, vector<1x1x32xf32>
    %468 = vector.shape_cast %467 : vector<1x1x32xf32> to vector<1x32xf32>
    %c1_338 = arith.constant 1 : index
    %c0_339 = arith.constant 0 : index
    %c0_340 = arith.constant 0 : index
    %469 = vector.load %arg16[%c1_338, %c0_339, %c0_340] : memref<2x1x32xf32, #tpu.memory_space<vmem>>, vector<1x1x32xf32>
    %470 = vector.shape_cast %469 : vector<1x1x32xf32> to vector<1x32xf32>
    %cst_341 = arith.constant dense<0.000000e+00> : vector<16xf32>
    %471 = vector.multi_reduction <add>, %466, %cst_341 [1] : vector<16x32xf32> to vector<16xf32>
    %472 = vector.shape_cast %471 : vector<16xf32> to vector<16x1xf32>
    %cst_342 = arith.constant 3.200000e+01 : f32
    %473 = vector.broadcast %cst_342 : f32 to vector<16x1xf32>
    %474 = arith.divf %472, %473 : vector<16x1xf32>
    %475 = vector.broadcast %474 : vector<16x1xf32> to vector<16x32xf32>
    %476 = arith.subf %466, %475 : vector<16x32xf32>
    %477 = arith.mulf %476, %476 : vector<16x32xf32>
    %cst_343 = arith.constant dense<0.000000e+00> : vector<16xf32>
    %478 = vector.multi_reduction <add>, %477, %cst_343 [1] : vector<16x32xf32> to vector<16xf32>
    %479 = vector.shape_cast %478 : vector<16xf32> to vector<16x1xf32>
    %cst_344 = arith.constant 3.200000e+01 : f32
    %480 = vector.broadcast %cst_344 : f32 to vector<16x1xf32>
    %481 = arith.divf %479, %480 : vector<16x1xf32>
    %482 = vector.broadcast %474 : vector<16x1xf32> to vector<16x32xf32>
    %483 = arith.subf %466, %482 : vector<16x32xf32>
    %cst_345 = arith.constant 9.99999974E-6 : f32
    %484 = vector.broadcast %cst_345 : f32 to vector<16x1xf32>
    %485 = arith.addf %481, %484 : vector<16x1xf32>
    %486 = math.rsqrt %485 : vector<16x1xf32>
    %487 = vector.broadcast %486 : vector<16x1xf32> to vector<16x32xf32>
    %488 = arith.mulf %483, %487 : vector<16x32xf32>
    %489 = vector.broadcast %468 : vector<1x32xf32> to vector<16x32xf32>
    %490 = arith.mulf %488, %489 : vector<16x32xf32>
    %491 = vector.broadcast %470 : vector<1x32xf32> to vector<16x32xf32>
    %492 = arith.addf %490, %491 : vector<16x32xf32>
    %493 = arith.truncf %492 : vector<16x32xf32> to vector<16x32xbf16>
    %c1_346 = arith.constant 1 : index
    %c0_347 = arith.constant 0 : index
    %c0_348 = arith.constant 0 : index
    %494 = vector.load %arg11[%c1_346, %c0_347, %c0_348] : memref<2x32x64xbf16, #tpu.memory_space<vmem>>, vector<1x32x64xbf16>
    %495 = vector.shape_cast %494 : vector<1x32x64xbf16> to vector<32x64xbf16>
    %cst_349 = arith.constant dense<0.000000e+00> : vector<16x64xf32>
    %496 = tpu.matmul %493, %495, %cst_349 {dimension_numbers = #tpu.dot_dimension_numbers<[1], [0], [0], [1], [0, 0, 1, 1], [], []>} : vector<16x32xbf16>, vector<32x64xbf16>, vector<16x64xf32> -> vector<16x64xf32>
    %c1_350 = arith.constant 1 : index
    %c0_351 = arith.constant 0 : index
    %c0_352 = arith.constant 0 : index
    %497 = vector.load %arg12[%c1_350, %c0_351, %c0_352] : memref<2x1x64xf32, #tpu.memory_space<vmem>>, vector<1x1x64xf32>
    %498 = vector.shape_cast %497 : vector<1x1x64xf32> to vector<1x64xf32>
    %499 = vector.broadcast %498 : vector<1x64xf32> to vector<16x64xf32>
    %500 = arith.addf %496, %499 : vector<16x64xf32>
    %cst_353 = arith.constant 0.000000e+00 : f32
    %501 = vector.broadcast %cst_353 : f32 to vector<16x64xf32>
    %502 = arith.maximumf %500, %501 : vector<16x64xf32>
    %503 = arith.truncf %502 : vector<16x64xf32> to vector<16x64xbf16>
    %c1_354 = arith.constant 1 : index
    %c0_355 = arith.constant 0 : index
    %c0_356 = arith.constant 0 : index
    %504 = vector.load %arg13[%c1_354, %c0_355, %c0_356] : memref<2x64x32xbf16, #tpu.memory_space<vmem>>, vector<1x64x32xbf16>
    %505 = vector.shape_cast %504 : vector<1x64x32xbf16> to vector<64x32xbf16>
    %cst_357 = arith.constant dense<0.000000e+00> : vector<16x32xf32>
    %506 = tpu.matmul %503, %505, %cst_357 {dimension_numbers = #tpu.dot_dimension_numbers<[1], [0], [0], [1], [0, 0, 1, 1], [], []>} : vector<16x64xbf16>, vector<64x32xbf16>, vector<16x32xf32> -> vector<16x32xf32>
    %c1_358 = arith.constant 1 : index
    %c0_359 = arith.constant 0 : index
    %c0_360 = arith.constant 0 : index
    %507 = vector.load %arg14[%c1_358, %c0_359, %c0_360] : memref<2x1x32xf32, #tpu.memory_space<vmem>>, vector<1x1x32xf32>
    %508 = vector.shape_cast %507 : vector<1x1x32xf32> to vector<1x32xf32>
    %509 = vector.broadcast %508 : vector<1x32xf32> to vector<16x32xf32>
    %510 = arith.addf %506, %509 : vector<16x32xf32>
    %511 = arith.addf %492, %510 : vector<16x32xf32>
    %c1_361 = arith.constant 1 : index
    %c0_362 = arith.constant 0 : index
    %c0_363 = arith.constant 0 : index
    %512 = vector.load %arg17[%c1_361, %c0_362, %c0_363] : memref<2x1x32xf32, #tpu.memory_space<vmem>>, vector<1x1x32xf32>
    %513 = vector.shape_cast %512 : vector<1x1x32xf32> to vector<1x32xf32>
    %c1_364 = arith.constant 1 : index
    %c0_365 = arith.constant 0 : index
    %c0_366 = arith.constant 0 : index
    %514 = vector.load %arg18[%c1_364, %c0_365, %c0_366] : memref<2x1x32xf32, #tpu.memory_space<vmem>>, vector<1x1x32xf32>
    %515 = vector.shape_cast %514 : vector<1x1x32xf32> to vector<1x32xf32>
    %cst_367 = arith.constant dense<0.000000e+00> : vector<16xf32>
    %516 = vector.multi_reduction <add>, %511, %cst_367 [1] : vector<16x32xf32> to vector<16xf32>
    %517 = vector.shape_cast %516 : vector<16xf32> to vector<16x1xf32>
    %cst_368 = arith.constant 3.200000e+01 : f32
    %518 = vector.broadcast %cst_368 : f32 to vector<16x1xf32>
    %519 = arith.divf %517, %518 : vector<16x1xf32>
    %520 = vector.broadcast %519 : vector<16x1xf32> to vector<16x32xf32>
    %521 = arith.subf %511, %520 : vector<16x32xf32>
    %522 = arith.mulf %521, %521 : vector<16x32xf32>
    %cst_369 = arith.constant dense<0.000000e+00> : vector<16xf32>
    %523 = vector.multi_reduction <add>, %522, %cst_369 [1] : vector<16x32xf32> to vector<16xf32>
    %524 = vector.shape_cast %523 : vector<16xf32> to vector<16x1xf32>
    %cst_370 = arith.constant 3.200000e+01 : f32
    %525 = vector.broadcast %cst_370 : f32 to vector<16x1xf32>
    %526 = arith.divf %524, %525 : vector<16x1xf32>
    %527 = vector.broadcast %519 : vector<16x1xf32> to vector<16x32xf32>
    %528 = arith.subf %511, %527 : vector<16x32xf32>
    %cst_371 = arith.constant 9.99999974E-6 : f32
    %529 = vector.broadcast %cst_371 : f32 to vector<16x1xf32>
    %530 = arith.addf %526, %529 : vector<16x1xf32>
    %531 = math.rsqrt %530 : vector<16x1xf32>
    %532 = vector.broadcast %531 : vector<16x1xf32> to vector<16x32xf32>
    %533 = arith.mulf %528, %532 : vector<16x32xf32>
    %534 = vector.broadcast %513 : vector<1x32xf32> to vector<16x32xf32>
    %535 = arith.mulf %533, %534 : vector<16x32xf32>
    %536 = vector.broadcast %515 : vector<1x32xf32> to vector<16x32xf32>
    %537 = arith.addf %535, %536 : vector<16x32xf32>
    %538 = arith.truncf %537 : vector<16x32xf32> to vector<16x32xbf16>
    %c0_372 = arith.constant 0 : index
    %c0_373 = arith.constant 0 : index
    %539 = vector.load %arg19[%c0_372, %c0_373] : memref<32x50xbf16, #tpu.memory_space<vmem>>, vector<32x50xbf16>
    %cst_374 = arith.constant dense<0.000000e+00> : vector<16x50xf32>
    %540 = tpu.matmul %538, %539, %cst_374 {dimension_numbers = #tpu.dot_dimension_numbers<[1], [0], [0], [1], [0, 0, 1, 1], [], []>} : vector<16x32xbf16>, vector<32x50xbf16>, vector<16x50xf32> -> vector<16x50xf32>
    %c0_375 = arith.constant 0 : index
    %c0_376 = arith.constant 0 : index
    %541 = vector.load %arg20[%c0_375, %c0_376] : memref<1x50xf32, #tpu.memory_space<vmem>>, vector<1x50xf32>
    %542 = vector.broadcast %541 : vector<1x50xf32> to vector<16x50xf32>
    %543 = arith.addf %540, %542 : vector<16x50xf32>
    %544 = vector.shape_cast %543 : vector<16x50xf32> to vector<2x8x50xf32>
    %c0_377 = arith.constant 0 : index
    %c0_378 = arith.constant 0 : index
    %c0_379 = arith.constant 0 : index
    %545 = vector.load %arg21[%c0_377, %c0_378, %c0_379] : memref<2x8x50xf32, #tpu.memory_space<vmem>>, vector<2x8x50xf32>
    tpu.vector_store %arg21[%c0_377, %c0_378, %c0_379], %544 {strides = array<i32>} : memref<2x8x50xf32, #tpu.memory_space<vmem>>, vector<2x8x50xf32>,
    return
  }
}

</mosaic_0001>

<bundles_post_ra>
// kernel: tpu_custom_call.1
= control target key start
LH: loop header
LB: loop body
LE: loop exit
PB: predicated region body
PF: predicated region fallthrough
CT: control target
= control target key end

     0   :  { %s6831_s0 = inlined_call_operand.vmem [shape: s32[16,1], index: 0, kind: input, shape index: {}]   ;;  %s6832_s1 = inlined_call_operand.vmem [shape: f32[50,32], index: 1, kind: input, shape index: {}]   ;;  %s6833_s2 = inlined_call_operand.vmem [shape: f32[64,32], index: 2, kind: input, shape index: {}]   ;;  %s6834_s3 = inlined_call_operand.vmem [shape: bf16[2,4,32,8], index: 3, kind: input, shape index: {}]   ;;  %s6835_s4 = inlined_call_operand.vmem [shape: f32[2,4,1,8], index: 4, kind: input, shape index: {}]   ;;  %s6836_s5 = inlined_call_operand.vmem [shape: bf16[2,4,32,8], index: 5, kind: input, shape index: {}]   ;;  %s6837_s6 = inlined_call_operand.vmem [shape: f32[2,4,1,8], index: 6, kind: input, shape index: {}]   ;;  %s6838_s7 = inlined_call_operand.vmem [shape: bf16[2,4,32,8], index: 7, kind: input, shape index: {}]   ;;  %s6839_s8 = inlined_call_operand.vmem [shape: f32[2,4,1,8], index: 8, kind: input, shape index: {}]   ;;  %s6840_s9 = inlined_call_operand.vmem [shape: bf16[2,4,8,32], index: 9, kind: input, shape index: {}]   ;;  %s6841_s10 = inlined_call_operand.vmem [shape: f32[2,1,32], index: 10, kind: input, shape index: {}]   ;;  %s6842_s11 = inlined_call_operand.vmem [shape: bf16[2,32,64], index: 11, kind: input, shape index: {}]   ;;  %s6843_s12 = inlined_call_operand.vmem [shape: f32[2,1,64], index: 12, kind: input, shape index: {}]   ;;  %s6844_s13 = inlined_call_operand.vmem [shape: bf16[2,64,32], index: 13, kind: input, shape index: {}]   ;;  %s6845_s14 = inlined_call_operand.vmem [shape: f32[2,1,32], index: 14, kind: input, shape index: {}]   ;;  %s6846_s15 = inlined_call_operand.vmem [shape: f32[2,1,32], index: 15, kind: input, shape index: {}]   ;;  %s6847_s16 = inlined_call_operand.vmem [shape: f32[2,1,32], index: 16, kind: input, shape index: {}]   ;;  %s6848_s17 = inlined_call_operand.vmem [shape: f32[2,1,32], index: 17, kind: input, shape index: {}]   ;;  %s6849_s18 = inlined_call_operand.vmem [shape: f32[2,1,32], index: 18, kind: input, shape index: {}]   ;;  %s6850_s19 = inlined_call_operand.vmem [shape: bf16[32,50], index: 19, kind: input, shape index: {}]   ;;  %s6851_s20 = inlined_call_operand.vmem [shape: f32[1,50], index: 20, kind: input, shape index: {}]   ;;  %s6852_s21 = inlined_call_operand.hbm [shape: f32[2,8,50], index: 21, kind: output, shape index: {}]  }
   0x1   :  { %6859 = sst [smem:[#allocation5_spill]] %s6831_s0 }
   0x2   :  { %6860 = sst [smem:[#allocation6_spill]] %s6832_s1 }
   0x3   :  { %6861 = sst [smem:[#allocation7_spill]] %s6833_s2 }
   0x4   :  { %6862 = sst [smem:[#allocation8_spill]] %s6834_s3 }
   0x5   :  { %6863 = sst [smem:[#allocation9_spill]] %s6835_s4 }
   0x6   :  { %6864 = sst [smem:[#allocation10_spill]] %s6836_s5 }
   0x7   :  { %6865 = sst [smem:[#allocation11_spill]] %s6845_s14 }
   0x8   :  { %s6866_s26 = sld [smem:[#allocation5_spill]]  ;;  %s6867_s14 = sld [smem:[#allocation6_spill]]  ;;  %v5857_v2 = vmov 0   ;;  %v5858_v11 = vmov 0.0   ;;  %vm100_vm0 = vcmask 1041408  }
   0x9   :  { %5690 = vset.pattern.permute.xlu0 %v5857_v2  ;;  %5192 = vmatprep.subr.bf16.mxu1 %v5858_v11  ;;  %s6868_s3 = sld [smem:[#allocation8_spill]] }
   0xe   :  { %v70_v0 = vld [vmem:[%s6866_s26] sm:$0xff]  ;;  %v87_v3 = vld [vmem:[%s6867_s14 + $0x8] sm:$0xff]  ;;  %v88_v4 = vld [vmem:[%s6867_s14 + $0x10] sm:$0xff] }
   0xf   :  { %v86_v1 = vld [vmem:[%s6867_s14] sm:$0xff]  ;;  %v89_v5 = vld [vmem:[%s6867_s14 + $0x18] sm:$0xff]  ;;  %75 = vperm.xlu0 %5690, %v70_v0   ;;  %v71_v6 = vld [vmem:[%s6866_s26 + $0x8] sm:$0xff] }
  0x10   :  { %v5672_v7 = vpack.c.bf16 %v87_v3, %v86_v1  ;;  %v5676_v8 = vpack.c.bf16 %v89_v5, %v88_v4  ;;  %v90_v9 = vld [vmem:[%s6867_s14 + $0x20] sm:$0xff]  ;;  %v91_v10 = vld [vmem:[%s6867_s14 + $0x28] sm:$0xff]  ;;  %v92_v14 = vld [vmem:[%s6867_s14 + $0x30] sm:$0x3] }
  0x11   :  { %v5680_v12 = vpack.c.bf16 %v91_v10, %v90_v9  ;;  %v5691_v13 = vld [vmem:[%s6868_s3] sm:$0xff]  }
  0x12   :  { %5673 = vmatprep.subr.bf16.mxu0 %v5672_v7  ;;  %5193 = vmatpush3.bf16.msra.mxu1 %v5691_v13 }
  0x13   :  { %5675 = vmatpush3.bf16.msra.mxu0 %v5672_v7  ;;  %78 = vperm.xlu0 %5690, %v71_v6  }
  0x14   :  { %5677 = vmatprep.subr.bf16.mxu0 %v5676_v8  ;;  %5194 = vmatprep.subr.bf16.mxu1 %v5858_v11 }
  0x17   :  { %5679 = vmatpush3.bf16.msra.mxu0 %v5676_v8 }
  0x18   :  { %5681 = vmatprep.subr.bf16.mxu0 %v5680_v12 }
  0x1b   :  { %5683 = vmatpush3.bf16.msra.mxu0 %v5680_v12 }
  0x1c   :  { %5187 = vmatprep.subr.msk.mxu0 %vm100_vm0, %v92_v14 }
  0x1f   :  { %5188 = vmatpush3.msk.msra.mxu0 %vm100_vm0, %v92_v14 }
  0x20   :  { %5208 = vmatprep.subr.bf16.mxu0 %v5858_v11 }
  0x21   :  { %26 = vsyncpa [#allocation3], 0  ;;  %v72_v15 = vlaneseq  ;;  %vm93_vm1 = vcmask 408576   ;;  %v5692_v20 = vld [vmem:[%s6838_s7] sm:$0xff]   ;;  %v5693_v22 = vld [vmem:[%s6868_s3 + $0x8] sm:$0xff]   ;;  %vm5859_vm4 = vmmov 0  }
  0x22   :  { %v5694_v23 = vld [vmem:[%s6838_s7 + $0x8] sm:$0xff]   ;;  %5195 = vmatpush3.bf16.msra.mxu1 %v5693_v22  ;;  %5196 = vmatprep.mubr.msk.bf16.mxu1 %vm5859_vm4, %v5858_v11  ;;  %s6869_s24 = sld [smem:[#allocation7_spill]]  ;;  %vm206_vm5 = vcmask 261120   ;;  %s6870_s26 = sld [smem:[#allocation10_spill]]  ;;  %v4604_v40 = vld [vmem:[%s6837_s6] ss:$0 sm:$0xff] }
  0x23   :  { %v73_v16 = vand.u32 127, %v72_v15  ;;  %5200 = vmatprep.subr.bf16.mxu1 %v5858_v11  ;;  %v4610_v44 = vld [vmem:[%s6839_s8] ss:$0 sm:$0xff]  ;;  %vm397_vm6 = vcmask 64512   ;;  %s6871_s22 = sld [smem:[#allocation9_spill]]  ;;  %vm517_vm7 = vcmask 1043456  }
  0x24   :  { %vm2248_vm8 = vcmask 523264   ;;  %s6872_s28 = sld [smem:[#allocation11_spill]] }
  0x28   :  { %v179_v24 = vld [vmem:[%s6869_s24] sm:$0xff]  ;;  %v5696_v31 = vld [vmem:[%s6870_s26 + $0x8] sm:$0xff]  }
  0x29   :  { %v5695_v29 = vld [vmem:[%s6870_s26] sm:$0xff]  }
  0x2a   :  { %v4598_v49 = vld [vmem:[%s6871_s22] ss:$0 sm:$0xff] }
  0x8e   :  { %v76_v17 = vpop.permute.xlu0 %75 }
  0x8f   :  { %vm80_vm2 = vcmp.eq.s32.totalorder %v73_v16, %v76_v17 }
  0x90   :  { %v4593_v18 = vsel %vm80_vm2, 1.0, %v5858_v11 }
  0x91   :  { %5189 = vmatprep.mubr.msk.f32.mxu0 %vm93_vm1, %v4593_v18 }
  0x92   :  { %v79_v19 = vpop.permute.xlu0 %78 }
  0x93   :  { %vm81_vm3 = vcmp.eq.s32.totalorder %v73_v16, %v79_v19 }
  0x94   :  { %v4594_v21 = vsel %vm81_vm3, 1.0, %v5858_v11 }
  0x95   :  { %5190 = vmatmul.mubr.msk.f32.vlgmr.msra.gmra.mrb[0].mxu0 %vm93_vm1, %v4594_v21 }
  0x96   :  { %5209 = vmatpush3.bf16.msra.mxu0 %v5692_v20  ;;  %5212 = vmatprep.mubr.msk.bf16.mxu0 %vm5859_vm4, %v5858_v11 }
  0x97   :  { %5210 = vmatprep.subr.bf16.mxu0 %v5858_v11 }
  0x9a   :  { %5211 = vmatpush3.bf16.msra.mxu0 %v5694_v23 }
  0x9b   :  { %5222 = vmatprep.subr.bf16.mxu0 %v5858_v11 }
 0x168   :  { %v5191_v25 = vpop.f32.mrb[0].mxu0 }
 0x169   :  { %v6029_v26 = vadd.f32 %v5191_v25, %v179_v24  ;;  %v170_v27 = vpop.f32.mrb[1].mxu0 }
 0x16a   :  { %v6031_v28 = vadd.f32 %v179_v24, %v170_v27  ;;  %v5697_v24 = vld [vmem:[%s6870_s26 + $0x10] sm:$0xff]  }
 0x16c   :  { %v6038_v30 = vpack.c.bf16 %v6029_v26, %v6031_v28 }
 0x16e   :  { %5197 = vmatmul.mubr.msk.bf16.vlgmr.msra.gmra.mrb[0].mxu1 %vm206_vm5, %v6038_v30  ;;  %5213 = vmatmul.mubr.msk.bf16.vlgmr.msra.gmra.mrb[4].mxu0 %vm206_vm5, %v6038_v30 }
 0x16f   :  { %5201 = vmatpush3.bf16.msra.mxu1 %v5695_v29  ;;  %5204 = vmatprep.mubr.msk.bf16.mxu1 %vm5859_vm4, %v5858_v11 }
 0x170   :  { %5202 = vmatprep.subr.bf16.mxu1 %v5858_v11  ;;  %5224 = vmatprep.mubr.msk.bf16.mxu0 %vm5859_vm4, %v5858_v11 }
 0x173   :  { %5203 = vmatpush3.bf16.msra.mxu1 %v5696_v31  ;;  %v5698_v31 = vld [vmem:[%s6868_s3 + $0x10] sm:$0xff]  }
 0x174   :  { %5216 = vmatprep.subr.bf16.mxu1 %v5858_v11 }
 0x176   :  { %5205 = vmatmul.mubr.msk.bf16.vlgmr.msra.gmra.mrb[4].mxu1 %vm206_vm5, %v6038_v30 }
 0x177   :  { %5218 = vmatprep.mubr.msk.bf16.mxu1 %vm5859_vm4, %v5858_v11 }
 0x241   :  { %v244_v32 = vpop.f32.mrb[0].mxu1  ;;  %v384_v33 = vpop.f32.mrb[4].mxu0 }
 0x242   :  { %v5198_v34 = vpop.f32.mrb[1].mxu1  ;;  %v5214_v35 = vpop.f32.mrb[5].mxu0  ;;  %v385_v50 = vadd.f32 %v4610_v44, %v384_v33  ;;  %v245_v53 = vadd.f32 %v4598_v49, %v244_v32  ;;  %v5699_v32 = vld [vmem:[%s6870_s26 + $0x18] sm:$0xff]  }
 0x243   :  { %v247_v36 = vpop.f32.mrb[2].mxu1  ;;  %v387_v37 = vpop.f32.mrb[6].mxu0  ;;  %v5700_v34 = vld [vmem:[%s6868_s3 + $0x18] sm:$0xff]   ;;  %v5701_v35 = vld [vmem:[%s6838_s7 + $0x10] sm:$0xff]  }
 0x244   :  { %v5199_v38 = vpop.f32.mrb[3].mxu1  ;;  %v5215_v39 = vpop.f32.mrb[7].mxu0  ;;  %v388_v54 = vadd.f32 %v4610_v44, %v387_v37  ;;  %v4951_v56 = vpack.c.bf16 %v385_v50, %v385_v50  ;;  %v248_v57 = vadd.f32 %v4598_v49, %v247_v36  ;;  %v4947_v58 = vpack.c.bf16 %v245_v53, %v245_v53  ;;  %v5702_v36 = vld [vmem:[%s6838_s7 + $0x18] sm:$0xff]  }
 0x246   :  { %v4952_v59 = vpack.c.bf16 %v388_v54, %v388_v54  ;;  %v519_v60 = vsel %vm517_vm7, %v4951_v56, 0  ;;  %v4948_v61 = vpack.c.bf16 %v248_v57, %v248_v57  ;;  %v4625_v54 = vld [vmem:[%s6871_s22 + $0x1] ss:$0 sm:$0xff] }
 0x248   :  { %v565_v62 = vsel %vm517_vm7, %v4952_v59, 0 }
 0x249   :  { %v314_v41 = vpop.f32.mrb[4].mxu1 }
 0x24a   :  { %v315_v42 = vadd.f32 %v4604_v40, %v314_v41  ;;  %v5206_v43 = vpop.f32.mrb[5].mxu1 }
 0x24b   :  { %v317_v45 = vpop.f32.mrb[6].mxu1 }
 0x24c   :  { %v4949_v46 = vpack.c.bf16 %v315_v42, %v315_v42  ;;  %v318_v47 = vadd.f32 %v4604_v40, %v317_v45  ;;  %v5207_v48 = vpop.f32.mrb[7].mxu1  ;;  %v4636_v45 = vld [vmem:[%s6837_s6 + $0x1] ss:$0 sm:$0xff] }
 0x24e   :  { %v402_v51 = vsel %vm397_vm6, %v4949_v46, 0  ;;  %v4950_v52 = vpack.c.bf16 %v318_v47, %v318_v47 }
 0x24f   :  { %5217 = vmatpush3.bf16.xpose.msra.mxu1 %v402_v51 }
 0x250   :  { %v448_v55 = vsel %vm397_vm6, %v4950_v52, 0  ;;  %5228 = vmatprep.subr.bf16.mxu1 %v5858_v11 }
 0x251   :  { %5223 = vmatpush3.bf16.xpose.msra.mxu0 %v448_v55 }
 0x252   :  { %5234 = vmatprep.subr.bf16.mxu0 %v5858_v11 }
 0x256   :  { %5219 = vmatmul.mubr.msk.bf16.vlgmr.msra.gmra.mrb[8].mxu1 %vm397_vm6, %v4947_v58 }
 0x257   :  { %5229 = vmatpush3.bf16.msra.mxu1 %v519_v60  ;;  %5230 = vmatprep.mubr.msk.bf16.mxu1 %vm5859_vm4, %v5858_v11 }
 0x258   :  { %5225 = vmatmul.mubr.msk.bf16.vlgmr.msra.gmra.mrb[8].mxu0 %vm397_vm6, %v4948_v61  ;;  %5240 = vmatprep.subr.bf16.mxu1 %v5858_v11 }
 0x259   :  { %5235 = vmatpush3.bf16.msra.mxu0 %v565_v62  ;;  %5236 = vmatprep.mubr.msk.bf16.mxu0 %vm5859_vm4, %v5858_v11 }
 0x25a   :  { %5248 = vmatprep.subr.bf16.mxu0 %v5858_v11 }
 0x329   :  { %v438_v63 = vpop.f32.mrb[8].mxu1 }
 0x32a   :  { %v5220_v0 = vpop.f32.mrb[9].mxu1  ;;  %v490_v8 = vsel %vm397_vm6, %v438_v63, -inf }
 0x32b   :  { %v441_v1 = vpop.f32.mrb[10].mxu1  ;;  %v484_v2 = vpop.f32.mrb[8].mxu0  ;;  %v4647_v0 = vld [vmem:[%s6839_s8 + $0x1] ss:$0 sm:$0xff] }
 0x32c   :  { %v5221_v3 = vpop.f32.mrb[11].mxu1  ;;  %v5226_v4 = vpop.f32.mrb[9].mxu0  ;;  %v493_v5 = vsel %vm397_vm6, %v484_v2, -inf }
 0x32d   :  { %494 = vmax.xlane.f32.xlu1 %v493_v5  ;;  %v487_v6 = vpop.f32.mrb[10].mxu0 }
 0x32e   :  { %v5227_v7 = vpop.f32.mrb[11].mxu0 }
 0x331   :  { %491 = vmax.xlane.f32.xlu1 %v490_v8 }
 0x3ba   :  { %v495_v9 = vpop.xlane.xlu1 %494 }
 0x3bb   :  { %v497_v10 = vsub.f32 %v484_v2, %v495_v9 }
 0x3bd   :  { %v500_v12 = vmul.f32 1.442695, %v497_v10 }
 0x3be   :  { %v492_v13 = vpop.xlane.xlu1 %491 }
 0x3bf   :  { %5753 = vpow2.f32 %v500_v12  ;;  %v496_v14 = vsub.f32 %v438_v63, %v492_v13 }
 0x3c1   :  { %v498_v15 = vmul.f32 1.442695, %v496_v14 }
 0x3c3   :  { %5755 = vpow2.f32 %v498_v15 }
 0x3c9   :  { %v5754_v16 = vpop.eup %5753 }
 0x3ca   :  { %v505_v17 = vsel %vm397_vm6, %v5754_v16, 0.0 }
 0x3cb   :  { %506 = vadd.xlane.f32.xlu0 %v505_v17 }
 0x3cd   :  { %v5756_v18 = vpop.eup %5755 }
 0x3ce   :  { %v502_v19 = vsel %vm397_vm6, %v5756_v18, 0.0 }
 0x3cf   :  { %503 = vadd.xlane.f32.xlu1 %v502_v19 }
 0x458   :  { %v507_v20 = vpop.xlane.xlu0 %506 }
 0x459   :  { %5757 = vrcp.f32 %v507_v20 }
 0x45c   :  { %v504_v21 = vpop.xlane.xlu1 %503 }
 0x45d   :  { %5759 = vrcp.f32 %v504_v21 }
 0x463   :  { %v5758_v22 = vpop.eup %5757 }
 0x464   :  { %v511_v23 = vmul.f32 %v5758_v22, %v5754_v16 }
 0x466   :  { %v513_v25 = vpack.c.bf16 %v511_v23, %v511_v23 }
 0x467   :  { %v5760_v27 = vpop.eup %5759 }
 0x468   :  { %v510_v29 = vmul.f32 %v5760_v27, %v5756_v18  ;;  %5237 = vmatmul.mubr.msk.bf16.vlgmr.msra.gmra.mrb[12].mxu0 %vm397_vm6, %v513_v25 }
 0x469   :  { %5249 = vmatpush3.bf16.msra.mxu0 %v5697_v24  ;;  %5252 = vmatprep.mubr.msk.bf16.mxu0 %vm5859_vm4, %v5858_v11 }
 0x46a   :  { %v512_v33 = vpack.c.bf16 %v510_v29, %v510_v29  ;;  %5250 = vmatprep.subr.bf16.mxu0 %v5858_v11 }
 0x46c   :  { %5231 = vmatmul.mubr.msk.bf16.vlgmr.msra.gmra.mrb[12].mxu1 %vm397_vm6, %v512_v33 }
 0x46d   :  { %5241 = vmatpush3.bf16.msra.mxu1 %v5698_v31  ;;  %5251 = vmatpush3.bf16.msra.mxu0 %v5699_v32 }
 0x46e   :  { %5242 = vmatprep.subr.bf16.mxu1 %v5858_v11  ;;  %5244 = vmatprep.mubr.msk.bf16.mxu1 %vm5859_vm4, %v5858_v11 }
 0x46f   :  { %5264 = vmatprep.subr.bf16.mxu0 %v5858_v11 }
 0x470   :  { %5253 = vmatmul.mubr.msk.bf16.vlgmr.msra.gmra.mrb[16].mxu0 %vm206_vm5, %v6038_v30 }
 0x471   :  { %5243 = vmatpush3.bf16.msra.mxu1 %v5700_v34  ;;  %5266 = vmatprep.mubr.msk.bf16.mxu0 %vm5859_vm4, %v5858_v11 }
 0x472   :  { %5256 = vmatprep.subr.bf16.mxu1 %v5858_v11 }
 0x474   :  { %5245 = vmatmul.mubr.msk.bf16.vlgmr.msra.gmra.mrb[16].mxu1 %vm206_vm5, %v6038_v30 }
 0x475   :  { %5257 = vmatpush3.bf16.msra.mxu1 %v5701_v35  ;;  %5260 = vmatprep.mubr.msk.bf16.mxu1 %vm5859_vm4, %v5858_v11 }
 0x476   :  { %5258 = vmatprep.subr.bf16.mxu1 %v5858_v11 }
 0x479   :  { %5259 = vmatpush3.bf16.msra.mxu1 %v5702_v36 }
 0x47a   :  { %5270 = vmatprep.subr.bf16.mxu1 %v5858_v11 }
 0x47c   :  { %5261 = vmatmul.mubr.msk.bf16.vlgmr.msra.gmra.mrb[20].mxu1 %vm206_vm5, %v6038_v30 }
 0x47d   :  { %5272 = vmatprep.mubr.msk.bf16.mxu1 %vm5859_vm4, %v5858_v11 }
 0x53b   :  { %v6126_v37 = vpop.f32.mrb[12].mxu0 }
 0x53c   :  { %v5238_v38 = vpop.f32.mrb[13].mxu0 }
 0x53d   :  { %v604_v39 = vpop.f32.mrb[14].mxu0 }
 0x53e   :  { %v5239_v40 = vpop.f32.mrb[15].mxu0 }
 0x53f   :  { %v6128_v41 = vpop.f32.mrb[12].mxu1 }
 0x540   :  { %v607_v42 = vpack.c.bf16 %v6126_v37, %v6128_v41  ;;  %v5232_v43 = vpop.f32.mrb[13].mxu1  ;;  %v4657_v37 = vld [vmem:[%s6840_s9 + $0x4] sm:$0xf] }
 0x541   :  { %v558_v44 = vpop.f32.mrb[14].mxu1  ;;  %v1040_v41 = vsel %vm517_vm7, %v4657_v37, 0 }
 0x542   :  { %v5233_v46 = vpop.f32.mrb[15].mxu1 }
 0x543   :  { %v740_v47 = vpop.f32.mrb[16].mxu0  ;;  %v608_v46 = vld [vmem:[%s6840_s9] sm:$0xf] }
 0x544   :  { %v741_v48 = vadd.f32 %v4636_v45, %v740_v47  ;;  %v5254_v49 = vpop.f32.mrb[17].mxu0 }
 0x545   :  { %v743_v50 = vpop.f32.mrb[18].mxu0  ;;  %v1087_v49 = vsel %vm517_vm7, %v608_v46, 0 }
 0x546   :  { %v4955_v51 = vpack.c.bf16 %v741_v48, %v741_v48  ;;  %v744_v52 = vadd.f32 %v4636_v45, %v743_v50  ;;  %v5255_v53 = vpop.f32.mrb[19].mxu0  ;;  %v5703_v50 = vld [vmem:[%s6870_s26 + $0x20] sm:$0xff]  }
 0x547   :  { %v668_v55 = vpop.f32.mrb[16].mxu1 }
 0x548   :  { %v829_v56 = vsel %vm397_vm6, %v4955_v51, 0  ;;  %v4956_v57 = vpack.c.bf16 %v744_v52, %v744_v52  ;;  %v5246_v58 = vpop.f32.mrb[17].mxu1  ;;  %v669_v61 = vadd.f32 %v4625_v54, %v668_v55  ;;  %v5704_v51 = vld [vmem:[%s6870_s26 + $0x28] sm:$0xff]  }
 0x549   :  { %v671_v59 = vpop.f32.mrb[18].mxu1  ;;  %5265 = vmatpush3.bf16.xpose.msra.mxu0 %v829_v56  ;;  %v5705_v56 = vld [vmem:[%s6868_s3 + $0x20] sm:$0xff]  }
 0x54a   :  { %v875_v60 = vsel %vm397_vm6, %v4956_v57, 0  ;;  %v5247_v62 = vpop.f32.mrb[19].mxu1  ;;  %5276 = vmatprep.subr.bf16.mxu0 %v5858_v11  ;;  %v672_v63 = vadd.f32 %v4625_v54, %v671_v59  ;;  %v4953_v1 = vpack.c.bf16 %v669_v61, %v669_v61  ;;  %v5706_v61 = vld [vmem:[%s6868_s3 + $0x28] sm:$0xff]  }
 0x54b   :  { %5271 = vmatpush3.bf16.xpose.msra.mxu1 %v875_v60 }
 0x54c   :  { %5282 = vmatprep.subr.bf16.mxu1 %v5858_v11  ;;  %v4954_v3 = vpack.c.bf16 %v672_v63, %v672_v63  ;;  %v5707_v63 = vld [vmem:[%s6838_s7 + $0x20] sm:$0xff]  }
 0x54f   :  { %v812_v2 = vpop.f32.mrb[20].mxu1 }
 0x550   :  { %v813_v4 = vadd.f32 %v4647_v0, %v812_v2  ;;  %v5262_v5 = vpop.f32.mrb[21].mxu1  ;;  %5267 = vmatmul.mubr.msk.bf16.vlgmr.msra.gmra.mrb[20].mxu0 %vm397_vm6, %v4953_v1 }
 0x551   :  { %v815_v6 = vpop.f32.mrb[22].mxu1  ;;  %5278 = vmatprep.mubr.msk.bf16.mxu0 %vm5859_vm4, %v5858_v11 }
 0x552   :  { %v4957_v7 = vpack.c.bf16 %v813_v4, %v813_v4  ;;  %v816_v8 = vadd.f32 %v4647_v0, %v815_v6  ;;  %v5263_v9 = vpop.f32.mrb[23].mxu1  ;;  %5273 = vmatmul.mubr.msk.bf16.vlgmr.msra.gmra.mrb[24].mxu1 %vm397_vm6, %v4954_v3  ;;  %v5708_v3 = vld [vmem:[%s6838_s7 + $0x28] sm:$0xff]   ;;  %v4676_v4 = vld [vmem:[%s6837_s6 + $0x2] ss:$0 sm:$0xff] }
 0x553   :  { %5284 = vmatprep.mubr.msk.bf16.mxu1 %vm5859_vm4, %v5858_v11 }
 0x554   :  { %v945_v10 = vsel %vm517_vm7, %v4957_v7, 0  ;;  %v4958_v12 = vpack.c.bf16 %v816_v8, %v816_v8 }
 0x555   :  { %5277 = vmatpush3.bf16.msra.mxu0 %v945_v10 }
 0x556   :  { %v991_v13 = vsel %vm517_vm7, %v4958_v12, 0  ;;  %5288 = vmatprep.subr.bf16.mxu0 %v5858_v11 }
 0x557   :  { %5283 = vmatpush3.bf16.msra.mxu1 %v991_v13 }
 0x558   :  { %5294 = vmatprep.subr.bf16.mxu1 %v5858_v11 }
 0x623   :  { %v865_v14 = vpop.f32.mrb[20].mxu0 }
 0x624   :  { %v5268_v15 = vpop.f32.mrb[21].mxu0  ;;  %v917_v16 = vsel %vm397_vm6, %v865_v14, -inf }
 0x625   :  { %918 = vmax.xlane.f32.xlu1 %v917_v16  ;;  %v868_v17 = vpop.f32.mrb[22].mxu0  ;;  %v911_v18 = vpop.f32.mrb[24].mxu1 }
 0x626   :  { %v5269_v19 = vpop.f32.mrb[23].mxu0  ;;  %v5274_v20 = vpop.f32.mrb[25].mxu1  ;;  %v920_v23 = vsel %vm397_vm6, %v911_v18, -inf }
 0x627   :  { %v914_v21 = vpop.f32.mrb[26].mxu1 }
 0x628   :  { %v5275_v22 = vpop.f32.mrb[27].mxu1 }
 0x629   :  { %921 = vmax.xlane.f32.xlu1 %v920_v23  ;;  %v4665_v22 = vld [vmem:[%s6871_s22 + $0x2] ss:$0 sm:$0xff] }
 0x6b2   :  { %v919_v24 = vpop.xlane.xlu1 %918 }
 0x6b3   :  { %v923_v25 = vsub.f32 %v865_v14, %v919_v24 }
 0x6b5   :  { %v925_v27 = vmul.f32 1.442695, %v923_v25 }
 0x6b6   :  { %v922_v29 = vpop.xlane.xlu1 %921 }
 0x6b7   :  { %5761 = vpow2.f32 %v925_v27  ;;  %v924_v31 = vsub.f32 %v911_v18, %v922_v29 }
 0x6b9   :  { %v927_v32 = vmul.f32 1.442695, %v924_v31 }
 0x6bb   :  { %5763 = vpow2.f32 %v927_v32 }
 0x6c1   :  { %v5762_v33 = vpop.eup %5761 }
 0x6c2   :  { %v929_v34 = vsel %vm397_vm6, %v5762_v33, 0.0 }
 0x6c3   :  { %930 = vadd.xlane.f32.xlu1 %v929_v34  ;;  %v4687_v34 = vld [vmem:[%s6839_s8 + $0x2] ss:$0 sm:$0xff] }
 0x6c5   :  { %v5764_v35 = vpop.eup %5763 }
 0x6c6   :  { %v932_v36 = vsel %vm397_vm6, %v5764_v35, 0.0 }
 0x6c7   :  { %933 = vadd.xlane.f32.xlu1 %v932_v36 }
 0x750   :  { %v931_v38 = vpop.xlane.xlu1 %930 }
 0x751   :  { %5765 = vrcp.f32 %v931_v38 }
 0x754   :  { %v934_v39 = vpop.xlane.xlu1 %933 }
 0x755   :  { %5767 = vrcp.f32 %v934_v39 }
 0x75b   :  { %v5766_v40 = vpop.eup %5765 }
 0x75c   :  { %v937_v43 = vmul.f32 %v5766_v40, %v5762_v33 }
 0x75e   :  { %v939_v44 = vpack.c.bf16 %v937_v43, %v937_v43 }
 0x75f   :  { %v5768_v45 = vpop.eup %5767 }
 0x760   :  { %v938_v47 = vmul.f32 %v5768_v45, %v5764_v35  ;;  %5279 = vmatmul.mubr.msk.bf16.vlgmr.msra.gmra.mrb[24].mxu0 %vm397_vm6, %v939_v44 }
 0x761   :  { %5290 = vmatprep.mubr.msk.bf16.mxu0 %vm5859_vm4, %v5858_v11  ;;  %5289 = vmatpush3.bf16.msra.mxu0 %v1040_v41 }
 0x762   :  { %v940_v48 = vpack.c.bf16 %v938_v47, %v938_v47  ;;  %5300 = vmatprep.subr.bf16.mxu0 %v5858_v11 }
 0x764   :  { %5285 = vmatmul.mubr.msk.bf16.vlgmr.msra.gmra.mrb[28].mxu1 %vm397_vm6, %v940_v48 }
 0x765   :  { %5295 = vmatpush3.bf16.msra.mxu1 %v1087_v49  ;;  %5296 = vmatprep.mubr.msk.bf16.mxu1 %vm5859_vm4, %v5858_v11 }
 0x766   :  { %5308 = vmatprep.subr.bf16.mxu1 %v5858_v11 }
 0x76c   :  { %5297 = vmatmul.mubr.msk.bf16.vlgmr.msra.gmra.mrb[32].mxu1 %vm397_vm6, %v607_v42 }
 0x76d   :  { %5309 = vmatpush3.bf16.msra.mxu1 %v5703_v50  ;;  %5312 = vmatprep.mubr.msk.bf16.mxu1 %vm5859_vm4, %v5858_v11 }
 0x76e   :  { %5310 = vmatprep.subr.bf16.mxu1 %v5858_v11 }
 0x771   :  { %5311 = vmatpush3.bf16.msra.mxu1 %v5704_v51 }
 0x772   :  { %5324 = vmatprep.subr.bf16.mxu1 %v5858_v11 }
 0x774   :  { %5313 = vmatmul.mubr.msk.bf16.vlgmr.msra.gmra.mrb[36].mxu1 %vm206_vm5, %v6038_v30 }
 0x775   :  { %5326 = vmatprep.mubr.msk.bf16.mxu1 %vm5859_vm4, %v5858_v11 }
 0x833   :  { %v981_v42 = vpop.f32.mrb[24].mxu0 }
 0x834   :  { %v5280_v52 = vpop.f32.mrb[25].mxu0 }
 0x835   :  { %v984_v53 = vpop.f32.mrb[26].mxu0 }
 0x836   :  { %v5281_v54 = vpop.f32.mrb[27].mxu0 }
 0x837   :  { %v1027_v55 = vpop.f32.mrb[28].mxu1 }
 0x838   :  { %v1033_v57 = vpack.c.bf16 %v1027_v55, %v981_v42  ;;  %v5286_v58 = vpop.f32.mrb[29].mxu1 }
 0x839   :  { %v1030_v59 = vpop.f32.mrb[30].mxu1 }
 0x83a   :  { %v5287_v60 = vpop.f32.mrb[31].mxu1  ;;  %5291 = vmatmul.mubr.msk.bf16.vlgmr.msra.gmra.mrb[28].mxu0 %vm397_vm6, %v1033_v57 }
 0x83b   :  { %5301 = vmatpush3.bf16.msra.mxu0 %v5705_v56  ;;  %5304 = vmatprep.mubr.msk.bf16.mxu0 %vm5859_vm4, %v5858_v11 }
 0x83c   :  { %5302 = vmatprep.subr.bf16.mxu0 %v5858_v11 }
 0x83f   :  { %5303 = vmatpush3.bf16.msra.mxu0 %v5706_v61  ;;  %v1123_v62 = vpop.f32.mrb[32].mxu1 }
 0x840   :  { %v5298_v0 = vpop.f32.mrb[33].mxu1  ;;  %5316 = vmatprep.subr.bf16.mxu0 %v5858_v11 }
 0x841   :  { %v1126_v1 = vpop.f32.mrb[34].mxu1 }
 0x842   :  { %v5299_v2 = vpop.f32.mrb[35].mxu1  ;;  %5305 = vmatmul.mubr.msk.bf16.vlgmr.msra.gmra.mrb[32].mxu0 %vm206_vm5, %v6038_v30 }
 0x843   :  { %5317 = vmatpush3.bf16.msra.mxu0 %v5707_v63  ;;  %5320 = vmatprep.mubr.msk.bf16.mxu0 %vm5859_vm4, %v5858_v11 }
 0x844   :  { %5318 = vmatprep.subr.bf16.mxu0 %v5858_v11 }
 0x847   :  { %5319 = vmatpush3.bf16.msra.mxu0 %v5708_v3  ;;  %v1261_v5 = vpop.f32.mrb[36].mxu1 }
 0x848   :  { %v1262_v6 = vadd.f32 %v4676_v4, %v1261_v5  ;;  %v5314_v7 = vpop.f32.mrb[37].mxu1  ;;  %5330 = vmatprep.subr.bf16.mxu0 %v5858_v11 }
 0x849   :  { %v1264_v8 = vpop.f32.mrb[38].mxu1 }
 0x84a   :  { %v4961_v9 = vpack.c.bf16 %v1262_v6, %v1262_v6  ;;  %v1265_v10 = vadd.f32 %v4676_v4, %v1264_v8  ;;  %v5315_v12 = vpop.f32.mrb[39].mxu1  ;;  %5321 = vmatmul.mubr.msk.bf16.vlgmr.msra.gmra.mrb[36].mxu0 %vm206_vm5, %v6038_v30  ;;  %v5709_v8 = vld [vmem:[%s6868_s3 + $0x30] sm:$0xff]  }
 0x84b   :  { %5332 = vmatprep.mubr.msk.bf16.mxu0 %vm5859_vm4, %v5858_v11  ;;  %v5711_v12 = vld [vmem:[%s6838_s7 + $0x30] sm:$0xff]  }
 0x84c   :  { %v1350_v13 = vsel %vm397_vm6, %v4961_v9, 0  ;;  %v4962_v14 = vpack.c.bf16 %v1265_v10, %v1265_v10  ;;  %v5710_v10 = vld [vmem:[%s6868_s3 + $0x38] sm:$0xff]  }
 0x84d   :  { %5325 = vmatpush3.bf16.xpose.msra.mxu1 %v1350_v13  ;;  %v5712_v13 = vld [vmem:[%s6838_s7 + $0x38] sm:$0xff]  }
 0x84e   :  { %v1396_v15 = vsel %vm397_vm6, %v4962_v14, 0  ;;  %5336 = vmatprep.subr.bf16.mxu1 %v5858_v11  ;;  %v4697_v14 = vld [vmem:[%s6840_s9 + $0x8] sm:$0xf] }
 0x850   :  { %5331 = vmatpush3.bf16.xpose.msra.mxu0 %v1396_v15  ;;  %v1561_v15 = vsel %vm517_vm7, %v4697_v14, 0 }
 0x851   :  { %5342 = vmatprep.subr.bf16.mxu0 %v5858_v11 }
 0x90d   :  { %v1076_v16 = vpop.f32.mrb[28].mxu0 }
 0x90e   :  { %v6227_v17 = vadd.f32 %v1123_v62, %v1076_v16  ;;  %v5292_v18 = vpop.f32.mrb[29].mxu0 }
 0x90f   :  { %v1079_v19 = vpop.f32.mrb[30].mxu0 }
 0x910   :  { %v6229_v20 = vadd.f32 %v1126_v1, %v1079_v19  ;;  %v5293_v21 = vpop.f32.mrb[31].mxu0 }
 0x915   :  { %v1189_v23 = vpop.f32.mrb[32].mxu0 }
 0x916   :  { %v1190_v24 = vadd.f32 %v4665_v22, %v1189_v23  ;;  %v5306_v25 = vpop.f32.mrb[33].mxu0  ;;  %v5713_v23 = vld [vmem:[%s6870_s26 + $0x30] sm:$0xff]  }
 0x917   :  { %v1192_v27 = vpop.f32.mrb[34].mxu0 }
 0x918   :  { %v4959_v29 = vpack.c.bf16 %v1190_v24, %v1190_v24  ;;  %v1193_v31 = vadd.f32 %v4665_v22, %v1192_v27  ;;  %v5307_v32 = vpop.f32.mrb[35].mxu0 }
 0x91a   :  { %v4960_v33 = vpack.c.bf16 %v1193_v31, %v1193_v31  ;;  %5327 = vmatmul.mubr.msk.bf16.vlgmr.msra.gmra.mrb[40].mxu1 %vm397_vm6, %v4959_v29  ;;  %v5714_v31 = vld [vmem:[%s6870_s26 + $0x38] sm:$0xff]  }
 0x91b   :  { %5338 = vmatprep.mubr.msk.bf16.mxu1 %vm5859_vm4, %v5858_v11 }
 0x91c   :  { %5333 = vmatmul.mubr.msk.bf16.vlgmr.msra.gmra.mrb[40].mxu0 %vm397_vm6, %v4960_v33 }
 0x91d   :  { %v1333_v35 = vpop.f32.mrb[36].mxu0  ;;  %5344 = vmatprep.mubr.msk.bf16.mxu0 %vm5859_vm4, %v5858_v11 }
 0x91e   :  { %v1334_v36 = vadd.f32 %v4687_v34, %v1333_v35  ;;  %v5322_v38 = vpop.f32.mrb[37].mxu0 }
 0x91f   :  { %v1336_v39 = vpop.f32.mrb[38].mxu0 }
 0x920   :  { %v4963_v40 = vpack.c.bf16 %v1334_v36, %v1334_v36  ;;  %v1337_v43 = vadd.f32 %v4687_v34, %v1336_v39  ;;  %v5323_v44 = vpop.f32.mrb[39].mxu0 }
 0x922   :  { %v1466_v45 = vsel %vm517_vm7, %v4963_v40, 0  ;;  %v4964_v46 = vpack.c.bf16 %v1337_v43, %v1337_v43 }
 0x923   :  { %5337 = vmatpush3.bf16.msra.mxu1 %v1466_v45 }
 0x924   :  { %v1512_v47 = vsel %vm517_vm7, %v4964_v46, 0  ;;  %5348 = vmatprep.subr.bf16.mxu1 %v5858_v11 }
 0x925   :  { %5343 = vmatpush3.bf16.msra.mxu0 %v1512_v47 }
 0x926   :  { %5354 = vmatprep.subr.bf16.mxu0 %v5858_v11 }
 0x9ed   :  { %v1386_v48 = vpop.f32.mrb[40].mxu1 }
 0x9ee   :  { %v5328_v49 = vpop.f32.mrb[41].mxu1  ;;  %v1438_v50 = vsel %vm397_vm6, %v1386_v48, -inf }
 0x9ef   :  { %v1432_v51 = vpop.f32.mrb[40].mxu0  ;;  %1439 = vmax.xlane.f32.xlu1 %v1438_v50  ;;  %v1389_v37 = vpop.f32.mrb[42].mxu1 }
 0x9f0   :  { %v5329_v41 = vpop.f32.mrb[43].mxu1  ;;  %v5334_v42 = vpop.f32.mrb[41].mxu0  ;;  %v1441_v54 = vsel %vm397_vm6, %v1432_v51, -inf  ;;  %v4726_v37 = vld [vmem:[%s6839_s8 + $0x3] ss:$0 sm:$0xff] }
 0x9f1   :  { %v1435_v52 = vpop.f32.mrb[42].mxu0 }
 0x9f2   :  { %v5335_v53 = vpop.f32.mrb[43].mxu0 }
 0x9f3   :  { %1442 = vmax.xlane.f32.xlu1 %v1441_v54 }
 0xa7c   :  { %v1440_v55 = vpop.xlane.xlu1 %1439 }
 0xa7d   :  { %v1444_v56 = vsub.f32 %v1386_v48, %v1440_v55 }
 0xa7f   :  { %v1446_v57 = vmul.f32 1.442695, %v1444_v56 }
 0xa80   :  { %v1443_v58 = vpop.xlane.xlu1 %1442 }
 0xa81   :  { %5769 = vpow2.f32 %v1446_v57  ;;  %v1445_v59 = vsub.f32 %v1432_v51, %v1443_v58 }
 0xa83   :  { %v1448_v60 = vmul.f32 1.442695, %v1445_v59 }
 0xa85   :  { %5771 = vpow2.f32 %v1448_v60 }
 0xa8b   :  { %v5770_v61 = vpop.eup %5769 }
 0xa8c   :  { %v1450_v62 = vsel %vm397_vm6, %v5770_v61, 0.0 }
 0xa8d   :  { %1451 = vadd.xlane.f32.xlu1 %v1450_v62 }
 0xa8f   :  { %v5772_v63 = vpop.eup %5771 }
 0xa90   :  { %v1453_v0 = vsel %vm397_vm6, %v5772_v63, 0.0 }
 0xa91   :  { %1454 = vadd.xlane.f32.xlu0 %v1453_v0 }
 0xb1a   :  { %v1452_v1 = vpop.xlane.xlu1 %1451 }
 0xb1b   :  { %5773 = vrcp.f32 %v1452_v1 }
 0xb1e   :  { %v1455_v2 = vpop.xlane.xlu0 %1454 }
 0xb1f   :  { %5775 = vrcp.f32 %v1455_v2 }
 0xb25   :  { %v5774_v3 = vpop.eup %5773 }
 0xb26   :  { %v1458_v4 = vmul.f32 %v5774_v3, %v5770_v61 }
 0xb28   :  { %v1460_v5 = vpack.c.bf16 %v1458_v4, %v1458_v4 }
 0xb29   :  { %v5776_v6 = vpop.eup %5775 }
 0xb2a   :  { %v1459_v7 = vmul.f32 %v5776_v6, %v5772_v63  ;;  %5339 = vmatmul.mubr.msk.bf16.vlgmr.msra.gmra.mrb[44].mxu1 %vm397_vm6, %v1460_v5 }
 0xb2b   :  { %5350 = vmatprep.mubr.msk.bf16.mxu1 %vm5859_vm4, %v5858_v11  ;;  %5349 = vmatpush3.bf16.msra.mxu1 %v1561_v15 }
 0xb2c   :  { %v1461_v9 = vpack.c.bf16 %v1459_v7, %v1459_v7  ;;  %5362 = vmatprep.subr.bf16.mxu1 %v5858_v11 }
 0xb2e   :  { %5345 = vmatmul.mubr.msk.bf16.vlgmr.msra.gmra.mrb[44].mxu0 %vm397_vm6, %v1461_v9 }
 0xb2f   :  { %5355 = vmatpush3.bf16.msra.mxu0 %v5709_v8  ;;  %5358 = vmatprep.mubr.msk.bf16.mxu0 %vm5859_vm4, %v5858_v11 }
 0xb30   :  { %5356 = vmatprep.subr.bf16.mxu0 %v5858_v11 }
 0xb33   :  { %5357 = vmatpush3.bf16.msra.mxu0 %v5710_v10 }
 0xb34   :  { %5370 = vmatprep.subr.bf16.mxu0 %v5858_v11 }
 0xb36   :  { %5359 = vmatmul.mubr.msk.bf16.vlgmr.msra.gmra.mrb[48].mxu0 %vm206_vm5, %v6038_v30 }
 0xb37   :  { %5371 = vmatpush3.bf16.msra.mxu0 %v5711_v12  ;;  %5374 = vmatprep.mubr.msk.bf16.mxu0 %vm5859_vm4, %v5858_v11 }
 0xb38   :  { %5372 = vmatprep.subr.bf16.mxu0 %v5858_v11 }
 0xb3b   :  { %5373 = vmatpush3.bf16.msra.mxu0 %v5712_v13 }
 0xb3c   :  { %5384 = vmatprep.subr.bf16.mxu0 %v5858_v11 }
 0xb3e   :  { %5375 = vmatmul.mubr.msk.bf16.vlgmr.msra.gmra.mrb[52].mxu0 %vm206_vm5, %v6038_v30 }
 0xb3f   :  { %5386 = vmatprep.mubr.msk.bf16.mxu0 %vm5859_vm4, %v5858_v11 }
 0xbfd   :  { %v1502_v16 = vpop.f32.mrb[44].mxu1 }
 0xbfe   :  { %v5340_v18 = vpop.f32.mrb[45].mxu1 }
 0xbff   :  { %v1505_v19 = vpop.f32.mrb[46].mxu1 }
 0xc00   :  { %v5341_v21 = vpop.f32.mrb[47].mxu1 }
 0xc01   :  { %v1548_v22 = vpop.f32.mrb[44].mxu0 }
 0xc02   :  { %v1554_v24 = vpack.c.bf16 %v1548_v22, %v1502_v16  ;;  %v5346_v25 = vpop.f32.mrb[45].mxu0 }
 0xc03   :  { %v1551_v27 = vpop.f32.mrb[46].mxu0 }
 0xc04   :  { %v5347_v29 = vpop.f32.mrb[47].mxu0  ;;  %5351 = vmatmul.mubr.msk.bf16.vlgmr.msra.gmra.mrb[48].mxu1 %vm397_vm6, %v1554_v24 }
 0xc05   :  { %5363 = vmatpush3.bf16.msra.mxu1 %v5713_v23  ;;  %5366 = vmatprep.mubr.msk.bf16.mxu1 %vm5859_vm4, %v5858_v11 }
 0xc06   :  { %5364 = vmatprep.subr.bf16.mxu1 %v5858_v11 }
 0xc09   :  { %v1665_v32 = vpop.f32.mrb[48].mxu0  ;;  %5365 = vmatpush3.bf16.msra.mxu1 %v5714_v31  ;;  %v4736_v31 = vld [vmem:[%s6840_s9 + $0xc] sm:$0xf] }
 0xc0a   :  { %v5360_v33 = vpop.f32.mrb[49].mxu0  ;;  %5378 = vmatprep.subr.bf16.mxu1 %v5858_v11 }
 0xc0b   :  { %v1668_v34 = vpop.f32.mrb[50].mxu0 }
 0xc0c   :  { %v5361_v35 = vpop.f32.mrb[51].mxu0  ;;  %5367 = vmatmul.mubr.msk.bf16.vlgmr.msra.gmra.mrb[52].mxu1 %vm206_vm5, %v6038_v30  ;;  %v4715_v30 = vld [vmem:[%s6837_s6 + $0x3] ss:$0 sm:$0xff] }
 0xc0d   :  { %5380 = vmatprep.mubr.msk.bf16.mxu1 %vm5859_vm4, %v5858_v11 }
 0xc11   :  { %v1809_v36 = vpop.f32.mrb[52].mxu0 }
 0xc12   :  { %v5376_v38 = vpop.f32.mrb[53].mxu0  ;;  %v1810_v53 = vadd.f32 %v4726_v37, %v1809_v36  ;;  %v2037_v36 = vsel %vm517_vm7, %v4736_v31, 0 }
 0xc13   :  { %v1812_v39 = vpop.f32.mrb[54].mxu0 }
 0xc14   :  { %v5377_v40 = vpop.f32.mrb[55].mxu0  ;;  %v1813_v57 = vadd.f32 %v4726_v37, %v1812_v39  ;;  %v4969_v60 = vpack.c.bf16 %v1810_v53, %v1810_v53  ;;  %v4738_v37 = vld [vmem:[%s6841_s10] ss:$0 sm:$0xff] }
 0xc16   :  { %v4970_v62 = vpack.c.bf16 %v1813_v57, %v1813_v57  ;;  %v1942_v0 = vsel %vm517_vm7, %v4969_v60, 0 }
 0xc18   :  { %v1988_v1 = vsel %vm517_vm7, %v4970_v62, 0 }
 0xcd7   :  { %v1597_v43 = vpop.f32.mrb[48].mxu1 }
 0xcd8   :  { %v6302_v44 = vadd.f32 %v1597_v43, %v6227_v17  ;;  %v5352_v45 = vpop.f32.mrb[49].mxu1 }
 0xcd9   :  { %v1600_v46 = vpop.f32.mrb[50].mxu1 }
 0xcda   :  { %v6305_v47 = vadd.f32 %v1600_v46, %v6229_v20  ;;  %v5353_v48 = vpop.f32.mrb[51].mxu1  ;;  %v4704_v20 = vld [vmem:[%s6871_s22 + $0x3] ss:$0 sm:$0xff] }
 0xcdb   :  { %v1666_v56 = vadd.f32 %v4704_v20, %v1665_v32  ;;  %v1669_v59 = vadd.f32 %v4704_v20, %v1668_v34 }
 0xcdd   :  { %v4965_v61 = vpack.c.bf16 %v1666_v56, %v1666_v56  ;;  %v4966_v63 = vpack.c.bf16 %v1669_v59, %v1669_v59 }
 0xcdf   :  { %v1737_v49 = vpop.f32.mrb[52].mxu1 }
 0xce0   :  { %v1738_v50 = vadd.f32 %v4715_v30, %v1737_v49  ;;  %v5368_v51 = vpop.f32.mrb[53].mxu1 }
 0xce1   :  { %v1740_v41 = vpop.f32.mrb[54].mxu1 }
 0xce2   :  { %v4967_v17 = vpack.c.bf16 %v1738_v50, %v1738_v50  ;;  %v1741_v42 = vadd.f32 %v4715_v30, %v1740_v41  ;;  %v5369_v52 = vpop.f32.mrb[55].mxu1 }
 0xce4   :  { %v1826_v54 = vsel %vm397_vm6, %v4967_v17, 0  ;;  %v4968_v55 = vpack.c.bf16 %v1741_v42, %v1741_v42 }
 0xce5   :  { %5379 = vmatpush3.bf16.xpose.msra.mxu1 %v1826_v54 }
 0xce6   :  { %v1872_v58 = vsel %vm397_vm6, %v4968_v55, 0  ;;  %5390 = vmatprep.subr.bf16.mxu1 %v5858_v11 }
 0xce7   :  { %5385 = vmatpush3.bf16.xpose.msra.mxu0 %v1872_v58 }
 0xce8   :  { %5396 = vmatprep.subr.bf16.mxu0 %v5858_v11 }
 0xcec   :  { %5381 = vmatmul.mubr.msk.bf16.vlgmr.msra.gmra.mrb[56].mxu1 %vm397_vm6, %v4965_v61 }
 0xced   :  { %5391 = vmatpush3.bf16.msra.mxu1 %v1942_v0  ;;  %5392 = vmatprep.mubr.msk.bf16.mxu1 %vm5859_vm4, %v5858_v11 }
 0xcee   :  { %5387 = vmatmul.mubr.msk.bf16.vlgmr.msra.gmra.mrb[56].mxu0 %vm397_vm6, %v4966_v63  ;;  %5402 = vmatprep.subr.bf16.mxu1 %v5858_v11 }
 0xcef   :  { %5397 = vmatpush3.bf16.msra.mxu0 %v1988_v1  ;;  %5398 = vmatprep.mubr.msk.bf16.mxu0 %vm5859_vm4, %v5858_v11 }
 0xcf0   :  { %5408 = vmatprep.subr.bf16.mxu0 %v5858_v11 }
 0xdbf   :  { %v1862_v2 = vpop.f32.mrb[56].mxu1 }
 0xdc0   :  { %v5382_v3 = vpop.f32.mrb[57].mxu1  ;;  %v1914_v4 = vsel %vm397_vm6, %v1862_v2, -inf }
 0xdc1   :  { %v1908_v5 = vpop.f32.mrb[56].mxu0  ;;  %1915 = vmax.xlane.f32.xlu1 %v1914_v4  ;;  %v1865_v6 = vpop.f32.mrb[58].mxu1  ;;  %v5717_v3 = vld [vmem:[%s6844_s13] sm:$0xff]   ;;  %v5718_v4 = vld [vmem:[%s6844_s13 + $0x8] sm:$0xff]  }
 0xdc2   :  { %v5383_v7 = vpop.f32.mrb[59].mxu1  ;;  %v5388_v8 = vpop.f32.mrb[57].mxu0  ;;  %v1917_v9 = vsel %vm397_vm6, %v1908_v5, -inf }
 0xdc3   :  { %1918 = vmax.xlane.f32.xlu0 %v1917_v9  ;;  %v1911_v10 = vpop.f32.mrb[58].mxu0 }
 0xdc4   :  { %v5389_v12 = vpop.f32.mrb[59].mxu0 }
 0xe4e   :  { %v1916_v13 = vpop.xlane.xlu1 %1915 }
 0xe4f   :  { %v1920_v14 = vsub.f32 %v1862_v2, %v1916_v13  ;;  %v5716_v2 = vld [vmem:[%s6842_s11 + $0x8] sm:$0xff]   ;;  %v4739_v13 = vld [vmem:[%s6846_s15] ss:$0 sm:$0xff] }
 0xe50   :  { %v1919_v15 = vpop.xlane.xlu0 %1918 }
 0xe51   :  { %v1922_v16 = vmul.f32 1.442695, %v1920_v14  ;;  %v1921_v18 = vsub.f32 %v1908_v5, %v1919_v15 }
 0xe53   :  { %5777 = vpow2.f32 %v1922_v16  ;;  %v1924_v19 = vmul.f32 1.442695, %v1921_v18 }
 0xe55   :  { %5779 = vpow2.f32 %v1924_v19  ;;  %v4740_v19 = vld [vmem:[%s6847_s16] ss:$0 sm:$0xff] }
 0xe5d   :  { %v5778_v21 = vpop.eup %5777 }
 0xe5e   :  { %v1926_v22 = vsel %vm397_vm6, %v5778_v21, 0.0 }
 0xe5f   :  { %v5780_v23 = vpop.eup %5779  ;;  %1927 = vadd.xlane.f32.xlu1 %v1926_v22 }
 0xe60   :  { %v1929_v24 = vsel %vm397_vm6, %v5780_v23, 0.0 }
 0xe61   :  { %1930 = vadd.xlane.f32.xlu0 %v1929_v24 }
 0xeec   :  { %v1928_v25 = vpop.xlane.xlu1 %1927 }
 0xeed   :  { %5781 = vrcp.f32 %v1928_v25  ;;  %v5719_v25 = vld [vmem:[%s6844_s13 + $0x10] sm:$0xff]  }
 0xeee   :  { %v1931_v27 = vpop.xlane.xlu0 %1930 }
 0xeef   :  { %5783 = vrcp.f32 %v1931_v27  ;;  %v5720_v27 = vld [vmem:[%s6844_s13 + $0x18] sm:$0xff]  }
 0xef7   :  { %v5782_v29 = vpop.eup %5781 }
 0xef8   :  { %v1934_v32 = vmul.f32 %v5782_v29, %v5778_v21  ;;  %v4741_v29 = vld [vmem:[%s6843_s12] ss:$0 sm:$0xff] }
 0xef9   :  { %v5784_v33 = vpop.eup %5783 }
 0xefa   :  { %v1935_v34 = vmul.f32 %v5784_v33, %v5780_v23  ;;  %v1936_v35 = vpack.c.bf16 %v1934_v32, %v1934_v32 }
 0xefc   :  { %5393 = vmatmul.mubr.msk.bf16.vlgmr.msra.gmra.mrb[60].mxu1 %vm397_vm6, %v1936_v35  ;;  %v1937_v38 = vpack.c.bf16 %v1935_v34, %v1935_v34 }
 0xefd   :  { %5403 = vmatpush3.bf16.msra.mxu1 %v2037_v36  ;;  %5404 = vmatprep.mubr.msk.bf16.mxu1 %vm5859_vm4, %v5858_v11 }
 0xefe   :  { %5399 = vmatmul.mubr.msk.bf16.vlgmr.msra.gmra.mrb[60].mxu0 %vm397_vm6, %v1937_v38  ;;  %5416 = vmatprep.subr.bf16.mxu1 %v5858_v11 }
 0xeff   :  { %5412 = vmatprep.mubr.msk.bf16.mxu0 %vm5859_vm4, %v5858_v11 }
 0xfcf   :  { %v1978_v39 = vpop.f32.mrb[60].mxu1 }
 0xfd0   :  { %v5394_v40 = vpop.f32.mrb[61].mxu1 }
 0xfd1   :  { %v1981_v43 = vpop.f32.mrb[62].mxu1  ;;  %v2024_v45 = vpop.f32.mrb[60].mxu0 }
 0xfd2   :  { %v2030_v46 = vpack.c.bf16 %v2024_v45, %v1978_v39  ;;  %v5395_v48 = vpop.f32.mrb[63].mxu1  ;;  %v5400_v30 = vpop.f32.mrb[61].mxu0  ;;  %v4745_v43 = vld [vmem:[%s6872_s28] ss:$0 sm:$0xff] }
 0xfd3   :  { %v2027_v49 = vpop.f32.mrb[62].mxu0 }
 0xfd4   :  { %v5401_v50 = vpop.f32.mrb[63].mxu0  ;;  %5405 = vmatmul.mubr.msk.bf16.vlgmr.msra.gmra.mrb[64].mxu1 %vm397_vm6, %v2030_v46 }
 0xfd5   :  { %5424 = vmatprep.mubr.msk.bf16.mxu1 %vm5859_vm4, %v5858_v11  ;;  %5417 = vmatpush3.bf16.msra.mxu1 %v5717_v3  ;;  %v4751_v3 = vld [vmem:[%s6848_s17] ss:$0 sm:$0xff] }
 0xfd6   :  { %5418 = vmatprep.subr.bf16.mxu1 %v5858_v11 }
 0xfd9   :  { %5419 = vmatpush3.bf16.msra.mxu1 %v5718_v4 }
 0xfda   :  { %5420 = vmatprep.subr.bf16.mxu1 %v5858_v11 }
 0xfdd   :  { %5421 = vmatpush3.bf16.msra.mxu1 %v5719_v25 }
 0xfde   :  { %5422 = vmatprep.subr.bf16.mxu1 %v5858_v11 }
 0xfe1   :  { %5423 = vmatpush3.bf16.msra.mxu1 %v5720_v27  ;;  %v4769_v27 = vld [vmem:[%s6837_s6 + $0x4] ss:$0 sm:$0xff] }
 0xfe2   :  { %5444 = vmatprep.subr.bf16.mxu1 %v5858_v11 }
0x10a7   :  { %v2073_v51 = vpop.f32.mrb[64].mxu1 }
0x10a8   :  { %v2080_v41 = vadd.f32 %v2073_v51, %v6302_v44  ;;  %v5406_v17 = vpop.f32.mrb[65].mxu1 }
0x10a9   :  { %v2076_v42 = vpop.f32.mrb[66].mxu1 }
0x10aa   :  { %v2089_v52 = vadd.f32 %v4738_v37, %v2080_v41  ;;  %v2081_v20 = vadd.f32 %v2076_v42, %v6305_v47  ;;  %v5407_v53 = vpop.f32.mrb[67].mxu1 }
0x10ac   :  { %v2090_v54 = vadd.f32 %v4738_v37, %v2081_v20  ;;  %v2091_v55 = vadd.f32 %v2089_v52, %v6031_v28 }
0x10ae   :  { %v2095_v56 = vsel %vm206_vm5, %v2091_v55, 0.0  ;;  %v2092_v57 = vadd.f32 %v2090_v54, %v6029_v26  ;;  %v5715_v26 = vld [vmem:[%s6842_s11] sm:$0xff]  }
0x10af   :  { %2096 = vadd.xlane.f32.xlu1 %v2095_v56  ;;  %5409 = vmatpush3.bf16.msra.mxu0 %v5715_v26 }
0x10b0   :  { %v2098_v58 = vsel %vm206_vm5, %v2092_v57, 0.0  ;;  %5410 = vmatprep.subr.bf16.mxu0 %v5858_v11 }
0x10b1   :  { %2099 = vadd.xlane.f32.xlu0 %v2098_v58 }
0x10b3   :  { %5411 = vmatpush3.bf16.msra.mxu0 %v5716_v2 }
0x10b4   :  { %5428 = vmatprep.subr.bf16.mxu0 %v5858_v11 }
0x113c   :  { %v2097_v59 = vpop.xlane.xlu1 %2096 }
0x113d   :  { %v2102_v60 = vmul.f32 0.03125, %v2097_v59 }
0x113e   :  { %v2100_v44 = vpop.xlane.xlu0 %2099 }
0x113f   :  { %v2104_v61 = vsub.f32 %v2091_v55, %v2102_v60  ;;  %v2103_v62 = vmul.f32 0.03125, %v2100_v44  ;;  %v5721_v60 = vld [vmem:[%s6868_s3 + $0x40] sm:$0xff]  }
0x1140   :  { %v5722_v44 = vld [vmem:[%s6838_s7 + $0x40] sm:$0xff]  }
0x1141   :  { %v2105_v63 = vsub.f32 %v2092_v57, %v2103_v62  ;;  %v2106_v0 = vmul.f32 %v2104_v61, %v2104_v61  ;;  %v5724_v62 = vld [vmem:[%s6838_s7 + $0x48] sm:$0xff]  }
0x1143   :  { %v2108_v47 = vsel %vm206_vm5, %v2106_v0, 0.0  ;;  %v2107_v1 = vmul.f32 %v2105_v63, %v2105_v63 }
0x1144   :  { %2109 = vadd.xlane.f32.xlu1 %v2108_v47 }
0x1145   :  { %v2111_v28 = vsel %vm206_vm5, %v2107_v1, 0.0 }
0x1146   :  { %2112 = vadd.xlane.f32.xlu0 %v2111_v28 }
0x11d1   :  { %v2110_v5 = vpop.xlane.xlu1 %2109 }
0x11d2   :  { %v2114_v6 = vmul.f32 0.03125, %v2110_v5 }
0x11d3   :  { %v2113_v7 = vpop.xlane.xlu0 %2112 }
0x11d4   :  { %v2116_v8 = vadd.f32 1e-05, %v2114_v6  ;;  %v2115_v9 = vmul.f32 0.03125, %v2113_v7 }
0x11d6   :  { %5785 = vrsqrt.f32 %v2116_v8  ;;  %v2117_v10 = vadd.f32 1e-05, %v2115_v9  ;;  %v4752_v8 = vld [vmem:[%s6849_s18] ss:$0 sm:$0xff] }
0x11d8   :  { %5787 = vrsqrt.f32 %v2117_v10 }
0x11e0   :  { %v5786_v12 = vpop.eup %5785 }
0x11e1   :  { %v2120_v14 = vmul.f32 %v5786_v12, %v2104_v61  ;;  %v5723_v61 = vld [vmem:[%s6868_s3 + $0x48] sm:$0xff]  }
0x11e2   :  { %v5788_v15 = vpop.eup %5787 }
0x11e3   :  { %v2128_v16 = vmul.f32 %v4739_v13, %v2120_v14  ;;  %v2121_v18 = vmul.f32 %v5788_v15, %v2105_v63  ;;  %v5726_v15 = vld [vmem:[%s6870_s26 + $0x48] sm:$0xff]  }
0x11e5   :  { %v2129_v21 = vmul.f32 %v4739_v13, %v2121_v18  ;;  %v2136_v22 = vadd.f32 %v4740_v19, %v2128_v16  ;;  %v5725_v13 = vld [vmem:[%s6870_s26 + $0x40] sm:$0xff]  }
0x11e7   :  { %v2137_v23 = vadd.f32 %v4740_v19, %v2129_v21 }
0x11e9   :  { %v2138_v24 = vpack.c.bf16 %v2137_v23, %v2136_v22 }
0x11eb   :  { %5413 = vmatmul.mubr.msk.bf16.vlgmr.msra.gmra.mrb[64].mxu0 %vm206_vm5, %v2138_v24 }
0x11ec   :  { %5432 = vmatprep.mubr.msk.bf16.mxu0 %vm5859_vm4, %v5858_v11  ;;  %5429 = vmatpush3.bf16.msra.mxu0 %v5721_v60 }
0x11ed   :  { %5430 = vmatprep.subr.bf16.mxu0 %v5858_v11 }
0x11f0   :  { %5431 = vmatpush3.bf16.msra.mxu0 %v5723_v61 }
0x11f1   :  { %5436 = vmatprep.subr.bf16.mxu0 %v5858_v11 }
0x12be   :  { %v2199_v31 = vpop.f32.mrb[64].mxu0 }
0x12bf   :  { %v2200_v32 = vadd.f32 %v4741_v29, %v2199_v31  ;;  %v5414_v33 = vpop.f32.mrb[65].mxu0 }
0x12c0   :  { %v2202_v34 = vpop.f32.mrb[66].mxu0  ;;  %v4780_v33 = vld [vmem:[%s6839_s8 + $0x4] ss:$0 sm:$0xff] }
0x12c1   :  { %v2203_v35 = vadd.f32 %v4741_v29, %v2202_v34  ;;  %v5415_v36 = vpop.f32.mrb[67].mxu0  ;;  %v2206_v38 = vmax.f32 %v2200_v32, 0.0 }
0x12c3   :  { %v2207_v39 = vmax.f32 %v2203_v35, 0.0 }
0x12c5   :  { %v2208_v40 = vpack.c.bf16 %v2207_v39, %v2206_v38  ;;  %v4758_v39 = vld [vmem:[%s6871_s22 + $0x4] ss:$0 sm:$0xff] }
0x12c7   :  { %5425 = vmatmul.mubr.msk.bf16.vlgmr.msra.gmra.mrb[68].mxu1 %vm2248_vm8, %v2208_v40 }
0x12c8   :  { %5448 = vmatprep.mubr.msk.bf16.mxu1 %vm5859_vm4, %v5858_v11  ;;  %5445 = vmatpush3.bf16.msra.mxu1 %v5722_v44 }
0x12c9   :  { %5446 = vmatprep.subr.bf16.mxu1 %v5858_v11 }
0x12cc   :  { %5447 = vmatpush3.bf16.msra.mxu1 %v5724_v62 }
0x12cd   :  { %5458 = vmatprep.subr.bf16.mxu1 %v5858_v11 }
0x139a   :  { %v2286_v45 = vpop.f32.mrb[68].mxu1 }
0x139b   :  { %v2287_v46 = vadd.f32 %v4745_v43, %v2286_v45  ;;  %v5426_v48 = vpop.f32.mrb[69].mxu1 }
0x139c   :  { %v2289_v30 = vpop.f32.mrb[70].mxu1 }
0x139d   :  { %v2290_v49 = vadd.f32 %v4745_v43, %v2289_v30  ;;  %v5427_v50 = vpop.f32.mrb[71].mxu1  ;;  %v2293_v51 = vadd.f32 %v2287_v46, %v2136_v22 }
0x139f   :  { %v2297_v37 = vsel %vm206_vm5, %v2293_v51, 0.0  ;;  %v2294_v41 = vadd.f32 %v2290_v49, %v2137_v23 }
0x13a0   :  { %2298 = vadd.xlane.f32.xlu1 %v2297_v37 }
0x13a1   :  { %v2300_v17 = vsel %vm206_vm5, %v2294_v41, 0.0 }
0x13a2   :  { %2301 = vadd.xlane.f32.xlu0 %v2300_v17 }
0x142d   :  { %v2299_v42 = vpop.xlane.xlu1 %2298 }
0x142e   :  { %v2303_v52 = vmul.f32 0.03125, %v2299_v42 }
0x142f   :  { %v2302_v20 = vpop.xlane.xlu0 %2301 }
0x1430   :  { %v2305_v53 = vsub.f32 %v2293_v51, %v2303_v52  ;;  %v2304_v54 = vmul.f32 0.03125, %v2302_v20 }
0x1432   :  { %v2306_v55 = vsub.f32 %v2294_v41, %v2304_v54  ;;  %v2307_v56 = vmul.f32 %v2305_v53, %v2305_v53 }
0x1434   :  { %v2309_v57 = vsel %vm206_vm5, %v2307_v56, 0.0  ;;  %v2308_v58 = vmul.f32 %v2306_v55, %v2306_v55 }
0x1435   :  { %2310 = vadd.xlane.f32.xlu1 %v2309_v57 }
0x1436   :  { %v2312_v59 = vsel %vm206_vm5, %v2308_v58, 0.0 }
0x1437   :  { %2313 = vadd.xlane.f32.xlu0 %v2312_v59 }
0x14c2   :  { %v2311_v63 = vpop.xlane.xlu1 %2310 }
0x14c3   :  { %v2315_v0 = vmul.f32 0.03125, %v2311_v63 }
0x14c4   :  { %v2314_v47 = vpop.xlane.xlu0 %2313 }
0x14c5   :  { %v2317_v1 = vadd.f32 1e-05, %v2315_v0  ;;  %v2316_v28 = vmul.f32 0.03125, %v2314_v47 }
0x14c7   :  { %5789 = vrsqrt.f32 %v2317_v1  ;;  %v2318_v26 = vadd.f32 1e-05, %v2316_v28 }
0x14c9   :  { %5791 = vrsqrt.f32 %v2318_v26 }
0x14d1   :  { %v5790_v2 = vpop.eup %5789 }
0x14d2   :  { %v2321_v4 = vmul.f32 %v5790_v2, %v2305_v53 }
0x14d3   :  { %v5792_v5 = vpop.eup %5791 }
0x14d4   :  { %v2329_v6 = vmul.f32 %v4751_v3, %v2321_v4  ;;  %v2322_v7 = vmul.f32 %v5792_v5, %v2306_v55 }
0x14d6   :  { %v2330_v9 = vmul.f32 %v4751_v3, %v2322_v7  ;;  %v6427_v10 = vadd.f32 %v4752_v8, %v2329_v6 }
0x14d8   :  { %v6429_v12 = vadd.f32 %v4752_v8, %v2330_v9  ;;  %v5727_v8 = vld [vmem:[%s6868_s3 + $0x50] sm:$0xff]  }
0x14da   :  { %v6436_v14 = vpack.c.bf16 %v6429_v12, %v6427_v10 }
0x14dc   :  { %5433 = vmatmul.mubr.msk.bf16.vlgmr.msra.gmra.mrb[68].mxu0 %vm206_vm5, %v6436_v14  ;;  %5449 = vmatmul.mubr.msk.bf16.vlgmr.msra.gmra.mrb[72].mxu1 %vm206_vm5, %v6436_v14 }
0x14dd   :  { %5437 = vmatpush3.bf16.msra.mxu0 %v5725_v13  ;;  %5440 = vmatprep.mubr.msk.bf16.mxu0 %vm5859_vm4, %v5858_v11 }
0x14de   :  { %5438 = vmatprep.subr.bf16.mxu0 %v5858_v11  ;;  %5460 = vmatprep.mubr.msk.bf16.mxu1 %vm5859_vm4, %v5858_v11 }
0x14e1   :  { %5439 = vmatpush3.bf16.msra.mxu0 %v5726_v15  ;;  %v5728_v15 = vld [vmem:[%s6870_s26 + $0x50] sm:$0xff]  }
0x14e2   :  { %5452 = vmatprep.subr.bf16.mxu0 %v5858_v11 }
0x14e4   :  { %5441 = vmatmul.mubr.msk.bf16.vlgmr.msra.gmra.mrb[72].mxu0 %vm206_vm5, %v6436_v14 }
0x14e5   :  { %5454 = vmatprep.mubr.msk.bf16.mxu0 %vm5859_vm4, %v5858_v11 }
0x15af   :  { %v2402_v16 = vpop.f32.mrb[68].mxu0  ;;  %v2546_v18 = vpop.f32.mrb[72].mxu1 }
0x15b0   :  { %v5434_v19 = vpop.f32.mrb[69].mxu0  ;;  %v5450_v21 = vpop.f32.mrb[73].mxu1  ;;  %v2547_v40 = vadd.f32 %v4780_v33, %v2546_v18  ;;  %v2403_v46 = vadd.f32 %v4758_v39, %v2402_v16  ;;  %v5729_v18 = vld [vmem:[%s6868_s3 + $0x58] sm:$0xff]  }
0x15b1   :  { %v2405_v22 = vpop.f32.mrb[70].mxu0  ;;  %v2549_v23 = vpop.f32.mrb[74].mxu1  ;;  %v5730_v19 = vld [vmem:[%s6870_s26 + $0x58] sm:$0xff]   ;;  %v5731_v21 = vld [vmem:[%s6838_s7 + $0x50] sm:$0xff]  }
0x15b2   :  { %v5435_v24 = vpop.f32.mrb[71].mxu0  ;;  %v5451_v25 = vpop.f32.mrb[75].mxu1  ;;  %v2550_v48 = vadd.f32 %v4780_v33, %v2549_v23  ;;  %v4975_v49 = vpack.c.bf16 %v2547_v40, %v2547_v40  ;;  %v2406_v50 = vadd.f32 %v4758_v39, %v2405_v22  ;;  %v4971_v51 = vpack.c.bf16 %v2403_v46, %v2403_v46  ;;  %v5732_v22 = vld [vmem:[%s6838_s7 + $0x58] sm:$0xff]  }
0x15b4   :  { %v4976_v37 = vpack.c.bf16 %v2550_v48, %v2550_v48  ;;  %v2679_v41 = vsel %vm517_vm7, %v4975_v49, 0  ;;  %v4972_v17 = vpack.c.bf16 %v2406_v50, %v2406_v50 }
0x15b6   :  { %v2725_v42 = vsel %vm517_vm7, %v4976_v37, 0  ;;  %v4818_v37 = vld [vmem:[%s6839_s8 + $0x5] ss:$0 sm:$0xff] }
0x15b7   :  { %v2474_v29 = vpop.f32.mrb[72].mxu0 }
0x15b8   :  { %v2475_v31 = vadd.f32 %v4769_v27, %v2474_v29  ;;  %v5442_v32 = vpop.f32.mrb[73].mxu0 }
0x15b9   :  { %v2477_v34 = vpop.f32.mrb[74].mxu0 }
0x15ba   :  { %v4973_v35 = vpack.c.bf16 %v2475_v31, %v2475_v31  ;;  %v2478_v36 = vadd.f32 %v4769_v27, %v2477_v34  ;;  %v5443_v38 = vpop.f32.mrb[75].mxu0 }
0x15bc   :  { %v2563_v43 = vsel %vm397_vm6, %v4973_v35, 0  ;;  %v4974_v45 = vpack.c.bf16 %v2478_v36, %v2478_v36  ;;  %v4807_v36 = vld [vmem:[%s6837_s6 + $0x5] ss:$0 sm:$0xff] }
0x15bd   :  { %5453 = vmatpush3.bf16.xpose.msra.mxu0 %v2563_v43 }
0x15be   :  { %v2609_v30 = vsel %vm397_vm6, %v4974_v45, 0  ;;  %5464 = vmatprep.subr.bf16.mxu0 %v5858_v11 }
0x15bf   :  { %5459 = vmatpush3.bf16.xpose.msra.mxu1 %v2609_v30 }
0x15c0   :  { %5470 = vmatprep.subr.bf16.mxu1 %v5858_v11 }
0x15c4   :  { %5455 = vmatmul.mubr.msk.bf16.vlgmr.msra.gmra.mrb[76].mxu0 %vm397_vm6, %v4971_v51  ;;  %v4796_v51 = vld [vmem:[%s6871_s22 + $0x5] ss:$0 sm:$0xff] }
0x15c5   :  { %5465 = vmatpush3.bf16.msra.mxu0 %v2679_v41  ;;  %5466 = vmatprep.mubr.msk.bf16.mxu0 %vm5859_vm4, %v5858_v11 }
0x15c6   :  { %5461 = vmatmul.mubr.msk.bf16.vlgmr.msra.gmra.mrb[76].mxu1 %vm397_vm6, %v4972_v17  ;;  %5476 = vmatprep.subr.bf16.mxu0 %v5858_v11 }
0x15c7   :  { %5471 = vmatpush3.bf16.msra.mxu1 %v2725_v42  ;;  %5472 = vmatprep.mubr.msk.bf16.mxu1 %vm5859_vm4, %v5858_v11 }
0x15c8   :  { %5484 = vmatprep.subr.bf16.mxu1 %v5858_v11 }
0x1697   :  { %v2599_v52 = vpop.f32.mrb[76].mxu0 }
0x1698   :  { %v5456_v20 = vpop.f32.mrb[77].mxu0  ;;  %v2651_v53 = vsel %vm397_vm6, %v2599_v52, -inf }
0x1699   :  { %2652 = vmax.xlane.f32.xlu0 %v2651_v53  ;;  %v2602_v54 = vpop.f32.mrb[78].mxu0  ;;  %v2645_v55 = vpop.f32.mrb[76].mxu1 }
0x169a   :  { %v5457_v56 = vpop.f32.mrb[79].mxu0  ;;  %v5462_v57 = vpop.f32.mrb[77].mxu1  ;;  %v2654_v58 = vsel %vm397_vm6, %v2645_v55, -inf }
0x169b   :  { %2655 = vmax.xlane.f32.xlu1 %v2654_v58  ;;  %v2648_v59 = vpop.f32.mrb[78].mxu1 }
0x169c   :  { %v5463_v60 = vpop.f32.mrb[79].mxu1 }
0x1726   :  { %v2653_v44 = vpop.xlane.xlu0 %2652 }
0x1727   :  { %v2657_v61 = vsub.f32 %v2599_v52, %v2653_v44 }
0x1728   :  { %v2656_v62 = vpop.xlane.xlu1 %2655 }
0x1729   :  { %v2659_v63 = vmul.f32 1.442695, %v2657_v61  ;;  %v2658_v0 = vsub.f32 %v2645_v55, %v2656_v62 }
0x172b   :  { %5793 = vpow2.f32 %v2659_v63  ;;  %v2661_v47 = vmul.f32 1.442695, %v2658_v0 }
0x172d   :  { %5795 = vpow2.f32 %v2661_v47 }
0x1735   :  { %v5794_v1 = vpop.eup %5793 }
0x1736   :  { %v2663_v28 = vsel %vm397_vm6, %v5794_v1, 0.0 }
0x1737   :  { %v5796_v26 = vpop.eup %5795  ;;  %2664 = vadd.xlane.f32.xlu0 %v2663_v28 }
0x1738   :  { %v2666_v2 = vsel %vm397_vm6, %v5796_v26, 0.0 }
0x1739   :  { %2667 = vadd.xlane.f32.xlu1 %v2666_v2 }
0x17c4   :  { %v2665_v3 = vpop.xlane.xlu0 %2664 }
0x17c5   :  { %5797 = vrcp.f32 %v2665_v3 }
0x17c6   :  { %v2668_v4 = vpop.xlane.xlu1 %2667 }
0x17c7   :  { %5799 = vrcp.f32 %v2668_v4 }
0x17cf   :  { %v5798_v5 = vpop.eup %5797 }
0x17d0   :  { %v2671_v6 = vmul.f32 %v5798_v5, %v5794_v1 }
0x17d1   :  { %v5800_v7 = vpop.eup %5799 }
0x17d2   :  { %v2672_v9 = vmul.f32 %v5800_v7, %v5796_v26  ;;  %v2673_v13 = vpack.c.bf16 %v2671_v6, %v2671_v6 }
0x17d4   :  { %5467 = vmatmul.mubr.msk.bf16.vlgmr.msra.gmra.mrb[80].mxu0 %vm397_vm6, %v2673_v13  ;;  %v2674_v16 = vpack.c.bf16 %v2672_v9, %v2672_v9 }
0x17d5   :  { %5477 = vmatpush3.bf16.msra.mxu0 %v5727_v8  ;;  %5480 = vmatprep.mubr.msk.bf16.mxu0 %vm5859_vm4, %v5858_v11 }
0x17d6   :  { %5473 = vmatmul.mubr.msk.bf16.vlgmr.msra.gmra.mrb[80].mxu1 %vm397_vm6, %v2674_v16  ;;  %5478 = vmatprep.subr.bf16.mxu0 %v5858_v11 }
0x17d7   :  { %5485 = vmatpush3.bf16.msra.mxu1 %v5728_v15  ;;  %5488 = vmatprep.mubr.msk.bf16.mxu1 %vm5859_vm4, %v5858_v11 }
0x17d8   :  { %5486 = vmatprep.subr.bf16.mxu1 %v5858_v11 }
0x17d9   :  { %5479 = vmatpush3.bf16.msra.mxu0 %v5729_v18 }
0x17da   :  { %5492 = vmatprep.subr.bf16.mxu0 %v5858_v11 }
0x17db   :  { %5487 = vmatpush3.bf16.msra.mxu1 %v5730_v19 }
0x17dc   :  { %5481 = vmatmul.mubr.msk.bf16.vlgmr.msra.gmra.mrb[84].mxu0 %vm206_vm5, %v6436_v14  ;;  %5500 = vmatprep.subr.bf16.mxu1 %v5858_v11 }
0x17dd   :  { %5493 = vmatpush3.bf16.msra.mxu0 %v5731_v21  ;;  %5496 = vmatprep.mubr.msk.bf16.mxu0 %vm5859_vm4, %v5858_v11 }
0x17de   :  { %5489 = vmatmul.mubr.msk.bf16.vlgmr.msra.gmra.mrb[84].mxu1 %vm206_vm5, %v6436_v14  ;;  %5494 = vmatprep.subr.bf16.mxu0 %v5858_v11 }
0x17df   :  { %5502 = vmatprep.mubr.msk.bf16.mxu1 %vm5859_vm4, %v5858_v11 }
0x17e1   :  { %5495 = vmatpush3.bf16.msra.mxu0 %v5732_v22 }
0x17e2   :  { %5506 = vmatprep.subr.bf16.mxu0 %v5858_v11 }
0x17e4   :  { %5497 = vmatmul.mubr.msk.bf16.vlgmr.msra.gmra.mrb[88].mxu0 %vm206_vm5, %v6436_v14 }
0x17e5   :  { %5508 = vmatprep.mubr.msk.bf16.mxu0 %vm5859_vm4, %v5858_v11 }
0x18a7   :  { %v6524_v23 = vpop.f32.mrb[80].mxu0 }
0x18a8   :  { %v5468_v24 = vpop.f32.mrb[81].mxu0 }
0x18a9   :  { %v2718_v25 = vpop.f32.mrb[82].mxu0  ;;  %v6526_v27 = vpop.f32.mrb[80].mxu1 }
0x18aa   :  { %v2767_v29 = vpack.c.bf16 %v6526_v27, %v6524_v23  ;;  %v5469_v31 = vpop.f32.mrb[83].mxu0  ;;  %v5474_v32 = vpop.f32.mrb[81].mxu1 }
0x18ab   :  { %v2764_v33 = vpop.f32.mrb[82].mxu1  ;;  %v4828_v32 = vld [vmem:[%s6840_s9 + $0x14] sm:$0xf] }
0x18ac   :  { %v5475_v34 = vpop.f32.mrb[83].mxu1 }
0x18af   :  { %v2829_v35 = vpop.f32.mrb[84].mxu0 }
0x18b0   :  { %v5482_v38 = vpop.f32.mrb[85].mxu0  ;;  %v2830_v52 = vadd.f32 %v4796_v51, %v2829_v35  ;;  %v4790_v35 = vld [vmem:[%s6840_s9 + $0x10] sm:$0xf] }
0x18b1   :  { %v2832_v39 = vpop.f32.mrb[86].mxu0  ;;  %v2901_v40 = vpop.f32.mrb[84].mxu1 }
0x18b2   :  { %v2902_v43 = vadd.f32 %v4807_v36, %v2901_v40  ;;  %v5483_v45 = vpop.f32.mrb[87].mxu0  ;;  %v5490_v46 = vpop.f32.mrb[85].mxu1  ;;  %v2833_v56 = vadd.f32 %v4796_v51, %v2832_v39  ;;  %v4977_v60 = vpack.c.bf16 %v2830_v52, %v2830_v52  ;;  %v3201_v39 = vsel %vm517_vm7, %v4828_v32, 0  ;;  %v5737_v52 = vld [vmem:[%s6838_s7 + $0x60] sm:$0xff]  }
0x18b3   :  { %v2904_v48 = vpop.f32.mrb[86].mxu1  ;;  %v5733_v45 = vld [vmem:[%s6870_s26 + $0x60] sm:$0xff]   ;;  %v5734_v46 = vld [vmem:[%s6870_s26 + $0x68] sm:$0xff]  }
0x18b4   :  { %v4979_v30 = vpack.c.bf16 %v2902_v43, %v2902_v43  ;;  %v2905_v49 = vadd.f32 %v4807_v36, %v2904_v48  ;;  %v5491_v50 = vpop.f32.mrb[87].mxu1  ;;  %v4978_v61 = vpack.c.bf16 %v2833_v56, %v2833_v56  ;;  %v3248_v43 = vsel %vm517_vm7, %v4790_v35, 0  ;;  %v4847_v56 = vld [vmem:[%s6837_s6 + $0x6] ss:$0 sm:$0xff] }
0x18b6   :  { %v2990_v41 = vsel %vm397_vm6, %v4979_v30, 0  ;;  %v4980_v17 = vpack.c.bf16 %v2905_v49, %v2905_v49  ;;  %v5735_v30 = vld [vmem:[%s6868_s3 + $0x60] sm:$0xff]  }
0x18b7   :  { %v2973_v42 = vpop.f32.mrb[88].mxu0  ;;  %5501 = vmatpush3.bf16.xpose.msra.mxu1 %v2990_v41 }
0x18b8   :  { %v3036_v20 = vsel %vm397_vm6, %v4980_v17, 0  ;;  %v2974_v53 = vadd.f32 %v4818_v37, %v2973_v42  ;;  %v5498_v54 = vpop.f32.mrb[89].mxu0  ;;  %5512 = vmatprep.subr.bf16.mxu1 %v5858_v11  ;;  %v5736_v17 = vld [vmem:[%s6868_s3 + $0x68] sm:$0xff]  }
0x18b9   :  { %v2976_v55 = vpop.f32.mrb[90].mxu0  ;;  %5507 = vmatpush3.bf16.xpose.msra.mxu0 %v3036_v20 }
0x18ba   :  { %v4981_v57 = vpack.c.bf16 %v2974_v53, %v2974_v53  ;;  %v2977_v58 = vadd.f32 %v4818_v37, %v2976_v55  ;;  %v5499_v59 = vpop.f32.mrb[91].mxu0  ;;  %5518 = vmatprep.subr.bf16.mxu0 %v5858_v11  ;;  %v5738_v55 = vld [vmem:[%s6838_s7 + $0x68] sm:$0xff]  }
0x18bc   :  { %v4982_v44 = vpack.c.bf16 %v2977_v58, %v2977_v58  ;;  %v3106_v62 = vsel %vm517_vm7, %v4981_v57, 0 }
0x18be   :  { %5503 = vmatmul.mubr.msk.bf16.vlgmr.msra.gmra.mrb[88].mxu1 %vm397_vm6, %v4977_v60  ;;  %v3152_v63 = vsel %vm517_vm7, %v4982_v44, 0 }
0x18bf   :  { %5513 = vmatpush3.bf16.msra.mxu1 %v3106_v62  ;;  %5514 = vmatprep.mubr.msk.bf16.mxu1 %vm5859_vm4, %v5858_v11 }
0x18c0   :  { %5509 = vmatmul.mubr.msk.bf16.vlgmr.msra.gmra.mrb[92].mxu0 %vm397_vm6, %v4978_v61  ;;  %5524 = vmatprep.subr.bf16.mxu1 %v5858_v11 }
0x18c1   :  { %5519 = vmatpush3.bf16.msra.mxu0 %v3152_v63  ;;  %5520 = vmatprep.mubr.msk.bf16.mxu0 %vm5859_vm4, %v5858_v11 }
0x18c2   :  { %5530 = vmatprep.subr.bf16.mxu0 %v5858_v11 }
0x1991   :  { %v3026_v0 = vpop.f32.mrb[88].mxu1 }
0x1992   :  { %v5504_v47 = vpop.f32.mrb[89].mxu1  ;;  %v3078_v1 = vsel %vm397_vm6, %v3026_v0, -inf }
0x1993   :  { %v3072_v28 = vpop.f32.mrb[92].mxu0  ;;  %3079 = vmax.xlane.f32.xlu1 %v3078_v1  ;;  %v3029_v26 = vpop.f32.mrb[90].mxu1 }
0x1994   :  { %v5505_v2 = vpop.f32.mrb[91].mxu1  ;;  %v5510_v3 = vpop.f32.mrb[93].mxu0  ;;  %v3081_v4 = vsel %vm397_vm6, %v3072_v28, -inf }
0x1995   :  { %3082 = vmax.xlane.f32.xlu0 %v3081_v4  ;;  %v3075_v5 = vpop.f32.mrb[94].mxu0 }
0x1996   :  { %v5511_v6 = vpop.f32.mrb[95].mxu0  ;;  %v4836_v5 = vld [vmem:[%s6871_s22 + $0x6] ss:$0 sm:$0xff] }
0x1a20   :  { %v3080_v7 = vpop.xlane.xlu1 %3079 }
0x1a21   :  { %v3084_v8 = vsub.f32 %v3026_v0, %v3080_v7 }
0x1a22   :  { %v3083_v9 = vpop.xlane.xlu0 %3082 }
0x1a23   :  { %v3086_v13 = vmul.f32 1.442695, %v3084_v8  ;;  %v3085_v15 = vsub.f32 %v3072_v28, %v3083_v9 }
0x1a25   :  { %5801 = vpow2.f32 %v3086_v13  ;;  %v3088_v16 = vmul.f32 1.442695, %v3085_v15 }
0x1a27   :  { %5803 = vpow2.f32 %v3088_v16 }
0x1a2f   :  { %v5802_v18 = vpop.eup %5801 }
0x1a30   :  { %v3090_v19 = vsel %vm397_vm6, %v5802_v18, 0.0 }
0x1a31   :  { %v5804_v21 = vpop.eup %5803  ;;  %3091 = vadd.xlane.f32.xlu1 %v3090_v19  ;;  %v4858_v19 = vld [vmem:[%s6839_s8 + $0x6] ss:$0 sm:$0xff] }
0x1a32   :  { %v3093_v22 = vsel %vm397_vm6, %v5804_v21, 0.0 }
0x1a33   :  { %3094 = vadd.xlane.f32.xlu0 %v3093_v22 }
0x1abe   :  { %v3092_v24 = vpop.xlane.xlu1 %3091 }
0x1abf   :  { %5805 = vrcp.f32 %v3092_v24 }
0x1ac0   :  { %v3095_v25 = vpop.xlane.xlu0 %3094 }
0x1ac1   :  { %5807 = vrcp.f32 %v3095_v25 }
0x1ac9   :  { %v5806_v31 = vpop.eup %5805 }
0x1aca   :  { %v3098_v33 = vmul.f32 %v5806_v31, %v5802_v18 }
0x1acb   :  { %v5808_v34 = vpop.eup %5807 }
0x1acc   :  { %v3099_v36 = vmul.f32 %v5808_v34, %v5804_v21  ;;  %v3100_v38 = vpack.c.bf16 %v3098_v33, %v3098_v33 }
0x1ace   :  { %5515 = vmatmul.mubr.msk.bf16.vlgmr.msra.gmra.mrb[92].mxu1 %vm397_vm6, %v3100_v38  ;;  %v3101_v40 = vpack.c.bf16 %v3099_v36, %v3099_v36 }
0x1acf   :  { %5525 = vmatpush3.bf16.msra.mxu1 %v3201_v39  ;;  %5526 = vmatprep.mubr.msk.bf16.mxu1 %vm5859_vm4, %v5858_v11 }
0x1ad0   :  { %5521 = vmatmul.mubr.msk.bf16.vlgmr.msra.gmra.mrb[96].mxu0 %vm397_vm6, %v3101_v40  ;;  %5536 = vmatprep.subr.bf16.mxu1 %v5858_v11 }
0x1ad1   :  { %5531 = vmatpush3.bf16.msra.mxu0 %v3248_v43  ;;  %5532 = vmatprep.mubr.msk.bf16.mxu0 %vm5859_vm4, %v5858_v11 }
0x1ad2   :  { %5544 = vmatprep.subr.bf16.mxu0 %v5858_v11 }
0x1ad8   :  { %5533 = vmatmul.mubr.msk.bf16.vlgmr.msra.gmra.mrb[100].mxu0 %vm397_vm6, %v2767_v29 }
0x1ad9   :  { %5545 = vmatpush3.bf16.msra.mxu0 %v5733_v45  ;;  %5548 = vmatprep.mubr.msk.bf16.mxu0 %vm5859_vm4, %v5858_v11 }
0x1ada   :  { %5546 = vmatprep.subr.bf16.mxu0 %v5858_v11 }
0x1add   :  { %5547 = vmatpush3.bf16.msra.mxu0 %v5734_v46 }
0x1ade   :  { %5560 = vmatprep.subr.bf16.mxu0 %v5858_v11 }
0x1ae0   :  { %5549 = vmatmul.mubr.msk.bf16.vlgmr.msra.gmra.mrb[104].mxu0 %vm206_vm5, %v6436_v14 }
0x1ae1   :  { %5562 = vmatprep.mubr.msk.bf16.mxu0 %vm5859_vm4, %v5858_v11 }
0x1ba1   :  { %v3142_v23 = vpop.f32.mrb[92].mxu1 }
0x1ba2   :  { %v5516_v27 = vpop.f32.mrb[93].mxu1 }
0x1ba3   :  { %v3145_v29 = vpop.f32.mrb[94].mxu1  ;;  %v3188_v48 = vpop.f32.mrb[96].mxu0 }
0x1ba4   :  { %v3194_v49 = vpack.c.bf16 %v3188_v48, %v3142_v23  ;;  %v5517_v50 = vpop.f32.mrb[95].mxu1  ;;  %v5522_v51 = vpop.f32.mrb[97].mxu0 }
0x1ba5   :  { %v3191_v37 = vpop.f32.mrb[98].mxu0 }
0x1ba6   :  { %v5523_v41 = vpop.f32.mrb[99].mxu0  ;;  %5527 = vmatmul.mubr.msk.bf16.vlgmr.msra.gmra.mrb[96].mxu1 %vm397_vm6, %v3194_v49 }
0x1ba7   :  { %5537 = vmatpush3.bf16.msra.mxu1 %v5735_v30  ;;  %5540 = vmatprep.mubr.msk.bf16.mxu1 %vm5859_vm4, %v5858_v11 }
0x1ba8   :  { %5538 = vmatprep.subr.bf16.mxu1 %v5858_v11 }
0x1bab   :  { %5539 = vmatpush3.bf16.msra.mxu1 %v5736_v17  ;;  %v3284_v42 = vpop.f32.mrb[100].mxu0 }
0x1bac   :  { %v5534_v20 = vpop.f32.mrb[101].mxu0  ;;  %5552 = vmatprep.subr.bf16.mxu1 %v5858_v11 }
0x1bad   :  { %v3287_v53 = vpop.f32.mrb[102].mxu0 }
0x1bae   :  { %v5535_v54 = vpop.f32.mrb[103].mxu0  ;;  %5541 = vmatmul.mubr.msk.bf16.vlgmr.msra.gmra.mrb[100].mxu1 %vm206_vm5, %v6436_v14 }
0x1baf   :  { %5553 = vmatpush3.bf16.msra.mxu1 %v5737_v52  ;;  %5556 = vmatprep.mubr.msk.bf16.mxu1 %vm5859_vm4, %v5858_v11 }
0x1bb0   :  { %5554 = vmatprep.subr.bf16.mxu1 %v5858_v11 }
0x1bb3   :  { %5555 = vmatpush3.bf16.msra.mxu1 %v5738_v55  ;;  %v3422_v57 = vpop.f32.mrb[104].mxu0 }
0x1bb4   :  { %v3423_v58 = vadd.f32 %v4847_v56, %v3422_v57  ;;  %v5550_v59 = vpop.f32.mrb[105].mxu0  ;;  %5566 = vmatprep.subr.bf16.mxu1 %v5858_v11 }
0x1bb5   :  { %v3425_v60 = vpop.f32.mrb[106].mxu0 }
0x1bb6   :  { %v4985_v44 = vpack.c.bf16 %v3423_v58, %v3423_v58  ;;  %v3426_v61 = vadd.f32 %v4847_v56, %v3425_v60  ;;  %v5551_v62 = vpop.f32.mrb[107].mxu0  ;;  %5557 = vmatmul.mubr.msk.bf16.vlgmr.msra.gmra.mrb[104].mxu1 %vm206_vm5, %v6436_v14  ;;  %v4868_v56 = vld [vmem:[%s6840_s9 + $0x18] sm:$0xf] }
0x1bb7   :  { %5568 = vmatprep.mubr.msk.bf16.mxu1 %vm5859_vm4, %v5858_v11 }
0x1bb8   :  { %v3511_v63 = vsel %vm397_vm6, %v4985_v44, 0  ;;  %v4986_v0 = vpack.c.bf16 %v3426_v61, %v3426_v61  ;;  %v3722_v44 = vsel %vm517_vm7, %v4868_v56, 0  ;;  %v5739_v61 = vld [vmem:[%s6868_s3 + $0x70] sm:$0xff]  }
0x1bb9   :  { %5561 = vmatpush3.bf16.xpose.msra.mxu0 %v3511_v63  ;;  %v5740_v63 = vld [vmem:[%s6868_s3 + $0x78] sm:$0xff]  }
0x1bba   :  { %v3557_v47 = vsel %vm397_vm6, %v4986_v0, 0  ;;  %5572 = vmatprep.subr.bf16.mxu0 %v5858_v11  ;;  %v5741_v0 = vld [vmem:[%s6838_s7 + $0x70] sm:$0xff]  }
0x1bbc   :  { %5567 = vmatpush3.bf16.xpose.msra.mxu1 %v3557_v47  ;;  %v5742_v47 = vld [vmem:[%s6838_s7 + $0x78] sm:$0xff]  }
0x1bbd   :  { %5578 = vmatprep.subr.bf16.mxu1 %v5858_v11 }
0x1c79   :  { %v3237_v1 = vpop.f32.mrb[96].mxu1 }
0x1c7a   :  { %v6625_v28 = vadd.f32 %v3284_v42, %v3237_v1  ;;  %v5528_v26 = vpop.f32.mrb[97].mxu1 }
0x1c7b   :  { %v3240_v2 = vpop.f32.mrb[98].mxu1 }
0x1c7c   :  { %v6627_v3 = vadd.f32 %v3287_v53, %v3240_v2  ;;  %v5529_v4 = vpop.f32.mrb[99].mxu1 }
0x1c81   :  { %v3350_v6 = vpop.f32.mrb[100].mxu1 }
0x1c82   :  { %v3351_v7 = vadd.f32 %v4836_v5, %v3350_v6  ;;  %v5542_v8 = vpop.f32.mrb[101].mxu1 }
0x1c83   :  { %v3353_v9 = vpop.f32.mrb[102].mxu1 }
0x1c84   :  { %v4983_v13 = vpack.c.bf16 %v3351_v7, %v3351_v7  ;;  %v3354_v15 = vadd.f32 %v4836_v5, %v3353_v9  ;;  %v5543_v16 = vpop.f32.mrb[103].mxu1  ;;  %v5743_v5 = vld [vmem:[%s6870_s26 + $0x70] sm:$0xff]  }
0x1c86   :  { %v4984_v18 = vpack.c.bf16 %v3354_v15, %v3354_v15  ;;  %5563 = vmatmul.mubr.msk.bf16.vlgmr.msra.gmra.mrb[108].mxu0 %vm397_vm6, %v4983_v13  ;;  %v5744_v15 = vld [vmem:[%s6870_s26 + $0x78] sm:$0xff]  }
0x1c87   :  { %5574 = vmatprep.mubr.msk.bf16.mxu0 %vm5859_vm4, %v5858_v11 }
0x1c88   :  { %5569 = vmatmul.mubr.msk.bf16.vlgmr.msra.gmra.mrb[108].mxu1 %vm397_vm6, %v4984_v18 }
0x1c89   :  { %v3494_v21 = vpop.f32.mrb[104].mxu1  ;;  %5580 = vmatprep.mubr.msk.bf16.mxu1 %vm5859_vm4, %v5858_v11 }
0x1c8a   :  { %v3495_v22 = vadd.f32 %v4858_v19, %v3494_v21  ;;  %v5558_v24 = vpop.f32.mrb[105].mxu1 }
0x1c8b   :  { %v3497_v25 = vpop.f32.mrb[106].mxu1 }
0x1c8c   :  { %v4987_v31 = vpack.c.bf16 %v3495_v22, %v3495_v22  ;;  %v3498_v32 = vadd.f32 %v4858_v19, %v3497_v25  ;;  %v5559_v33 = vpop.f32.mrb[107].mxu1 }
0x1c8e   :  { %v3627_v34 = vsel %vm517_vm7, %v4987_v31, 0  ;;  %v4988_v35 = vpack.c.bf16 %v3498_v32, %v3498_v32 }
0x1c8f   :  { %5573 = vmatpush3.bf16.msra.mxu0 %v3627_v34 }
0x1c90   :  { %v3673_v36 = vsel %vm517_vm7, %v4988_v35, 0  ;;  %5584 = vmatprep.subr.bf16.mxu0 %v5858_v11 }
0x1c91   :  { %5579 = vmatpush3.bf16.msra.mxu1 %v3673_v36 }
0x1c92   :  { %5590 = vmatprep.subr.bf16.mxu1 %v5858_v11 }
0x1d59   :  { %v3547_v38 = vpop.f32.mrb[108].mxu0 }
0x1d5a   :  { %v5564_v39 = vpop.f32.mrb[109].mxu0  ;;  %v3599_v40 = vsel %vm397_vm6, %v3547_v38, -inf }
0x1d5b   :  { %3600 = vmax.xlane.f32.xlu1 %v3599_v40  ;;  %v3550_v43 = vpop.f32.mrb[110].mxu0  ;;  %v3593_v45 = vpop.f32.mrb[108].mxu1 }
0x1d5c   :  { %v5565_v46 = vpop.f32.mrb[111].mxu0  ;;  %v5570_v23 = vpop.f32.mrb[109].mxu1  ;;  %v3602_v27 = vsel %vm397_vm6, %v3593_v45, -inf }
0x1d5d   :  { %3603 = vmax.xlane.f32.xlu0 %v3602_v27  ;;  %v3596_v29 = vpop.f32.mrb[110].mxu1 }
0x1d5e   :  { %v5571_v48 = vpop.f32.mrb[111].mxu1 }
0x1de8   :  { %v3601_v30 = vpop.xlane.xlu1 %3600 }
0x1de9   :  { %v3605_v49 = vsub.f32 %v3547_v38, %v3601_v30 }
0x1dea   :  { %v3604_v50 = vpop.xlane.xlu0 %3603 }
0x1deb   :  { %v3607_v51 = vmul.f32 1.442695, %v3605_v49  ;;  %v3606_v37 = vsub.f32 %v3593_v45, %v3604_v50  ;;  %v4897_v45 = vld [vmem:[%s6839_s8 + $0x7] ss:$0 sm:$0xff] }
0x1ded   :  { %5809 = vpow2.f32 %v3607_v51  ;;  %v3609_v41 = vmul.f32 1.442695, %v3606_v37 }
0x1def   :  { %5811 = vpow2.f32 %v3609_v41 }
0x1df7   :  { %v5810_v17 = vpop.eup %5809 }
0x1df8   :  { %v3611_v42 = vsel %vm397_vm6, %v5810_v17, 0.0 }
0x1df9   :  { %v5812_v52 = vpop.eup %5811  ;;  %3612 = vadd.xlane.f32.xlu1 %v3611_v42 }
0x1dfa   :  { %v3614_v20 = vsel %vm397_vm6, %v5812_v52, 0.0 }
0x1dfb   :  { %3615 = vadd.xlane.f32.xlu0 %v3614_v20 }
0x1e86   :  { %v3613_v53 = vpop.xlane.xlu1 %3612 }
0x1e87   :  { %5813 = vrcp.f32 %v3613_v53 }
0x1e88   :  { %v3616_v54 = vpop.xlane.xlu0 %3615 }
0x1e89   :  { %5815 = vrcp.f32 %v3616_v54 }
0x1e91   :  { %v5814_v55 = vpop.eup %5813 }
0x1e92   :  { %v3619_v57 = vmul.f32 %v5814_v55, %v5810_v17 }
0x1e93   :  { %v5816_v58 = vpop.eup %5815 }
0x1e94   :  { %v3620_v59 = vmul.f32 %v5816_v58, %v5812_v52  ;;  %v3621_v60 = vpack.c.bf16 %v3619_v57, %v3619_v57 }
0x1e96   :  { %5575 = vmatmul.mubr.msk.bf16.vlgmr.msra.gmra.mrb[112].mxu0 %vm397_vm6, %v3621_v60  ;;  %v3622_v62 = vpack.c.bf16 %v3620_v59, %v3620_v59 }
0x1e97   :  { %5585 = vmatpush3.bf16.msra.mxu0 %v3722_v44  ;;  %5586 = vmatprep.mubr.msk.bf16.mxu0 %vm5859_vm4, %v5858_v11 }
0x1e98   :  { %5581 = vmatmul.mubr.msk.bf16.vlgmr.msra.gmra.mrb[112].mxu1 %vm397_vm6, %v3622_v62  ;;  %5598 = vmatprep.subr.bf16.mxu0 %v5858_v11 }
0x1e99   :  { %5591 = vmatpush3.bf16.msra.mxu1 %v5739_v61  ;;  %5594 = vmatprep.mubr.msk.bf16.mxu1 %vm5859_vm4, %v5858_v11 }
0x1e9a   :  { %5592 = vmatprep.subr.bf16.mxu1 %v5858_v11 }
0x1e9d   :  { %5593 = vmatpush3.bf16.msra.mxu1 %v5740_v63 }
0x1e9e   :  { %5606 = vmatprep.subr.bf16.mxu1 %v5858_v11 }
0x1ea0   :  { %5595 = vmatmul.mubr.msk.bf16.vlgmr.msra.gmra.mrb[116].mxu1 %vm206_vm5, %v6436_v14 }
0x1ea1   :  { %5607 = vmatpush3.bf16.msra.mxu1 %v5741_v0  ;;  %5610 = vmatprep.mubr.msk.bf16.mxu1 %vm5859_vm4, %v5858_v11 }
0x1ea2   :  { %5608 = vmatprep.subr.bf16.mxu1 %v5858_v11 }
0x1ea5   :  { %5609 = vmatpush3.bf16.msra.mxu1 %v5742_v47 }
0x1ea6   :  { %5620 = vmatprep.subr.bf16.mxu1 %v5858_v11 }
0x1ea8   :  { %5611 = vmatmul.mubr.msk.bf16.vlgmr.msra.gmra.mrb[120].mxu1 %vm206_vm5, %v6436_v14 }
0x1ea9   :  { %5622 = vmatprep.mubr.msk.bf16.mxu1 %vm5859_vm4, %v5858_v11 }
0x1f69   :  { %v3663_v1 = vpop.f32.mrb[112].mxu0 }
0x1f6a   :  { %v5576_v26 = vpop.f32.mrb[113].mxu0 }
0x1f6b   :  { %v3666_v2 = vpop.f32.mrb[114].mxu0  ;;  %v3709_v4 = vpop.f32.mrb[112].mxu1 }
0x1f6c   :  { %v3715_v6 = vpack.c.bf16 %v3709_v4, %v3663_v1  ;;  %v5577_v7 = vpop.f32.mrb[115].mxu0  ;;  %v5582_v8 = vpop.f32.mrb[113].mxu1 }
0x1f6d   :  { %v3712_v9 = vpop.f32.mrb[114].mxu1 }
0x1f6e   :  { %v5583_v13 = vpop.f32.mrb[115].mxu1  ;;  %5587 = vmatmul.mubr.msk.bf16.vlgmr.msra.gmra.mrb[116].mxu0 %vm397_vm6, %v3715_v6 }
0x1f6f   :  { %5599 = vmatpush3.bf16.msra.mxu0 %v5743_v5  ;;  %5602 = vmatprep.mubr.msk.bf16.mxu0 %vm5859_vm4, %v5858_v11 }
0x1f70   :  { %5600 = vmatprep.subr.bf16.mxu0 %v5858_v11 }
0x1f73   :  { %v3826_v16 = vpop.f32.mrb[116].mxu1  ;;  %5601 = vmatpush3.bf16.msra.mxu0 %v5744_v15  ;;  %v4907_v15 = vld [vmem:[%s6840_s9 + $0x1c] sm:$0xf] }
0x1f74   :  { %v5596_v18 = vpop.f32.mrb[117].mxu1  ;;  %5614 = vmatprep.subr.bf16.mxu0 %v5858_v11 }
0x1f75   :  { %v3829_v19 = vpop.f32.mrb[118].mxu1 }
0x1f76   :  { %v5597_v21 = vpop.f32.mrb[119].mxu1  ;;  %5603 = vmatmul.mubr.msk.bf16.vlgmr.msra.gmra.mrb[120].mxu0 %vm206_vm5, %v6436_v14  ;;  %v4886_v14 = vld [vmem:[%s6837_s6 + $0x7] ss:$0 sm:$0xff] }
0x1f77   :  { %5616 = vmatprep.mubr.msk.bf16.mxu0 %vm5859_vm4, %v5858_v11 }
0x1f7b   :  { %v3970_v22 = vpop.f32.mrb[120].mxu1 }
0x1f7c   :  { %v5612_v24 = vpop.f32.mrb[121].mxu1  ;;  %v3971_v29 = vadd.f32 %v4897_v45, %v3970_v22  ;;  %v4198_v22 = vsel %vm517_vm7, %v4907_v15, 0 }
0x1f7d   :  { %v3973_v25 = vpop.f32.mrb[122].mxu1 }
0x1f7e   :  { %v5613_v31 = vpop.f32.mrb[123].mxu1  ;;  %v3974_v50 = vadd.f32 %v4897_v45, %v3973_v25  ;;  %v4993_v41 = vpack.c.bf16 %v3971_v29, %v3971_v29  ;;  %v4910_v45 = vld [vmem:[%s6841_s10 + $0x1] ss:$0 sm:$0xff] }
0x1f80   :  { %v4994_v42 = vpack.c.bf16 %v3974_v50, %v3974_v50  ;;  %v4103_v20 = vsel %vm517_vm7, %v4993_v41, 0 }
0x1f82   :  { %v4149_v53 = vsel %vm517_vm7, %v4994_v42, 0 }
0x2041   :  { %v3758_v32 = vpop.f32.mrb[116].mxu0 }
0x2042   :  { %v6700_v33 = vadd.f32 %v3758_v32, %v6625_v28  ;;  %v5588_v34 = vpop.f32.mrb[117].mxu0 }
0x2043   :  { %v3761_v35 = vpop.f32.mrb[118].mxu0 }
0x2044   :  { %v6703_v36 = vadd.f32 %v3761_v35, %v6627_v3  ;;  %v5589_v38 = vpop.f32.mrb[119].mxu0  ;;  %v4875_v3 = vld [vmem:[%s6871_s22 + $0x7] ss:$0 sm:$0xff] }
0x2045   :  { %v3827_v49 = vadd.f32 %v4875_v3, %v3826_v16  ;;  %v3830_v37 = vadd.f32 %v4875_v3, %v3829_v19 }
0x2047   :  { %v4989_v17 = vpack.c.bf16 %v3827_v49, %v3827_v49  ;;  %v4990_v52 = vpack.c.bf16 %v3830_v37, %v3830_v37 }
0x2049   :  { %v3898_v39 = vpop.f32.mrb[120].mxu0 }
0x204a   :  { %v3899_v40 = vadd.f32 %v4886_v14, %v3898_v39  ;;  %v5604_v43 = vpop.f32.mrb[121].mxu0 }
0x204b   :  { %v3901_v46 = vpop.f32.mrb[122].mxu0 }
0x204c   :  { %v4991_v28 = vpack.c.bf16 %v3899_v40, %v3899_v40  ;;  %v3902_v23 = vadd.f32 %v4886_v14, %v3901_v46  ;;  %v5605_v27 = vpop.f32.mrb[123].mxu0 }
0x204e   :  { %v3987_v48 = vsel %vm397_vm6, %v4991_v28, 0  ;;  %v4992_v30 = vpack.c.bf16 %v3902_v23, %v3902_v23 }
0x204f   :  { %5615 = vmatpush3.bf16.xpose.msra.mxu0 %v3987_v48 }
0x2050   :  { %v4033_v51 = vsel %vm397_vm6, %v4992_v30, 0  ;;  %5626 = vmatprep.subr.bf16.mxu0 %v5858_v11 }
0x2051   :  { %5621 = vmatpush3.bf16.xpose.msra.mxu1 %v4033_v51 }
0x2052   :  { %5632 = vmatprep.subr.bf16.mxu1 %v5858_v11 }
0x2056   :  { %5617 = vmatmul.mubr.msk.bf16.vlgmr.msra.gmra.mrb[124].mxu0 %vm397_vm6, %v4989_v17 }
0x2057   :  { %5627 = vmatpush3.bf16.msra.mxu0 %v4103_v20  ;;  %5628 = vmatprep.mubr.msk.bf16.mxu0 %vm5859_vm4, %v5858_v11 }
0x2058   :  { %5623 = vmatmul.mubr.msk.bf16.vlgmr.msra.gmra.mrb[124].mxu1 %vm397_vm6, %v4990_v52  ;;  %5638 = vmatprep.subr.bf16.mxu0 %v5858_v11 }
0x2059   :  { %5633 = vmatpush3.bf16.msra.mxu1 %v4149_v53  ;;  %5634 = vmatprep.mubr.msk.bf16.mxu1 %vm5859_vm4, %v5858_v11 }
0x205a   :  { %5644 = vmatprep.subr.bf16.mxu1 %v5858_v11 }
0x2129   :  { %v4023_v54 = vpop.f32.mrb[124].mxu0 }
0x212a   :  { %v5618_v55 = vpop.f32.mrb[125].mxu0  ;;  %v4075_v56 = vsel %vm397_vm6, %v4023_v54, -inf }
0x212b   :  { %4076 = vmax.xlane.f32.xlu1 %v4075_v56  ;;  %v4026_v57 = vpop.f32.mrb[126].mxu0  ;;  %v4069_v58 = vpop.f32.mrb[124].mxu1  ;;  %v5747_v55 = vld [vmem:[%s6844_s13 + $0x20] sm:$0xff]   ;;  %v5748_v56 = vld [vmem:[%s6844_s13 + $0x28] sm:$0xff]  }
0x212c   :  { %v5619_v59 = vpop.f32.mrb[127].mxu0  ;;  %v5624_v60 = vpop.f32.mrb[125].mxu1  ;;  %v4078_v44 = vsel %vm397_vm6, %v4069_v58, -inf }
0x212d   :  { %4079 = vmax.xlane.f32.xlu0 %v4078_v44  ;;  %v4072_v61 = vpop.f32.mrb[126].mxu1 }
0x212e   :  { %v5625_v62 = vpop.f32.mrb[127].mxu1 }
0x21b8   :  { %v4077_v63 = vpop.xlane.xlu1 %4076 }
0x21b9   :  { %v4081_v0 = vsub.f32 %v4023_v54, %v4077_v63  ;;  %v5746_v54 = vld [vmem:[%s6842_s11 + $0x18] sm:$0xff]   ;;  %v4913_v63 = vld [vmem:[%s6846_s15 + $0x1] ss:$0 sm:$0xff] }
0x21ba   :  { %v4080_v47 = vpop.xlane.xlu0 %4079 }
0x21bb   :  { %v4083_v1 = vmul.f32 1.442695, %v4081_v0  ;;  %v4082_v26 = vsub.f32 %v4069_v58, %v4080_v47 }
0x21bd   :  { %5817 = vpow2.f32 %v4083_v1  ;;  %v4085_v2 = vmul.f32 1.442695, %v4082_v26 }
0x21bf   :  { %5819 = vpow2.f32 %v4085_v2  ;;  %v4914_v2 = vld [vmem:[%s6847_s16 + $0x1] ss:$0 sm:$0xff] }
0x21c7   :  { %v5818_v4 = vpop.eup %5817 }
0x21c8   :  { %v4087_v5 = vsel %vm397_vm6, %v5818_v4, 0.0 }
0x21c9   :  { %v5820_v6 = vpop.eup %5819  ;;  %4088 = vadd.xlane.f32.xlu1 %v4087_v5 }
0x21ca   :  { %v4090_v7 = vsel %vm397_vm6, %v5820_v6, 0.0 }
0x21cb   :  { %4091 = vadd.xlane.f32.xlu0 %v4090_v7 }
0x2256   :  { %v4089_v8 = vpop.xlane.xlu1 %4088 }
0x2257   :  { %5821 = vrcp.f32 %v4089_v8  ;;  %v5749_v8 = vld [vmem:[%s6844_s13 + $0x30] sm:$0xff]  }
0x2258   :  { %v4092_v9 = vpop.xlane.xlu0 %4091 }
0x2259   :  { %5823 = vrcp.f32 %v4092_v9  ;;  %v5750_v9 = vld [vmem:[%s6844_s13 + $0x38] sm:$0xff]  }
0x2261   :  { %v5822_v13 = vpop.eup %5821 }
0x2262   :  { %v4095_v16 = vmul.f32 %v5822_v13, %v5818_v4  ;;  %v4920_v13 = vld [vmem:[%s6843_s12 + $0x1] ss:$0 sm:$0xff] }
0x2263   :  { %v5824_v18 = vpop.eup %5823 }
0x2264   :  { %v4096_v19 = vmul.f32 %v5824_v18, %v5820_v6  ;;  %v4097_v21 = vpack.c.bf16 %v4095_v16, %v4095_v16 }
0x2266   :  { %5629 = vmatmul.mubr.msk.bf16.vlgmr.msra.gmra.mrb[128].mxu0 %vm397_vm6, %v4097_v21  ;;  %v4098_v24 = vpack.c.bf16 %v4096_v19, %v4096_v19 }
0x2267   :  { %5639 = vmatpush3.bf16.msra.mxu0 %v4198_v22  ;;  %5640 = vmatprep.mubr.msk.bf16.mxu0 %vm5859_vm4, %v5858_v11 }
0x2268   :  { %5635 = vmatmul.mubr.msk.bf16.vlgmr.msra.gmra.mrb[128].mxu1 %vm397_vm6, %v4098_v24  ;;  %5652 = vmatprep.subr.bf16.mxu0 %v5858_v11 }
0x2269   :  { %5648 = vmatprep.mubr.msk.bf16.mxu1 %vm5859_vm4, %v5858_v11 }
0x2339   :  { %v4139_v25 = vpop.f32.mrb[128].mxu0 }
0x233a   :  { %v5630_v31 = vpop.f32.mrb[129].mxu0 }
0x233b   :  { %v4142_v32 = vpop.f32.mrb[130].mxu0  ;;  %v4185_v34 = vpop.f32.mrb[128].mxu1 }
0x233c   :  { %v4191_v35 = vpack.c.bf16 %v4185_v34, %v4139_v25  ;;  %v5631_v38 = vpop.f32.mrb[131].mxu0  ;;  %v5636_v14 = vpop.f32.mrb[129].mxu1  ;;  %v4933_v32 = vld [vmem:[%s6872_s28 + $0x1] ss:$0 sm:$0xff] }
0x233d   :  { %v4188_v39 = vpop.f32.mrb[130].mxu1 }
0x233e   :  { %v5637_v40 = vpop.f32.mrb[131].mxu1  ;;  %5641 = vmatmul.mubr.msk.bf16.vlgmr.msra.gmra.mrb[132].mxu0 %vm397_vm6, %v4191_v35 }
0x233f   :  { %5660 = vmatprep.mubr.msk.bf16.mxu0 %vm5859_vm4, %v5858_v11  ;;  %5653 = vmatpush3.bf16.msra.mxu0 %v5747_v55 }
0x2340   :  { %5654 = vmatprep.subr.bf16.mxu0 %v5858_v11 }
0x2343   :  { %5655 = vmatpush3.bf16.msra.mxu0 %v5748_v56 }
0x2344   :  { %5656 = vmatprep.subr.bf16.mxu0 %v5858_v11 }
0x2347   :  { %5657 = vmatpush3.bf16.msra.mxu0 %v5749_v8 }
0x2348   :  { %5658 = vmatprep.subr.bf16.mxu0 %v5858_v11 }
0x234b   :  { %5659 = vmatpush3.bf16.msra.mxu0 %v5750_v9 }
0x2411   :  { %v4234_v43 = vpop.f32.mrb[132].mxu0 }
0x2412   :  { %v4241_v46 = vadd.f32 %v4234_v43, %v6700_v33  ;;  %v5642_v28 = vpop.f32.mrb[133].mxu0 }
0x2413   :  { %v4237_v23 = vpop.f32.mrb[134].mxu0 }
0x2414   :  { %v4251_v27 = vadd.f32 %v4910_v45, %v4241_v46  ;;  %v4242_v3 = vadd.f32 %v4237_v23, %v6703_v36  ;;  %v5643_v29 = vpop.f32.mrb[135].mxu0 }
0x2416   :  { %v4252_v48 = vadd.f32 %v4910_v45, %v4242_v3  ;;  %v4253_v30 = vadd.f32 %v4251_v27, %v6427_v10 }
0x2418   :  { %v4259_v49 = vsel %vm206_vm5, %v4253_v30, 0.0  ;;  %v4254_v50 = vadd.f32 %v4252_v48, %v6429_v12  ;;  %v5745_v12 = vld [vmem:[%s6842_s11 + $0x10] sm:$0xff]  }
0x2419   :  { %4260 = vadd.xlane.f32.xlu1 %v4259_v49  ;;  %5645 = vmatpush3.bf16.msra.mxu1 %v5745_v12  ;;  %v4941_v12 = vld [vmem:[%s6848_s17 + $0x1] ss:$0 sm:$0xff]  ;;  %s5860_s17 = smov [#allocation2]  }
0x241a   :  { %v4262_v51 = vsel %vm206_vm5, %v4254_v50, 0.0  ;;  %5646 = vmatprep.subr.bf16.mxu1 %v5858_v11  ;;  %s4582_s2 = sshll.u32 %s5860_s17, 4  ;;  %s4583_s2 = int_to_ptr.vmem [resolvable:$true] %s4582_s2 }
0x241b   :  { %4263 = vadd.xlane.f32.xlu0 %v4262_v51  ;;  %p5838_p1 = scmp.lt.s32.totalorder %s4583_s2, %s4583_s2 }
0x241d   :  { %5647 = vmatpush3.bf16.msra.mxu1 %v5746_v54 }
0x241e   :  { %5664 = vmatprep.subr.bf16.mxu1 %v5858_v11 }
0x24a6   :  { %v4261_v37 = vpop.xlane.xlu1 %4260 }
0x24a7   :  { %v4265_v41 = vmul.f32 0.03125, %v4261_v37 }
0x24a8   :  { %v4264_v33 = vpop.xlane.xlu0 %4263 }
0x24a9   :  { %v4267_v17 = vsub.f32 %v4253_v30, %v4265_v41  ;;  %v4266_v42 = vmul.f32 0.03125, %v4264_v33  ;;  %v5751_v41 = vld [vmem:[%s6850_s19] sm:$0xff]   ;;  %v5752_v33 = vld [vmem:[%s6850_s19 + $0x8] sm:$0xff]  }
0x24ab   :  { %v4268_v52 = vsub.f32 %v4254_v50, %v4266_v42  ;;  %v4269_v20 = vmul.f32 %v4267_v17, %v4267_v17 }
0x24ad   :  { %v4271_v36 = vsel %vm206_vm5, %v4269_v20, 0.0  ;;  %v4270_v53 = vmul.f32 %v4268_v52, %v4268_v52 }
0x24ae   :  { %4272 = vadd.xlane.f32.xlu1 %v4271_v36 }
0x24af   :  { %v4274_v10 = vsel %vm206_vm5, %v4270_v53, 0.0 }
0x24b0   :  { %4275 = vadd.xlane.f32.xlu0 %v4274_v10 }
0x253b   :  { %v4273_v57 = vpop.xlane.xlu1 %4272 }
0x253c   :  { %v4277_v58 = vmul.f32 0.03125, %v4273_v57 }
0x253d   :  { %v4276_v59 = vpop.xlane.xlu0 %4275 }
0x253e   :  { %v4279_v60 = vadd.f32 1e-05, %v4277_v58  ;;  %v4278_v44 = vmul.f32 0.03125, %v4276_v59 }
0x2540   :  { %5825 = vrsqrt.f32 %v4279_v60  ;;  %v4280_v61 = vadd.f32 1e-05, %v4278_v44 }
0x2542   :  { %5827 = vrsqrt.f32 %v4280_v61  ;;  %v4943_v61 = vld [vmem:[%s6851_s20] ss:$0 sm:$0xff] }
0x254a   :  { %v5826_v62 = vpop.eup %5825 }
0x254b   :  { %v4283_v0 = vmul.f32 %v5826_v62, %v4267_v17 }
0x254c   :  { %v5828_v47 = vpop.eup %5827 }
0x254d   :  { %v4291_v1 = vmul.f32 %v4913_v63, %v4283_v0  ;;  %v4284_v26 = vmul.f32 %v5828_v47, %v4268_v52 }
0x254f   :  { %v4292_v4 = vmul.f32 %v4913_v63, %v4284_v26  ;;  %v4299_v5 = vadd.f32 %v4914_v2, %v4291_v1 }
0x2551   :  { %v4300_v6 = vadd.f32 %v4914_v2, %v4292_v4 }
0x2553   :  { %v4301_v7 = vpack.c.bf16 %v4300_v6, %v4299_v5 }
0x2555   :  { %5649 = vmatmul.mubr.msk.bf16.vlgmr.msra.gmra.mrb[132].mxu1 %vm206_vm5, %v4301_v7 }
0x2556   :  { %5668 = vmatprep.mubr.msk.bf16.mxu1 %vm5859_vm4, %v5858_v11  ;;  %5665 = vmatpush3.bf16.msra.mxu1 %v5751_v41 }
0x2557   :  { %5666 = vmatprep.subr.bf16.mxu1 %v5858_v11  ;;  %v4942_v11 = vld [vmem:[%s6849_s18 + $0x1] ss:$0 sm:$0xff]  ;;  %s5833_s18 = scalar_lea.vmem %s4583_s2, 256 }
0x2558   :  { %p5834_p0 = scmp.ne.s32.totalorder %s4583_s2, %s5833_s18  ;;  %p5839_p2 = scmp.lt.s32.totalorder %s5833_s18, %s5833_s18 }
0x255a   :  { %5667 = vmatpush3.bf16.msra.mxu1 %v5752_v33  ;;  %p5840_p3 = por %p5839_p2, %p5838_p1 }
0x255c   :  { %p5841_p4 = pnand %p5840_p3, %p5834_p0 }
0x2628   :  { %v4364_v15 = vpop.f32.mrb[132].mxu1 }
0x2629   :  { %v4365_v16 = vadd.f32 %v4920_v13, %v4364_v15  ;;  %v5650_v18 = vpop.f32.mrb[133].mxu1 }
0x262a   :  { %v4367_v19 = vpop.f32.mrb[134].mxu1 }
0x262b   :  { %v4368_v21 = vadd.f32 %v4920_v13, %v4367_v19  ;;  %v5651_v22 = vpop.f32.mrb[135].mxu1  ;;  %v4371_v24 = vmax.f32 %v4365_v16, 0.0 }
0x262d   :  { %v4372_v25 = vmax.f32 %v4368_v21, 0.0 }
0x262f   :  { %v4373_v31 = vpack.c.bf16 %v4372_v25, %v4371_v24 }
0x2631   :  { %5661 = vmatmul.mubr.msk.bf16.vlgmr.msra.gmra.mrb[136].mxu0 %vm2248_vm8, %v4373_v31 }
0x2704   :  { %v4452_v34 = vpop.f32.mrb[136].mxu0 }
0x2705   :  { %v4453_v35 = vadd.f32 %v4933_v32, %v4452_v34  ;;  %v5662_v38 = vpop.f32.mrb[137].mxu0 }
0x2706   :  { %v4455_v14 = vpop.f32.mrb[138].mxu0 }
0x2707   :  { %v4456_v39 = vadd.f32 %v4933_v32, %v4455_v14  ;;  %v5663_v40 = vpop.f32.mrb[139].mxu0  ;;  %v4459_v43 = vadd.f32 %v4453_v35, %v4299_v5 }
0x2709   :  { %v4465_v45 = vsel %vm206_vm5, %v4459_v43, 0.0  ;;  %v4460_v46 = vadd.f32 %v4456_v39, %v4300_v6 }
0x270a   :  { %4466 = vadd.xlane.f32.xlu1 %v4465_v45 }
0x270b   :  { %v4468_v28 = vsel %vm206_vm5, %v4460_v46, 0.0 }
0x270c   :  { %4469 = vadd.xlane.f32.xlu0 %v4468_v28 }
0x2797   :  { %v4467_v23 = vpop.xlane.xlu1 %4466 }
0x2798   :  { %v4471_v27 = vmul.f32 0.03125, %v4467_v23 }
0x2799   :  { %v4470_v3 = vpop.xlane.xlu0 %4469 }
0x279a   :  { %v4473_v29 = vsub.f32 %v4459_v43, %v4471_v27  ;;  %v4472_v48 = vmul.f32 0.03125, %v4470_v3 }
0x279c   :  { %v4474_v30 = vsub.f32 %v4460_v46, %v4472_v48  ;;  %v4475_v49 = vmul.f32 %v4473_v29, %v4473_v29 }
0x279e   :  { %v4477_v50 = vsel %vm206_vm5, %v4475_v49, 0.0  ;;  %v4476_v51 = vmul.f32 %v4474_v30, %v4474_v30 }
0x279f   :  { %4478 = vadd.xlane.f32.xlu1 %v4477_v50 }
0x27a0   :  { %v4480_v37 = vsel %vm206_vm5, %v4476_v51, 0.0 }
0x27a1   :  { %4481 = vadd.xlane.f32.xlu0 %v4480_v37 }
0x282c   :  { %v4479_v17 = vpop.xlane.xlu1 %4478 }
0x282d   :  { %v4483_v42 = vmul.f32 0.03125, %v4479_v17 }
0x282e   :  { %v4482_v52 = vpop.xlane.xlu0 %4481 }
0x282f   :  { %v4485_v20 = vadd.f32 1e-05, %v4483_v42  ;;  %v4484_v36 = vmul.f32 0.03125, %v4482_v52 }
0x2831   :  { %5829 = vrsqrt.f32 %v4485_v20  ;;  %v4486_v53 = vadd.f32 1e-05, %v4484_v36 }
0x2833   :  { %5831 = vrsqrt.f32 %v4486_v53 }
0x283b   :  { %v5830_v10 = vpop.eup %5829 }
0x283c   :  { %v4489_v54 = vmul.f32 %v5830_v10, %v4473_v29 }
0x283d   :  { %v5832_v55 = vpop.eup %5831 }
0x283e   :  { %v4497_v56 = vmul.f32 %v4941_v12, %v4489_v54  ;;  %v4490_v57 = vmul.f32 %v5832_v55, %v4474_v30 }
0x2840   :  { %v4498_v58 = vmul.f32 %v4941_v12, %v4490_v57  ;;  %v4505_v59 = vadd.f32 %v4942_v11, %v4497_v56 }
0x2842   :  { %v4506_v60 = vadd.f32 %v4942_v11, %v4498_v58 }
0x2844   :  { %v4507_v44 = vpack.c.bf16 %v4506_v60, %v4505_v59 }
0x2846   :  { %5669 = vmatmul.mubr.msk.bf16.vlgmr.msra.gmra.mrb[136].mxu1 %vm206_vm5, %v4507_v44 }
0x2919   :  { %v4568_v62 = vpop.f32.mrb[136].mxu1 }
0x291a   :  { %v4569_v63 = vadd.f32 %v4943_v61, %v4568_v62  ;;  %v5670_v0 = vpop.f32.mrb[137].mxu1 }
0x291b   :  { %v4571_v47 = vpop.f32.mrb[138].mxu1 }
0x291c   :  { %4575 = vst.msk [vmem:[#allocation2] sm:$0xff] %vm93_vm1, %v4569_v63  ;;  %v4572_v1 = vadd.f32 %v4943_v61, %v4571_v47  ;;  %v5671_v26 = vpop.f32.mrb[139].mxu1 }
0x291e   :  { %4576 = vst.msk [vmem:[#allocation2 + $0x8] sm:$0xff] %vm93_vm1, %v4572_v1 }
0x291f   :  { %5844 = shalt.err (!%p5841_p4)
}
0x2920   :  { %s5845_s27 = scalar_lea.hbm %s6852_s21, 256 }
0x2921   :  { %p5846_p5 = scmp.ne.s32.totalorder %s6852_s21, %s5845_s27  ;;  %p5849_p6 = scmp.lt.u32.totalorder %s5845_s27, %s6852_s21 }
0x2923   :  { %p5851_p7 = pnand %p5849_p6, %p5846_p5 }
0x2925   :  { %5854 = shalt.err (!%p5851_p7)
}
0x2926   :  { %s5861_s14 = smov 128   ;;  %s5862_s26 = smov 8  }
0x2927   :  { %4588 = dma.vmem_to_hbm [thread:$0]  %s4583_s2, 256, %s6852_s21, [#allocation3], %s5861_s14, %s5861_s14, %s5862_s26  }
0x2928   :  { %5855 = dma.done.wait [#allocation3], 256  }
0x2929   :  { %5856 = vsyncadd [#allocation3], 4294967040 }
0x292a   :  { %4592 = vsyncpa [#allocation3], 1 }

</bundles_post_ra>
